<compile_context>
chip_gen: v7x
topology: tpu7x:2x2x1
jax: 0.10.0
libtpu: 0.0.40
codegen_flags: <defaults>
</compile_context>

<pallas_src>
import math

import jax
import jax.numpy as jnp
from jax.experimental import pallas as pl
from jax.experimental.pallas import tpu as pltpu  # noqa: F401  (TPU backend assumed)


# ----------------------------------------------------------------------------
# In-kernel helpers
# ----------------------------------------------------------------------------
def _bidir_recurrence(get_pre, wh, n_steps, batch, hidden, get_mask=None):
    """Serial part of one bidirectional LSTM layer (input projections hoisted).

    get_pre(s): [batch, 8H] precomputed input projection (+bias) for loop step s
                (fwd direction consumes time s, rev direction time T-1-s).
    wh        : [2H, 8H] packed hidden->gate weights (fwd rows | rev rows),
                gate column order [i | f | o | g], each 2H wide ([fwd H | rev H]).
    get_mask(s): optional [batch, 2H] f32 validity mask (>0 = valid); fwd half
                is the validity of time s, rev half of time T-1-s.

    Returns the list of per-step states  h(s) = [h_fwd(s) | h_rev(T-1-s)].
    """
    H = hidden
    h = jnp.zeros((batch, 2 * H), jnp.float32)
    c = jnp.zeros((batch, 2 * H), jnp.float32)
    states = []
    for s in range(n_steps):
        # single dot on the critical path per step
        gates = get_pre(s) + jnp.dot(h, wh, preferred_element_type=jnp.float32)
        sig = jax.nn.sigmoid(gates[:, 0:6 * H])          # i | f | o  (one EUP pass)
        g_g = jnp.tanh(gates[:, 6 * H:8 * H])            # g          (one EUP pass)
        i_g = sig[:, 0:2 * H]
        f_g = sig[:, 2 * H:4 * H]
        o_g = sig[:, 4 * H:6 * H]
        c_new = f_g * c + i_g * g_g
        h_new = o_g * jnp.tanh(c_new)
        if get_mask is not None:
            m = get_mask(s) > 0.0                        # [batch, 2H] bool
            c = jnp.where(m, c_new, c)                   # one vselect per state
            h = jnp.where(m, h_new, h)
        else:
            c = c_new
            h = h_new
        states.append(h)
    return states


# ----------------------------------------------------------------------------
# Fused forward kernel (single pallas_call, everything resident in VMEM)
# ----------------------------------------------------------------------------
def ts_fused_kernel(xx_ref, mask_ref,
                    ew0_ref, eb0_ref, ew1_ref, eb1_ref,
                    sw0_ref, sb0_ref, sw1_ref, sb1_ref,
                    hw_ref, hb_ref, out_ref):
    f32 = jnp.float32
    T, B, twoHe = mask_ref.shape
    He = twoHe // 2
    Hs = sb0_ref.shape[1] // 8
    twoI = xx_ref.shape[1]

    # --- 1a) Encoder layer 0: hoisted input projection (one big MXU dot) -----
    pre0 = (jnp.dot(xx_ref[...], ew0_ref[0:twoI, :],
                    preferred_element_type=f32) + eb0_ref[...])       # [T*B, 8He]
    st0 = _bidir_recurrence(lambda s: pre0[s * B:(s + 1) * B, :],
                            ew0_ref[twoI:twoI + 2 * He, :],
                            T, B, He, get_mask=lambda s: mask_ref[s])

    # --- 1b) Encoder layer 1 (swap-packed input weights) + fused max-pool ----
    H0 = jnp.concatenate(st0, axis=0)                                  # [T*B, 2He]
    p1a = (jnp.dot(H0, ew1_ref[0:2 * He, :], preferred_element_type=f32)
           + eb1_ref[...])                                             # [T*B, 8He]
    p1b = jnp.dot(H0, ew1_ref[2 * He:4 * He, :], preferred_element_type=f32)
    st1 = _bidir_recurrence(
        lambda s: p1a[s * B:(s + 1) * B, :] + p1b[(T - 1 - s) * B:(T - s) * B, :],
        ew1_ref[4 * He:6 * He, :],
        T, B, He, get_mask=lambda s: mask_ref[s])

    # masked max-pool over valid word positions, fused into the step states:
    # st1[s] = [out_fwd(s) | out_rev(T-1-s)] and mask[s] = [valid(s) | valid(T-1-s)]
    senc = jnp.full((B, 2 * He), -jnp.inf, f32)
    for s in range(T):
        senc = jnp.maximum(senc, jnp.where(mask_ref[s] > 0.0, st1[s], -jnp.inf))

    # --- 2a) sentence_lstm layer 0: sentences are the (unbatched) time axis --
    NS = B
    sfa = (jnp.dot(senc, sw0_ref[0:2 * He, :], preferred_element_type=f32)
           + sb0_ref[...])                                             # [NS, 8Hs]
    sfb = jnp.dot(senc, sw0_ref[2 * He:4 * He, :], preferred_element_type=f32)
    ss0 = _bidir_recurrence(
        lambda s: sfa[s:s + 1, :] + sfb[NS - 1 - s:NS - s, :],
        sw0_ref[4 * He:4 * He + 2 * Hs, :],
        NS, 1, Hs)

    # --- 2b) sentence_lstm layer 1 (swap-packed input weights) ---------------
    S0 = jnp.concatenate(ss0, axis=0)                                  # [NS, 2Hs]
    q1a = (jnp.dot(S0, sw1_ref[0:2 * Hs, :], preferred_element_type=f32)
           + sb1_ref[...])
    q1b = jnp.dot(S0, sw1_ref[2 * Hs:4 * Hs, :], preferred_element_type=f32)
    ss1 = _bidir_recurrence(
        lambda s: q1a[s:s + 1, :] + q1b[NS - 1 - s:NS - s, :],
        sw1_ref[4 * Hs:6 * Hs, :],
        NS, 1, Hs)

    # --- 3) h2s linear (output padded to 128 lanes -> lane-dense store) ------
    # ss1[s] = [f(s) | r(NS-1-s)]  ->  logits(t) = f(t) @ Wf + r(t) @ Wr + b
    hmat = jnp.concatenate(ss1, axis=0)          # row s = [f(s) | r(NS-1-s)]
    hrev = jnp.concatenate(ss1[::-1], axis=0)    # row s = [f(NS-1-s) | r(s)]
    out_ref[...] = (
        jnp.dot(hmat[:, 0:Hs], hw_ref[0:Hs, :], preferred_element_type=f32)
        + jnp.dot(hrev[:, Hs:2 * Hs], hw_ref[Hs:2 * Hs, :],
                  preferred_element_type=f32)
        + hb_ref[...])


# ----------------------------------------------------------------------------
# Host-side wrapper
# ----------------------------------------------------------------------------
@jax.jit
def ts_model_forward(words, lengths, params):
    """words: [num_sent, max_words, input_size], lengths: [num_sent] -> [num_sent, 2]."""
    B, T, I = words.shape
    He = params["enc_b0"].shape[1] // 8
    x = jnp.transpose(words, (1, 0, 2)).astype(jnp.float32)            # [T, B, I]

    # fwd/rev input pair for encoder layer 0: xx[t] = [x(t), x(T-1-t)]
    xx = jnp.concatenate([x, x[::-1]], axis=-1).reshape(T * B, 2 * I)  # [T*B, 2I]

    # validity mask (packed-sequence emulation), direction-aware, built ONCE:
    # lanes [0:He] = valid(t) (fwd dir consumes time t at loop step t),
    # lanes [He:2He] = valid(T-1-t) (rev dir consumes time T-1-t at step t).
    m = (jnp.arange(T)[:, None] < lengths[None, :]).astype(jnp.float32)   # [T, B]
    maskw = jnp.concatenate(
        [jnp.broadcast_to(m[:, :, None], (T, B, He)),
         jnp.broadcast_to(m[::-1][:, :, None], (T, B, He))], axis=-1)

    out_pad = pl.pallas_call(                                          # single fused call
        ts_fused_kernel,
        out_shape=jax.ShapeDtypeStruct((B, 128), jnp.float32),
    )(xx, maskw,
      params["enc_w0"], params["enc_b0"], params["enc_w1"], params["enc_b1"],
      params["sent_w0"], params["sent_b0"], params["sent_w1"], params["sent_b1"],
      params["h2s_w"], params["h2s_b"])

    return out_pad[:, :2]                                              # real logits


# ----------------------------------------------------------------------------
# Parameter construction (PyTorch-layout LSTM params -> packed kernel layout)
# ----------------------------------------------------------------------------
def _lstm_dir_params(key, in_size, hidden):
    """One LSTM direction in PyTorch layout: W_ih [4H,D], W_hh [4H,H], b_ih, b_hh."""
    bound = 1.0 / math.sqrt(hidden)
    k1, k2, k3, k4 = jax.random.split(key, 4)
    return (jax.random.uniform(k1, (4 * hidden, in_size), jnp.float32, -bound, bound),
            jax.random.uniform(k2, (4 * hidden, hidden), jnp.float32, -bound, bound),
            jax.random.uniform(k3, (4 * hidden,), jnp.float32, -bound, bound),
            jax.random.uniform(k4, (4 * hidden,), jnp.float32, -bound, bound))


def _to_packed_cols(w, H):
    """PyTorch [4H, K] (gate rows i,f,g,o) -> [K, 4H] with column chunks (i,f,o,g)."""
    return jnp.concatenate(
        [w[0:H].T, w[H:2 * H].T, w[3 * H:4 * H].T, w[2 * H:3 * H].T], axis=-1)


def _to_packed_bias(b, H):
    """PyTorch [4H] (i,f,g,o) -> [4H] reordered to (i,f,o,g)."""
    return jnp.concatenate([b[0:H], b[H:2 * H], b[3 * H:4 * H], b[2 * H:3 * H]], axis=-1)


def _interleave_dirs(Pf, Pr, H):
    """Pf, Pr: [K, 4H] gate-chunked (i,f,o,g) -> [K, 8H] with per-gate [fwd|rev] cols."""
    K = Pf.shape[0]
    return jnp.stack([Pf.reshape(K, 4, H), Pr.reshape(K, 4, H)], axis=2).reshape(K, 8 * H)


def pack_seq_layer(fwd, rev, in_size, hidden):
    """Layer whose fwd/rev inputs come as an explicit (x(t), x(T-1-t)) pair.

    Row layout: [0:D] fwd-input, [D:2D] rev-input, [2D:2D+H] fwd-hidden,
    [2D+H:2D+2H] rev-hidden.  Gate cols: (i,f,o,g) x (fwd|rev), H lanes each.
    """
    D, H = in_size, hidden
    w_ih_f, w_hh_f, b_ih_f, b_hh_f = fwd
    w_ih_r, w_hh_r, b_ih_r, b_hh_r = rev
    z_in = jnp.zeros((D, 4 * H), jnp.float32)
    z_h = jnp.zeros((H, 4 * H), jnp.float32)
    W = jnp.concatenate([
        _interleave_dirs(_to_packed_cols(w_ih_f, H), z_in, H),
        _interleave_dirs(z_in, _to_packed_cols(w_ih_r, H), H),
        _interleave_dirs(_to_packed_cols(w_hh_f, H), z_h, H),
        _interleave_dirs(z_h, _to_packed_cols(w_hh_r, H), H),
    ], axis=0)                                                         # [2D+2H, 8H]
    b = _interleave_dirs(_to_packed_bias(b_ih_f + b_hh_f, H)[None, :],
                         _to_packed_bias(b_ih_r + b_hh_r, H)[None, :], H)
    return W, b


def pack_swap_layer(fwd, rev, hidden_prev, hidden):
    """Layer consuming the previous bidir layer's per-step 'swap states'
    h(s) = [f(s) | r(T-1-s)]:  pre(s) = h(s) @ M1 + h(T-1-s) @ M2 + bias.

    Row layout: [0:2Hp] = M1, [2Hp:4Hp] = M2, then fwd/rev hidden rows.
    """
    Hp, H = hidden_prev, hidden
    w_ih_f, w_hh_f, b_ih_f, b_hh_f = fwd
    w_ih_r, w_hh_r, b_ih_r, b_hh_r = rev
    z_in = jnp.zeros((2 * Hp, 4 * H), jnp.float32)
    z_h = jnp.zeros((H, 4 * H), jnp.float32)
    Wf_in = _interleave_dirs(_to_packed_cols(w_ih_f, H), z_in, H)      # fwd cols only
    Wr_in = _interleave_dirs(z_in, _to_packed_cols(w_ih_r, H), H)      # rev cols only
    M1 = jnp.concatenate([Wf_in[0:Hp], Wr_in[Hp:2 * Hp]], axis=0)
    M2 = jnp.concatenate([Wr_in[0:Hp], Wf_in[Hp:2 * Hp]], axis=0)
    W = jnp.concatenate([
        M1, M2,
        _interleave_dirs(_to_packed_cols(w_hh_f, H), z_h, H),
        _interleave_dirs(z_h, _to_packed_cols(w_hh_r, H), H),
    ], axis=0)                                                         # [4Hp+2H, 8H]
    b = _interleave_dirs(_to_packed_bias(b_ih_f + b_hh_f, H)[None, :],
                         _to_packed_bias(b_ih_r + b_hh_r, H)[None, :], H)
    return W, b


def init_ts_model(key, input_size, enc_hidden, sent_hidden, num_layers=2):
    params, raw = {}, {"enc": [], "sent": []}
    for layer in range(num_layers):                                    # word encoder
        d = input_size if layer == 0 else 2 * enc_hidden
        key, kf, kr = jax.random.split(key, 3)
        fwd = _lstm_dir_params(kf, d, enc_hidden)
        rev = _lstm_dir_params(kr, d, enc_hidden)
        raw["enc"].append((fwd, rev))
        if layer == 0:
            W, b = pack_seq_layer(fwd, rev, d, enc_hidden)
        else:
            W, b = pack_swap_layer(fwd, rev, enc_hidden, enc_hidden)
        params[f"enc_w{layer}"], params[f"enc_b{layer}"] = W, b
    for layer in range(num_layers):                                    # sentence LSTM
        d = 2 * enc_hidden if layer == 0 else 2 * sent_hidden
        key, kf, kr = jax.random.split(key, 3)
        fwd = _lstm_dir_params(kf, d, sent_hidden)
        rev = _lstm_dir_params(kr, d, sent_hidden)
        raw["sent"].append((fwd, rev))
        if layer == 0:
            W, b = pack_seq_layer(fwd, rev, d, sent_hidden)
        else:
            W, b = pack_swap_layer(fwd, rev, sent_hidden, sent_hidden)
        params[f"sent_w{layer}"], params[f"sent_b{layer}"] = W, b
    # h2s linear, zero-padded to 128 output lanes for a lane-dense final store
    bound = 1.0 / math.sqrt(2 * sent_hidden)
    key, kw, kb = jax.random.split(key, 3)
    w = jax.random.uniform(kw, (2, 2 * sent_hidden), jnp.float32, -bound, bound)
    bb = jax.random.uniform(kb, (2,), jnp.float32, -bound, bound)
    params["h2s_w"] = jnp.zeros((2 * sent_hidden, 128), jnp.float32).at[:, :2].set(w.T)
    params["h2s_b"] = jnp.zeros((1, 128), jnp.float32).at[0, :2].set(bb)
    raw["h2s"] = (w, bb)
    return key, params, raw


# ----------------------------------------------------------------------------
# Pure-JAX reference (PyTorch-layout weights) for a numerical sanity check
# ----------------------------------------------------------------------------
def _ref_lstm_dir(x, mask, p, reverse):
    w_ih, w_hh, b_ih, b_hh = p
    T, B, _ = x.shape
    H = w_hh.shape[1]
    hp = jax.lax.Precision.HIGHEST
    h = jnp.zeros((B, H), jnp.float32)
    c = jnp.zeros((B, H), jnp.float32)
    outs = [None] * T
    for t in (range(T - 1, -1, -1) if reverse else range(T)):
        g = (jnp.dot(x[t], w_ih.T, precision=hp)
             + jnp.dot(h, w_hh.T, precision=hp) + b_ih + b_hh)
        i = jax.nn.sigmoid(g[:, 0:H]);      f = jax.nn.sigmoid(g[:, H:2 * H])
        gg = jnp.tanh(g[:, 2 * H:3 * H]);   o = jax.nn.sigmoid(g[:, 3 * H:4 * H])
        cc = f * c + i * gg
        hh = o * jnp.tanh(cc)
        m = mask[t][:, None]
        c = m * cc + (1.0 - m) * c
        h = m * hh + (1.0 - m) * h
        outs[t] = h
    return jnp.stack(outs, axis=0)


def _ref_bidir(x, mask, layers):
    inp = x
    for fwd, rev in layers:
        hf = _ref_lstm_dir(inp, mask, fwd, reverse=False)
        hb = _ref_lstm_dir(inp, mask, rev, reverse=True)
        inp = jnp.concatenate([hf, hb], axis=-1)
    return inp


def ts_model_reference(words, lengths, raw):
    B, T, _ = words.shape
    x = jnp.transpose(words, (1, 0, 2)).astype(jnp.float32)
    mask = (jnp.arange(T)[:, None] < lengths[None, :]).astype(jnp.float32)
    enc = _ref_bidir(x, mask, raw["enc"])
    senc = jnp.max(jnp.where(mask[:, :, None] > 0, enc, -jnp.inf), axis=0)
    sent = _ref_bidir(senc[:, None, :], jnp.ones((B, 1), jnp.float32), raw["sent"])[:, 0, :]
    w, b = raw["h2s"]
    return jnp.dot(sent, w.T, precision=jax.lax.Precision.HIGHEST) + b


# ----------------------------------------------------------------------------
# Main
# ----------------------------------------------------------------------------
if __name__ == "__main__":
    INPUT_SIZE = 32      # word embedding dim
    ENC_HIDDEN = 32      # SentenceEncodingRNN(hidden=...)
    SENT_HIDDEN = 32     # TS_Model(hidden=...)
    NUM_SENT = 8         # == PackedSequence batch_sizes[0]
    MAX_WORDS = 8

    key = jax.random.PRNGKey(0)
    key, kx = jax.random.split(key)
    words = jax.random.normal(kx, (NUM_SENT, MAX_WORDS, INPUT_SIZE), jnp.float32)
    lengths = jnp.array([8, 5, 7, 3, 8, 6, 4, 2], dtype=jnp.int32)   # all >= 1

    key, params, raw = init_ts_model(key, INPUT_SIZE, ENC_HIDDEN, SENT_HIDDEN)

    out = jax.block_until_ready(ts_model_forward(words, lengths, params))
    ref = jax.block_until_ready(ts_model_reference(words, lengths, raw))

    assert out.shape == (NUM_SENT, 2), out.shape
    assert bool(jnp.all(jnp.isfinite(out)))
    # Loose tolerance: kernel MXU matmuls vs XLA HIGHEST-precision reference may
    # differ slightly, but any structural/packing bug produces O(0.1+) errors.
    assert bool(jnp.allclose(out, ref, rtol=0.0, atol=5e-2)), (out, ref)
    print("KERNEL_OK")
</pallas_src>

<mosaic_0001>
module attributes {stable_mosaic.version = 11 : i64} {
  func.func @ts_fused_kernel(%arg0: memref<64x64xf32, #tpu.memory_space<vmem>>, %arg1: memref<8x8x64xf32, #tpu.memory_space<vmem>>, %arg2: memref<128x256xf32, #tpu.memory_space<vmem>>, %arg3: memref<1x256xf32, #tpu.memory_space<vmem>>, %arg4: memref<192x256xf32, #tpu.memory_space<vmem>>, %arg5: memref<1x256xf32, #tpu.memory_space<vmem>>, %arg6: memref<192x256xf32, #tpu.memory_space<vmem>>, %arg7: memref<1x256xf32, #tpu.memory_space<vmem>>, %arg8: memref<192x256xf32, #tpu.memory_space<vmem>>, %arg9: memref<1x256xf32, #tpu.memory_space<vmem>>, %arg10: memref<64x128xf32, #tpu.memory_space<vmem>>, %arg11: memref<1x128xf32, #tpu.memory_space<vmem>>, %arg12: memref<8x128xf32, #tpu.memory_space<vmem>>) attributes {dimension_semantics = [], scalar_prefetch = 0 : i64, scratch_operands = 0 : i64, tpu.core_type = #tpu.core_type<tc>} {
    %c0 = arith.constant 0 : index
    %c0_0 = arith.constant 0 : index
    %0 = vector.load %arg0[%c0, %c0_0] : memref<64x64xf32, #tpu.memory_space<vmem>>, vector<64x64xf32>
    %c0_1 = arith.constant 0 : index
    %c0_2 = arith.constant 0 : index
    %1 = vector.load %arg2[%c0_1, %c0_2] : memref<128x256xf32, #tpu.memory_space<vmem>>, vector<64x256xf32>
    %cst = arith.constant dense<0.000000e+00> : vector<64x256xf32>
    %2 = tpu.matmul %0, %1, %cst {dimension_numbers = #tpu.dot_dimension_numbers<[1], [0], [0], [1], [0, 0, 1, 1], [], []>} : vector<64x64xf32>, vector<64x256xf32>, vector<64x256xf32> -> vector<64x256xf32>
    %c0_3 = arith.constant 0 : index
    %c0_4 = arith.constant 0 : index
    %3 = vector.load %arg3[%c0_3, %c0_4] : memref<1x256xf32, #tpu.memory_space<vmem>>, vector<1x256xf32>
    %4 = vector.broadcast %3 : vector<1x256xf32> to vector<64x256xf32>
    %5 = arith.addf %2, %4 : vector<64x256xf32>
    %c64 = arith.constant 64 : index
    %c0_5 = arith.constant 0 : index
    %6 = vector.load %arg2[%c64, %c0_5] : memref<128x256xf32, #tpu.memory_space<vmem>>, vector<64x256xf32>
    %cst_6 = arith.constant 0.000000e+00 : f32
    %7 = vector.broadcast %cst_6 : f32 to vector<8x64xf32>
    %cst_7 = arith.constant 0.000000e+00 : f32
    %8 = vector.broadcast %cst_7 : f32 to vector<8x64xf32>
    %9 = vector.extract_strided_slice %5 {offsets = [0, 0], sizes = [8, 256], strides = [1, 1]} : vector<64x256xf32> to vector<8x256xf32>
    %cst_8 = arith.constant dense<0.000000e+00> : vector<8x256xf32>
    %10 = tpu.matmul %7, %6, %cst_8 {dimension_numbers = #tpu.dot_dimension_numbers<[1], [0], [0], [1], [0, 0, 1, 1], [], []>} : vector<8x64xf32>, vector<64x256xf32>, vector<8x256xf32> -> vector<8x256xf32>
    %11 = arith.addf %9, %10 : vector<8x256xf32>
    %12 = vector.extract_strided_slice %11 {offsets = [0, 0], sizes = [8, 192], strides = [1, 1]} : vector<8x256xf32> to vector<8x192xf32>
    %13 = arith.negf %12 : vector<8x192xf32>
    %14 = math.exp %13 : vector<8x192xf32>
    %cst_9 = arith.constant 1.000000e+00 : f32
    %15 = vector.broadcast %cst_9 : f32 to vector<8x192xf32>
    %16 = arith.addf %15, %14 : vector<8x192xf32>
    %17 = arith.divf %15, %16 : vector<8x192xf32>
    %18 = vector.extract_strided_slice %11 {offsets = [0, 192], sizes = [8, 64], strides = [1, 1]} : vector<8x256xf32> to vector<8x64xf32>
    %19 = math.tanh %18 : vector<8x64xf32>
    %20 = vector.extract_strided_slice %17 {offsets = [0, 0], sizes = [8, 64], strides = [1, 1]} : vector<8x192xf32> to vector<8x64xf32>
    %21 = vector.extract_strided_slice %17 {offsets = [0, 64], sizes = [8, 64], strides = [1, 1]} : vector<8x192xf32> to vector<8x64xf32>
    %22 = vector.extract_strided_slice %17 {offsets = [0, 128], sizes = [8, 64], strides = [1, 1]} : vector<8x192xf32> to vector<8x64xf32>
    %23 = arith.mulf %21, %8 : vector<8x64xf32>
    %24 = arith.mulf %20, %19 : vector<8x64xf32>
    %25 = arith.addf %23, %24 : vector<8x64xf32>
    %26 = math.tanh %25 : vector<8x64xf32>
    %27 = arith.mulf %22, %26 : vector<8x64xf32>
    %c0_10 = arith.constant 0 : index
    %c0_11 = arith.constant 0 : index
    %c0_12 = arith.constant 0 : index
    %28 = vector.load %arg1[%c0_10, %c0_11, %c0_12] : memref<8x8x64xf32, #tpu.memory_space<vmem>>, vector<1x8x64xf32>
    %29 = vector.shape_cast %28 : vector<1x8x64xf32> to vector<8x64xf32>
    %cst_13 = arith.constant 0.000000e+00 : f32
    %30 = vector.broadcast %cst_13 : f32 to vector<8x64xf32>
    %31 = arith.cmpf ogt, %29, %30 : vector<8x64xf32>
    %32 = arith.select %31, %25, %8 : vector<8x64xi1>, vector<8x64xf32>
    %33 = arith.select %31, %27, %7 : vector<8x64xi1>, vector<8x64xf32>
    %34 = vector.extract_strided_slice %5 {offsets = [8, 0], sizes = [8, 256], strides = [1, 1]} : vector<64x256xf32> to vector<8x256xf32>
    %cst_14 = arith.constant dense<0.000000e+00> : vector<8x256xf32>
    %35 = tpu.matmul %33, %6, %cst_14 {dimension_numbers = #tpu.dot_dimension_numbers<[1], [0], [0], [1], [0, 0, 1, 1], [], []>} : vector<8x64xf32>, vector<64x256xf32>, vector<8x256xf32> -> vector<8x256xf32>
    %36 = arith.addf %34, %35 : vector<8x256xf32>
    %37 = vector.extract_strided_slice %36 {offsets = [0, 0], sizes = [8, 192], strides = [1, 1]} : vector<8x256xf32> to vector<8x192xf32>
    %38 = arith.negf %37 : vector<8x192xf32>
    %39 = math.exp %38 : vector<8x192xf32>
    %cst_15 = arith.constant 1.000000e+00 : f32
    %40 = vector.broadcast %cst_15 : f32 to vector<8x192xf32>
    %41 = arith.addf %40, %39 : vector<8x192xf32>
    %42 = arith.divf %40, %41 : vector<8x192xf32>
    %43 = vector.extract_strided_slice %36 {offsets = [0, 192], sizes = [8, 64], strides = [1, 1]} : vector<8x256xf32> to vector<8x64xf32>
    %44 = math.tanh %43 : vector<8x64xf32>
    %45 = vector.extract_strided_slice %42 {offsets = [0, 0], sizes = [8, 64], strides = [1, 1]} : vector<8x192xf32> to vector<8x64xf32>
    %46 = vector.extract_strided_slice %42 {offsets = [0, 64], sizes = [8, 64], strides = [1, 1]} : vector<8x192xf32> to vector<8x64xf32>
    %47 = vector.extract_strided_slice %42 {offsets = [0, 128], sizes = [8, 64], strides = [1, 1]} : vector<8x192xf32> to vector<8x64xf32>
    %48 = arith.mulf %46, %32 : vector<8x64xf32>
    %49 = arith.mulf %45, %44 : vector<8x64xf32>
    %50 = arith.addf %48, %49 : vector<8x64xf32>
    %51 = math.tanh %50 : vector<8x64xf32>
    %52 = arith.mulf %47, %51 : vector<8x64xf32>
    %c1 = arith.constant 1 : index
    %c0_16 = arith.constant 0 : index
    %c0_17 = arith.constant 0 : index
    %53 = vector.load %arg1[%c1, %c0_16, %c0_17] : memref<8x8x64xf32, #tpu.memory_space<vmem>>, vector<1x8x64xf32>
    %54 = vector.shape_cast %53 : vector<1x8x64xf32> to vector<8x64xf32>
    %cst_18 = arith.constant 0.000000e+00 : f32
    %55 = vector.broadcast %cst_18 : f32 to vector<8x64xf32>
    %56 = arith.cmpf ogt, %54, %55 : vector<8x64xf32>
    %57 = arith.select %56, %50, %32 : vector<8x64xi1>, vector<8x64xf32>
    %58 = arith.select %56, %52, %33 : vector<8x64xi1>, vector<8x64xf32>
    %59 = vector.extract_strided_slice %5 {offsets = [16, 0], sizes = [8, 256], strides = [1, 1]} : vector<64x256xf32> to vector<8x256xf32>
    %cst_19 = arith.constant dense<0.000000e+00> : vector<8x256xf32>
    %60 = tpu.matmul %58, %6, %cst_19 {dimension_numbers = #tpu.dot_dimension_numbers<[1], [0], [0], [1], [0, 0, 1, 1], [], []>} : vector<8x64xf32>, vector<64x256xf32>, vector<8x256xf32> -> vector<8x256xf32>
    %61 = arith.addf %59, %60 : vector<8x256xf32>
    %62 = vector.extract_strided_slice %61 {offsets = [0, 0], sizes = [8, 192], strides = [1, 1]} : vector<8x256xf32> to vector<8x192xf32>
    %63 = arith.negf %62 : vector<8x192xf32>
    %64 = math.exp %63 : vector<8x192xf32>
    %cst_20 = arith.constant 1.000000e+00 : f32
    %65 = vector.broadcast %cst_20 : f32 to vector<8x192xf32>
    %66 = arith.addf %65, %64 : vector<8x192xf32>
    %67 = arith.divf %65, %66 : vector<8x192xf32>
    %68 = vector.extract_strided_slice %61 {offsets = [0, 192], sizes = [8, 64], strides = [1, 1]} : vector<8x256xf32> to vector<8x64xf32>
    %69 = math.tanh %68 : vector<8x64xf32>
    %70 = vector.extract_strided_slice %67 {offsets = [0, 0], sizes = [8, 64], strides = [1, 1]} : vector<8x192xf32> to vector<8x64xf32>
    %71 = vector.extract_strided_slice %67 {offsets = [0, 64], sizes = [8, 64], strides = [1, 1]} : vector<8x192xf32> to vector<8x64xf32>
    %72 = vector.extract_strided_slice %67 {offsets = [0, 128], sizes = [8, 64], strides = [1, 1]} : vector<8x192xf32> to vector<8x64xf32>
    %73 = arith.mulf %71, %57 : vector<8x64xf32>
    %74 = arith.mulf %70, %69 : vector<8x64xf32>
    %75 = arith.addf %73, %74 : vector<8x64xf32>
    %76 = math.tanh %75 : vector<8x64xf32>
    %77 = arith.mulf %72, %76 : vector<8x64xf32>
    %c2 = arith.constant 2 : index
    %c0_21 = arith.constant 0 : index
    %c0_22 = arith.constant 0 : index
    %78 = vector.load %arg1[%c2, %c0_21, %c0_22] : memref<8x8x64xf32, #tpu.memory_space<vmem>>, vector<1x8x64xf32>
    %79 = vector.shape_cast %78 : vector<1x8x64xf32> to vector<8x64xf32>
    %cst_23 = arith.constant 0.000000e+00 : f32
    %80 = vector.broadcast %cst_23 : f32 to vector<8x64xf32>
    %81 = arith.cmpf ogt, %79, %80 : vector<8x64xf32>
    %82 = arith.select %81, %75, %57 : vector<8x64xi1>, vector<8x64xf32>
    %83 = arith.select %81, %77, %58 : vector<8x64xi1>, vector<8x64xf32>
    %84 = vector.extract_strided_slice %5 {offsets = [24, 0], sizes = [8, 256], strides = [1, 1]} : vector<64x256xf32> to vector<8x256xf32>
    %cst_24 = arith.constant dense<0.000000e+00> : vector<8x256xf32>
    %85 = tpu.matmul %83, %6, %cst_24 {dimension_numbers = #tpu.dot_dimension_numbers<[1], [0], [0], [1], [0, 0, 1, 1], [], []>} : vector<8x64xf32>, vector<64x256xf32>, vector<8x256xf32> -> vector<8x256xf32>
    %86 = arith.addf %84, %85 : vector<8x256xf32>
    %87 = vector.extract_strided_slice %86 {offsets = [0, 0], sizes = [8, 192], strides = [1, 1]} : vector<8x256xf32> to vector<8x192xf32>
    %88 = arith.negf %87 : vector<8x192xf32>
    %89 = math.exp %88 : vector<8x192xf32>
    %cst_25 = arith.constant 1.000000e+00 : f32
    %90 = vector.broadcast %cst_25 : f32 to vector<8x192xf32>
    %91 = arith.addf %90, %89 : vector<8x192xf32>
    %92 = arith.divf %90, %91 : vector<8x192xf32>
    %93 = vector.extract_strided_slice %86 {offsets = [0, 192], sizes = [8, 64], strides = [1, 1]} : vector<8x256xf32> to vector<8x64xf32>
    %94 = math.tanh %93 : vector<8x64xf32>
    %95 = vector.extract_strided_slice %92 {offsets = [0, 0], sizes = [8, 64], strides = [1, 1]} : vector<8x192xf32> to vector<8x64xf32>
    %96 = vector.extract_strided_slice %92 {offsets = [0, 64], sizes = [8, 64], strides = [1, 1]} : vector<8x192xf32> to vector<8x64xf32>
    %97 = vector.extract_strided_slice %92 {offsets = [0, 128], sizes = [8, 64], strides = [1, 1]} : vector<8x192xf32> to vector<8x64xf32>
    %98 = arith.mulf %96, %82 : vector<8x64xf32>
    %99 = arith.mulf %95, %94 : vector<8x64xf32>
    %100 = arith.addf %98, %99 : vector<8x64xf32>
    %101 = math.tanh %100 : vector<8x64xf32>
    %102 = arith.mulf %97, %101 : vector<8x64xf32>
    %c3 = arith.constant 3 : index
    %c0_26 = arith.constant 0 : index
    %c0_27 = arith.constant 0 : index
    %103 = vector.load %arg1[%c3, %c0_26, %c0_27] : memref<8x8x64xf32, #tpu.memory_space<vmem>>, vector<1x8x64xf32>
    %104 = vector.shape_cast %103 : vector<1x8x64xf32> to vector<8x64xf32>
    %cst_28 = arith.constant 0.000000e+00 : f32
    %105 = vector.broadcast %cst_28 : f32 to vector<8x64xf32>
    %106 = arith.cmpf ogt, %104, %105 : vector<8x64xf32>
    %107 = arith.select %106, %100, %82 : vector<8x64xi1>, vector<8x64xf32>
    %108 = arith.select %106, %102, %83 : vector<8x64xi1>, vector<8x64xf32>
    %109 = vector.extract_strided_slice %5 {offsets = [32, 0], sizes = [8, 256], strides = [1, 1]} : vector<64x256xf32> to vector<8x256xf32>
    %cst_29 = arith.constant dense<0.000000e+00> : vector<8x256xf32>
    %110 = tpu.matmul %108, %6, %cst_29 {dimension_numbers = #tpu.dot_dimension_numbers<[1], [0], [0], [1], [0, 0, 1, 1], [], []>} : vector<8x64xf32>, vector<64x256xf32>, vector<8x256xf32> -> vector<8x256xf32>
    %111 = arith.addf %109, %110 : vector<8x256xf32>
    %112 = vector.extract_strided_slice %111 {offsets = [0, 0], sizes = [8, 192], strides = [1, 1]} : vector<8x256xf32> to vector<8x192xf32>
    %113 = arith.negf %112 : vector<8x192xf32>
    %114 = math.exp %113 : vector<8x192xf32>
    %cst_30 = arith.constant 1.000000e+00 : f32
    %115 = vector.broadcast %cst_30 : f32 to vector<8x192xf32>
    %116 = arith.addf %115, %114 : vector<8x192xf32>
    %117 = arith.divf %115, %116 : vector<8x192xf32>
    %118 = vector.extract_strided_slice %111 {offsets = [0, 192], sizes = [8, 64], strides = [1, 1]} : vector<8x256xf32> to vector<8x64xf32>
    %119 = math.tanh %118 : vector<8x64xf32>
    %120 = vector.extract_strided_slice %117 {offsets = [0, 0], sizes = [8, 64], strides = [1, 1]} : vector<8x192xf32> to vector<8x64xf32>
    %121 = vector.extract_strided_slice %117 {offsets = [0, 64], sizes = [8, 64], strides = [1, 1]} : vector<8x192xf32> to vector<8x64xf32>
    %122 = vector.extract_strided_slice %117 {offsets = [0, 128], sizes = [8, 64], strides = [1, 1]} : vector<8x192xf32> to vector<8x64xf32>
    %123 = arith.mulf %121, %107 : vector<8x64xf32>
    %124 = arith.mulf %120, %119 : vector<8x64xf32>
    %125 = arith.addf %123, %124 : vector<8x64xf32>
    %126 = math.tanh %125 : vector<8x64xf32>
    %127 = arith.mulf %122, %126 : vector<8x64xf32>
    %c4 = arith.constant 4 : index
    %c0_31 = arith.constant 0 : index
    %c0_32 = arith.constant 0 : index
    %128 = vector.load %arg1[%c4, %c0_31, %c0_32] : memref<8x8x64xf32, #tpu.memory_space<vmem>>, vector<1x8x64xf32>
    %129 = vector.shape_cast %128 : vector<1x8x64xf32> to vector<8x64xf32>
    %cst_33 = arith.constant 0.000000e+00 : f32
    %130 = vector.broadcast %cst_33 : f32 to vector<8x64xf32>
    %131 = arith.cmpf ogt, %129, %130 : vector<8x64xf32>
    %132 = arith.select %131, %125, %107 : vector<8x64xi1>, vector<8x64xf32>
    %133 = arith.select %131, %127, %108 : vector<8x64xi1>, vector<8x64xf32>
    %134 = vector.extract_strided_slice %5 {offsets = [40, 0], sizes = [8, 256], strides = [1, 1]} : vector<64x256xf32> to vector<8x256xf32>
    %cst_34 = arith.constant dense<0.000000e+00> : vector<8x256xf32>
    %135 = tpu.matmul %133, %6, %cst_34 {dimension_numbers = #tpu.dot_dimension_numbers<[1], [0], [0], [1], [0, 0, 1, 1], [], []>} : vector<8x64xf32>, vector<64x256xf32>, vector<8x256xf32> -> vector<8x256xf32>
    %136 = arith.addf %134, %135 : vector<8x256xf32>
    %137 = vector.extract_strided_slice %136 {offsets = [0, 0], sizes = [8, 192], strides = [1, 1]} : vector<8x256xf32> to vector<8x192xf32>
    %138 = arith.negf %137 : vector<8x192xf32>
    %139 = math.exp %138 : vector<8x192xf32>
    %cst_35 = arith.constant 1.000000e+00 : f32
    %140 = vector.broadcast %cst_35 : f32 to vector<8x192xf32>
    %141 = arith.addf %140, %139 : vector<8x192xf32>
    %142 = arith.divf %140, %141 : vector<8x192xf32>
    %143 = vector.extract_strided_slice %136 {offsets = [0, 192], sizes = [8, 64], strides = [1, 1]} : vector<8x256xf32> to vector<8x64xf32>
    %144 = math.tanh %143 : vector<8x64xf32>
    %145 = vector.extract_strided_slice %142 {offsets = [0, 0], sizes = [8, 64], strides = [1, 1]} : vector<8x192xf32> to vector<8x64xf32>
    %146 = vector.extract_strided_slice %142 {offsets = [0, 64], sizes = [8, 64], strides = [1, 1]} : vector<8x192xf32> to vector<8x64xf32>
    %147 = vector.extract_strided_slice %142 {offsets = [0, 128], sizes = [8, 64], strides = [1, 1]} : vector<8x192xf32> to vector<8x64xf32>
    %148 = arith.mulf %146, %132 : vector<8x64xf32>
    %149 = arith.mulf %145, %144 : vector<8x64xf32>
    %150 = arith.addf %148, %149 : vector<8x64xf32>
    %151 = math.tanh %150 : vector<8x64xf32>
    %152 = arith.mulf %147, %151 : vector<8x64xf32>
    %c5 = arith.constant 5 : index
    %c0_36 = arith.constant 0 : index
    %c0_37 = arith.constant 0 : index
    %153 = vector.load %arg1[%c5, %c0_36, %c0_37] : memref<8x8x64xf32, #tpu.memory_space<vmem>>, vector<1x8x64xf32>
    %154 = vector.shape_cast %153 : vector<1x8x64xf32> to vector<8x64xf32>
    %cst_38 = arith.constant 0.000000e+00 : f32
    %155 = vector.broadcast %cst_38 : f32 to vector<8x64xf32>
    %156 = arith.cmpf ogt, %154, %155 : vector<8x64xf32>
    %157 = arith.select %156, %150, %132 : vector<8x64xi1>, vector<8x64xf32>
    %158 = arith.select %156, %152, %133 : vector<8x64xi1>, vector<8x64xf32>
    %159 = vector.extract_strided_slice %5 {offsets = [48, 0], sizes = [8, 256], strides = [1, 1]} : vector<64x256xf32> to vector<8x256xf32>
    %cst_39 = arith.constant dense<0.000000e+00> : vector<8x256xf32>
    %160 = tpu.matmul %158, %6, %cst_39 {dimension_numbers = #tpu.dot_dimension_numbers<[1], [0], [0], [1], [0, 0, 1, 1], [], []>} : vector<8x64xf32>, vector<64x256xf32>, vector<8x256xf32> -> vector<8x256xf32>
    %161 = arith.addf %159, %160 : vector<8x256xf32>
    %162 = vector.extract_strided_slice %161 {offsets = [0, 0], sizes = [8, 192], strides = [1, 1]} : vector<8x256xf32> to vector<8x192xf32>
    %163 = arith.negf %162 : vector<8x192xf32>
    %164 = math.exp %163 : vector<8x192xf32>
    %cst_40 = arith.constant 1.000000e+00 : f32
    %165 = vector.broadcast %cst_40 : f32 to vector<8x192xf32>
    %166 = arith.addf %165, %164 : vector<8x192xf32>
    %167 = arith.divf %165, %166 : vector<8x192xf32>
    %168 = vector.extract_strided_slice %161 {offsets = [0, 192], sizes = [8, 64], strides = [1, 1]} : vector<8x256xf32> to vector<8x64xf32>
    %169 = math.tanh %168 : vector<8x64xf32>
    %170 = vector.extract_strided_slice %167 {offsets = [0, 0], sizes = [8, 64], strides = [1, 1]} : vector<8x192xf32> to vector<8x64xf32>
    %171 = vector.extract_strided_slice %167 {offsets = [0, 64], sizes = [8, 64], strides = [1, 1]} : vector<8x192xf32> to vector<8x64xf32>
    %172 = vector.extract_strided_slice %167 {offsets = [0, 128], sizes = [8, 64], strides = [1, 1]} : vector<8x192xf32> to vector<8x64xf32>
    %173 = arith.mulf %171, %157 : vector<8x64xf32>
    %174 = arith.mulf %170, %169 : vector<8x64xf32>
    %175 = arith.addf %173, %174 : vector<8x64xf32>
    %176 = math.tanh %175 : vector<8x64xf32>
    %177 = arith.mulf %172, %176 : vector<8x64xf32>
    %c6 = arith.constant 6 : index
    %c0_41 = arith.constant 0 : index
    %c0_42 = arith.constant 0 : index
    %178 = vector.load %arg1[%c6, %c0_41, %c0_42] : memref<8x8x64xf32, #tpu.memory_space<vmem>>, vector<1x8x64xf32>
    %179 = vector.shape_cast %178 : vector<1x8x64xf32> to vector<8x64xf32>
    %cst_43 = arith.constant 0.000000e+00 : f32
    %180 = vector.broadcast %cst_43 : f32 to vector<8x64xf32>
    %181 = arith.cmpf ogt, %179, %180 : vector<8x64xf32>
    %182 = arith.select %181, %175, %157 : vector<8x64xi1>, vector<8x64xf32>
    %183 = arith.select %181, %177, %158 : vector<8x64xi1>, vector<8x64xf32>
    %184 = vector.extract_strided_slice %5 {offsets = [56, 0], sizes = [8, 256], strides = [1, 1]} : vector<64x256xf32> to vector<8x256xf32>
    %cst_44 = arith.constant dense<0.000000e+00> : vector<8x256xf32>
    %185 = tpu.matmul %183, %6, %cst_44 {dimension_numbers = #tpu.dot_dimension_numbers<[1], [0], [0], [1], [0, 0, 1, 1], [], []>} : vector<8x64xf32>, vector<64x256xf32>, vector<8x256xf32> -> vector<8x256xf32>
    %186 = arith.addf %184, %185 : vector<8x256xf32>
    %187 = vector.extract_strided_slice %186 {offsets = [0, 0], sizes = [8, 192], strides = [1, 1]} : vector<8x256xf32> to vector<8x192xf32>
    %188 = arith.negf %187 : vector<8x192xf32>
    %189 = math.exp %188 : vector<8x192xf32>
    %cst_45 = arith.constant 1.000000e+00 : f32
    %190 = vector.broadcast %cst_45 : f32 to vector<8x192xf32>
    %191 = arith.addf %190, %189 : vector<8x192xf32>
    %192 = arith.divf %190, %191 : vector<8x192xf32>
    %193 = vector.extract_strided_slice %186 {offsets = [0, 192], sizes = [8, 64], strides = [1, 1]} : vector<8x256xf32> to vector<8x64xf32>
    %194 = math.tanh %193 : vector<8x64xf32>
    %195 = vector.extract_strided_slice %192 {offsets = [0, 0], sizes = [8, 64], strides = [1, 1]} : vector<8x192xf32> to vector<8x64xf32>
    %196 = vector.extract_strided_slice %192 {offsets = [0, 64], sizes = [8, 64], strides = [1, 1]} : vector<8x192xf32> to vector<8x64xf32>
    %197 = vector.extract_strided_slice %192 {offsets = [0, 128], sizes = [8, 64], strides = [1, 1]} : vector<8x192xf32> to vector<8x64xf32>
    %198 = arith.mulf %196, %182 : vector<8x64xf32>
    %199 = arith.mulf %195, %194 : vector<8x64xf32>
    %200 = arith.addf %198, %199 : vector<8x64xf32>
    %201 = math.tanh %200 : vector<8x64xf32>
    %202 = arith.mulf %197, %201 : vector<8x64xf32>
    %c7 = arith.constant 7 : index
    %c0_46 = arith.constant 0 : index
    %c0_47 = arith.constant 0 : index
    %203 = vector.load %arg1[%c7, %c0_46, %c0_47] : memref<8x8x64xf32, #tpu.memory_space<vmem>>, vector<1x8x64xf32>
    %204 = vector.shape_cast %203 : vector<1x8x64xf32> to vector<8x64xf32>
    %cst_48 = arith.constant 0.000000e+00 : f32
    %205 = vector.broadcast %cst_48 : f32 to vector<8x64xf32>
    %206 = arith.cmpf ogt, %204, %205 : vector<8x64xf32>
    %207 = arith.select %206, %202, %183 : vector<8x64xi1>, vector<8x64xf32>
    %208 = tpu.concatenate %33, %58, %83, %108, %133, %158, %183, %207 in 0 : vector<8x64xf32>, vector<8x64xf32>, vector<8x64xf32>, vector<8x64xf32>, vector<8x64xf32>, vector<8x64xf32>, vector<8x64xf32>, vector<8x64xf32> -> vector<64x64xf32>
    %c0_49 = arith.constant 0 : index
    %c0_50 = arith.constant 0 : index
    %209 = vector.load %arg4[%c0_49, %c0_50] : memref<192x256xf32, #tpu.memory_space<vmem>>, vector<64x256xf32>
    %cst_51 = arith.constant dense<0.000000e+00> : vector<64x256xf32>
    %210 = tpu.matmul %208, %209, %cst_51 {dimension_numbers = #tpu.dot_dimension_numbers<[1], [0], [0], [1], [0, 0, 1, 1], [], []>} : vector<64x64xf32>, vector<64x256xf32>, vector<64x256xf32> -> vector<64x256xf32>
    %c0_52 = arith.constant 0 : index
    %c0_53 = arith.constant 0 : index
    %211 = vector.load %arg5[%c0_52, %c0_53] : memref<1x256xf32, #tpu.memory_space<vmem>>, vector<1x256xf32>
    %212 = vector.broadcast %211 : vector<1x256xf32> to vector<64x256xf32>
    %213 = arith.addf %210, %212 : vector<64x256xf32>
    %c64_54 = arith.constant 64 : index
    %c0_55 = arith.constant 0 : index
    %214 = vector.load %arg4[%c64_54, %c0_55] : memref<192x256xf32, #tpu.memory_space<vmem>>, vector<64x256xf32>
    %cst_56 = arith.constant dense<0.000000e+00> : vector<64x256xf32>
    %215 = tpu.matmul %208, %214, %cst_56 {dimension_numbers = #tpu.dot_dimension_numbers<[1], [0], [0], [1], [0, 0, 1, 1], [], []>} : vector<64x64xf32>, vector<64x256xf32>, vector<64x256xf32> -> vector<64x256xf32>
    %c128 = arith.constant 128 : index
    %c0_57 = arith.constant 0 : index
    %216 = vector.load %arg4[%c128, %c0_57] : memref<192x256xf32, #tpu.memory_space<vmem>>, vector<64x256xf32>
    %cst_58 = arith.constant 0.000000e+00 : f32
    %217 = vector.broadcast %cst_58 : f32 to vector<8x64xf32>
    %cst_59 = arith.constant 0.000000e+00 : f32
    %218 = vector.broadcast %cst_59 : f32 to vector<8x64xf32>
    %219 = vector.extract_strided_slice %213 {offsets = [0, 0], sizes = [8, 256], strides = [1, 1]} : vector<64x256xf32> to vector<8x256xf32>
    %220 = vector.extract_strided_slice %215 {offsets = [56, 0], sizes = [8, 256], strides = [1, 1]} : vector<64x256xf32> to vector<8x256xf32>
    %221 = arith.addf %219, %220 : vector<8x256xf32>
    %cst_60 = arith.constant dense<0.000000e+00> : vector<8x256xf32>
    %222 = tpu.matmul %217, %216, %cst_60 {dimension_numbers = #tpu.dot_dimension_numbers<[1], [0], [0], [1], [0, 0, 1, 1], [], []>} : vector<8x64xf32>, vector<64x256xf32>, vector<8x256xf32> -> vector<8x256xf32>
    %223 = arith.addf %221, %222 : vector<8x256xf32>
    %224 = vector.extract_strided_slice %223 {offsets = [0, 0], sizes = [8, 192], strides = [1, 1]} : vector<8x256xf32> to vector<8x192xf32>
    %225 = arith.negf %224 : vector<8x192xf32>
    %226 = math.exp %225 : vector<8x192xf32>
    %cst_61 = arith.constant 1.000000e+00 : f32
    %227 = vector.broadcast %cst_61 : f32 to vector<8x192xf32>
    %228 = arith.addf %227, %226 : vector<8x192xf32>
    %229 = arith.divf %227, %228 : vector<8x192xf32>
    %230 = vector.extract_strided_slice %223 {offsets = [0, 192], sizes = [8, 64], strides = [1, 1]} : vector<8x256xf32> to vector<8x64xf32>
    %231 = math.tanh %230 : vector<8x64xf32>
    %232 = vector.extract_strided_slice %229 {offsets = [0, 0], sizes = [8, 64], strides = [1, 1]} : vector<8x192xf32> to vector<8x64xf32>
    %233 = vector.extract_strided_slice %229 {offsets = [0, 64], sizes = [8, 64], strides = [1, 1]} : vector<8x192xf32> to vector<8x64xf32>
    %234 = vector.extract_strided_slice %229 {offsets = [0, 128], sizes = [8, 64], strides = [1, 1]} : vector<8x192xf32> to vector<8x64xf32>
    %235 = arith.mulf %233, %218 : vector<8x64xf32>
    %236 = arith.mulf %232, %231 : vector<8x64xf32>
    %237 = arith.addf %235, %236 : vector<8x64xf32>
    %238 = math.tanh %237 : vector<8x64xf32>
    %239 = arith.mulf %234, %238 : vector<8x64xf32>
    %c0_62 = arith.constant 0 : index
    %c0_63 = arith.constant 0 : index
    %c0_64 = arith.constant 0 : index
    %240 = vector.load %arg1[%c0_62, %c0_63, %c0_64] : memref<8x8x64xf32, #tpu.memory_space<vmem>>, vector<1x8x64xf32>
    %241 = vector.shape_cast %240 : vector<1x8x64xf32> to vector<8x64xf32>
    %cst_65 = arith.constant 0.000000e+00 : f32
    %242 = vector.broadcast %cst_65 : f32 to vector<8x64xf32>
    %243 = arith.cmpf ogt, %241, %242 : vector<8x64xf32>
    %244 = arith.select %243, %237, %218 : vector<8x64xi1>, vector<8x64xf32>
    %245 = arith.select %243, %239, %217 : vector<8x64xi1>, vector<8x64xf32>
    %246 = vector.extract_strided_slice %213 {offsets = [8, 0], sizes = [8, 256], strides = [1, 1]} : vector<64x256xf32> to vector<8x256xf32>
    %247 = vector.extract_strided_slice %215 {offsets = [48, 0], sizes = [8, 256], strides = [1, 1]} : vector<64x256xf32> to vector<8x256xf32>
    %248 = arith.addf %246, %247 : vector<8x256xf32>
    %cst_66 = arith.constant dense<0.000000e+00> : vector<8x256xf32>
    %249 = tpu.matmul %245, %216, %cst_66 {dimension_numbers = #tpu.dot_dimension_numbers<[1], [0], [0], [1], [0, 0, 1, 1], [], []>} : vector<8x64xf32>, vector<64x256xf32>, vector<8x256xf32> -> vector<8x256xf32>
    %250 = arith.addf %248, %249 : vector<8x256xf32>
    %251 = vector.extract_strided_slice %250 {offsets = [0, 0], sizes = [8, 192], strides = [1, 1]} : vector<8x256xf32> to vector<8x192xf32>
    %252 = arith.negf %251 : vector<8x192xf32>
    %253 = math.exp %252 : vector<8x192xf32>
    %cst_67 = arith.constant 1.000000e+00 : f32
    %254 = vector.broadcast %cst_67 : f32 to vector<8x192xf32>
    %255 = arith.addf %254, %253 : vector<8x192xf32>
    %256 = arith.divf %254, %255 : vector<8x192xf32>
    %257 = vector.extract_strided_slice %250 {offsets = [0, 192], sizes = [8, 64], strides = [1, 1]} : vector<8x256xf32> to vector<8x64xf32>
    %258 = math.tanh %257 : vector<8x64xf32>
    %259 = vector.extract_strided_slice %256 {offsets = [0, 0], sizes = [8, 64], strides = [1, 1]} : vector<8x192xf32> to vector<8x64xf32>
    %260 = vector.extract_strided_slice %256 {offsets = [0, 64], sizes = [8, 64], strides = [1, 1]} : vector<8x192xf32> to vector<8x64xf32>
    %261 = vector.extract_strided_slice %256 {offsets = [0, 128], sizes = [8, 64], strides = [1, 1]} : vector<8x192xf32> to vector<8x64xf32>
    %262 = arith.mulf %260, %244 : vector<8x64xf32>
    %263 = arith.mulf %259, %258 : vector<8x64xf32>
    %264 = arith.addf %262, %263 : vector<8x64xf32>
    %265 = math.tanh %264 : vector<8x64xf32>
    %266 = arith.mulf %261, %265 : vector<8x64xf32>
    %c1_68 = arith.constant 1 : index
    %c0_69 = arith.constant 0 : index
    %c0_70 = arith.constant 0 : index
    %267 = vector.load %arg1[%c1_68, %c0_69, %c0_70] : memref<8x8x64xf32, #tpu.memory_space<vmem>>, vector<1x8x64xf32>
    %268 = vector.shape_cast %267 : vector<1x8x64xf32> to vector<8x64xf32>
    %cst_71 = arith.constant 0.000000e+00 : f32
    %269 = vector.broadcast %cst_71 : f32 to vector<8x64xf32>
    %270 = arith.cmpf ogt, %268, %269 : vector<8x64xf32>
    %271 = arith.select %270, %264, %244 : vector<8x64xi1>, vector<8x64xf32>
    %272 = arith.select %270, %266, %245 : vector<8x64xi1>, vector<8x64xf32>
    %273 = vector.extract_strided_slice %213 {offsets = [16, 0], sizes = [8, 256], strides = [1, 1]} : vector<64x256xf32> to vector<8x256xf32>
    %274 = vector.extract_strided_slice %215 {offsets = [40, 0], sizes = [8, 256], strides = [1, 1]} : vector<64x256xf32> to vector<8x256xf32>
    %275 = arith.addf %273, %274 : vector<8x256xf32>
    %cst_72 = arith.constant dense<0.000000e+00> : vector<8x256xf32>
    %276 = tpu.matmul %272, %216, %cst_72 {dimension_numbers = #tpu.dot_dimension_numbers<[1], [0], [0], [1], [0, 0, 1, 1], [], []>} : vector<8x64xf32>, vector<64x256xf32>, vector<8x256xf32> -> vector<8x256xf32>
    %277 = arith.addf %275, %276 : vector<8x256xf32>
    %278 = vector.extract_strided_slice %277 {offsets = [0, 0], sizes = [8, 192], strides = [1, 1]} : vector<8x256xf32> to vector<8x192xf32>
    %279 = arith.negf %278 : vector<8x192xf32>
    %280 = math.exp %279 : vector<8x192xf32>
    %cst_73 = arith.constant 1.000000e+00 : f32
    %281 = vector.broadcast %cst_73 : f32 to vector<8x192xf32>
    %282 = arith.addf %281, %280 : vector<8x192xf32>
    %283 = arith.divf %281, %282 : vector<8x192xf32>
    %284 = vector.extract_strided_slice %277 {offsets = [0, 192], sizes = [8, 64], strides = [1, 1]} : vector<8x256xf32> to vector<8x64xf32>
    %285 = math.tanh %284 : vector<8x64xf32>
    %286 = vector.extract_strided_slice %283 {offsets = [0, 0], sizes = [8, 64], strides = [1, 1]} : vector<8x192xf32> to vector<8x64xf32>
    %287 = vector.extract_strided_slice %283 {offsets = [0, 64], sizes = [8, 64], strides = [1, 1]} : vector<8x192xf32> to vector<8x64xf32>
    %288 = vector.extract_strided_slice %283 {offsets = [0, 128], sizes = [8, 64], strides = [1, 1]} : vector<8x192xf32> to vector<8x64xf32>
    %289 = arith.mulf %287, %271 : vector<8x64xf32>
    %290 = arith.mulf %286, %285 : vector<8x64xf32>
    %291 = arith.addf %289, %290 : vector<8x64xf32>
    %292 = math.tanh %291 : vector<8x64xf32>
    %293 = arith.mulf %288, %292 : vector<8x64xf32>
    %c2_74 = arith.constant 2 : index
    %c0_75 = arith.constant 0 : index
    %c0_76 = arith.constant 0 : index
    %294 = vector.load %arg1[%c2_74, %c0_75, %c0_76] : memref<8x8x64xf32, #tpu.memory_space<vmem>>, vector<1x8x64xf32>
    %295 = vector.shape_cast %294 : vector<1x8x64xf32> to vector<8x64xf32>
    %cst_77 = arith.constant 0.000000e+00 : f32
    %296 = vector.broadcast %cst_77 : f32 to vector<8x64xf32>
    %297 = arith.cmpf ogt, %295, %296 : vector<8x64xf32>
    %298 = arith.select %297, %291, %271 : vector<8x64xi1>, vector<8x64xf32>
    %299 = arith.select %297, %293, %272 : vector<8x64xi1>, vector<8x64xf32>
    %300 = vector.extract_strided_slice %213 {offsets = [24, 0], sizes = [8, 256], strides = [1, 1]} : vector<64x256xf32> to vector<8x256xf32>
    %301 = vector.extract_strided_slice %215 {offsets = [32, 0], sizes = [8, 256], strides = [1, 1]} : vector<64x256xf32> to vector<8x256xf32>
    %302 = arith.addf %300, %301 : vector<8x256xf32>
    %cst_78 = arith.constant dense<0.000000e+00> : vector<8x256xf32>
    %303 = tpu.matmul %299, %216, %cst_78 {dimension_numbers = #tpu.dot_dimension_numbers<[1], [0], [0], [1], [0, 0, 1, 1], [], []>} : vector<8x64xf32>, vector<64x256xf32>, vector<8x256xf32> -> vector<8x256xf32>
    %304 = arith.addf %302, %303 : vector<8x256xf32>
    %305 = vector.extract_strided_slice %304 {offsets = [0, 0], sizes = [8, 192], strides = [1, 1]} : vector<8x256xf32> to vector<8x192xf32>
    %306 = arith.negf %305 : vector<8x192xf32>
    %307 = math.exp %306 : vector<8x192xf32>
    %cst_79 = arith.constant 1.000000e+00 : f32
    %308 = vector.broadcast %cst_79 : f32 to vector<8x192xf32>
    %309 = arith.addf %308, %307 : vector<8x192xf32>
    %310 = arith.divf %308, %309 : vector<8x192xf32>
    %311 = vector.extract_strided_slice %304 {offsets = [0, 192], sizes = [8, 64], strides = [1, 1]} : vector<8x256xf32> to vector<8x64xf32>
    %312 = math.tanh %311 : vector<8x64xf32>
    %313 = vector.extract_strided_slice %310 {offsets = [0, 0], sizes = [8, 64], strides = [1, 1]} : vector<8x192xf32> to vector<8x64xf32>
    %314 = vector.extract_strided_slice %310 {offsets = [0, 64], sizes = [8, 64], strides = [1, 1]} : vector<8x192xf32> to vector<8x64xf32>
    %315 = vector.extract_strided_slice %310 {offsets = [0, 128], sizes = [8, 64], strides = [1, 1]} : vector<8x192xf32> to vector<8x64xf32>
    %316 = arith.mulf %314, %298 : vector<8x64xf32>
    %317 = arith.mulf %313, %312 : vector<8x64xf32>
    %318 = arith.addf %316, %317 : vector<8x64xf32>
    %319 = math.tanh %318 : vector<8x64xf32>
    %320 = arith.mulf %315, %319 : vector<8x64xf32>
    %c3_80 = arith.constant 3 : index
    %c0_81 = arith.constant 0 : index
    %c0_82 = arith.constant 0 : index
    %321 = vector.load %arg1[%c3_80, %c0_81, %c0_82] : memref<8x8x64xf32, #tpu.memory_space<vmem>>, vector<1x8x64xf32>
    %322 = vector.shape_cast %321 : vector<1x8x64xf32> to vector<8x64xf32>
    %cst_83 = arith.constant 0.000000e+00 : f32
    %323 = vector.broadcast %cst_83 : f32 to vector<8x64xf32>
    %324 = arith.cmpf ogt, %322, %323 : vector<8x64xf32>
    %325 = arith.select %324, %318, %298 : vector<8x64xi1>, vector<8x64xf32>
    %326 = arith.select %324, %320, %299 : vector<8x64xi1>, vector<8x64xf32>
    %327 = vector.extract_strided_slice %213 {offsets = [32, 0], sizes = [8, 256], strides = [1, 1]} : vector<64x256xf32> to vector<8x256xf32>
    %328 = vector.extract_strided_slice %215 {offsets = [24, 0], sizes = [8, 256], strides = [1, 1]} : vector<64x256xf32> to vector<8x256xf32>
    %329 = arith.addf %327, %328 : vector<8x256xf32>
    %cst_84 = arith.constant dense<0.000000e+00> : vector<8x256xf32>
    %330 = tpu.matmul %326, %216, %cst_84 {dimension_numbers = #tpu.dot_dimension_numbers<[1], [0], [0], [1], [0, 0, 1, 1], [], []>} : vector<8x64xf32>, vector<64x256xf32>, vector<8x256xf32> -> vector<8x256xf32>
    %331 = arith.addf %329, %330 : vector<8x256xf32>
    %332 = vector.extract_strided_slice %331 {offsets = [0, 0], sizes = [8, 192], strides = [1, 1]} : vector<8x256xf32> to vector<8x192xf32>
    %333 = arith.negf %332 : vector<8x192xf32>
    %334 = math.exp %333 : vector<8x192xf32>
    %cst_85 = arith.constant 1.000000e+00 : f32
    %335 = vector.broadcast %cst_85 : f32 to vector<8x192xf32>
    %336 = arith.addf %335, %334 : vector<8x192xf32>
    %337 = arith.divf %335, %336 : vector<8x192xf32>
    %338 = vector.extract_strided_slice %331 {offsets = [0, 192], sizes = [8, 64], strides = [1, 1]} : vector<8x256xf32> to vector<8x64xf32>
    %339 = math.tanh %338 : vector<8x64xf32>
    %340 = vector.extract_strided_slice %337 {offsets = [0, 0], sizes = [8, 64], strides = [1, 1]} : vector<8x192xf32> to vector<8x64xf32>
    %341 = vector.extract_strided_slice %337 {offsets = [0, 64], sizes = [8, 64], strides = [1, 1]} : vector<8x192xf32> to vector<8x64xf32>
    %342 = vector.extract_strided_slice %337 {offsets = [0, 128], sizes = [8, 64], strides = [1, 1]} : vector<8x192xf32> to vector<8x64xf32>
    %343 = arith.mulf %341, %325 : vector<8x64xf32>
    %344 = arith.mulf %340, %339 : vector<8x64xf32>
    %345 = arith.addf %343, %344 : vector<8x64xf32>
    %346 = math.tanh %345 : vector<8x64xf32>
    %347 = arith.mulf %342, %346 : vector<8x64xf32>
    %c4_86 = arith.constant 4 : index
    %c0_87 = arith.constant 0 : index
    %c0_88 = arith.constant 0 : index
    %348 = vector.load %arg1[%c4_86, %c0_87, %c0_88] : memref<8x8x64xf32, #tpu.memory_space<vmem>>, vector<1x8x64xf32>
    %349 = vector.shape_cast %348 : vector<1x8x64xf32> to vector<8x64xf32>
    %cst_89 = arith.constant 0.000000e+00 : f32
    %350 = vector.broadcast %cst_89 : f32 to vector<8x64xf32>
    %351 = arith.cmpf ogt, %349, %350 : vector<8x64xf32>
    %352 = arith.select %351, %345, %325 : vector<8x64xi1>, vector<8x64xf32>
    %353 = arith.select %351, %347, %326 : vector<8x64xi1>, vector<8x64xf32>
    %354 = vector.extract_strided_slice %213 {offsets = [40, 0], sizes = [8, 256], strides = [1, 1]} : vector<64x256xf32> to vector<8x256xf32>
    %355 = vector.extract_strided_slice %215 {offsets = [16, 0], sizes = [8, 256], strides = [1, 1]} : vector<64x256xf32> to vector<8x256xf32>
    %356 = arith.addf %354, %355 : vector<8x256xf32>
    %cst_90 = arith.constant dense<0.000000e+00> : vector<8x256xf32>
    %357 = tpu.matmul %353, %216, %cst_90 {dimension_numbers = #tpu.dot_dimension_numbers<[1], [0], [0], [1], [0, 0, 1, 1], [], []>} : vector<8x64xf32>, vector<64x256xf32>, vector<8x256xf32> -> vector<8x256xf32>
    %358 = arith.addf %356, %357 : vector<8x256xf32>
    %359 = vector.extract_strided_slice %358 {offsets = [0, 0], sizes = [8, 192], strides = [1, 1]} : vector<8x256xf32> to vector<8x192xf32>
    %360 = arith.negf %359 : vector<8x192xf32>
    %361 = math.exp %360 : vector<8x192xf32>
    %cst_91 = arith.constant 1.000000e+00 : f32
    %362 = vector.broadcast %cst_91 : f32 to vector<8x192xf32>
    %363 = arith.addf %362, %361 : vector<8x192xf32>
    %364 = arith.divf %362, %363 : vector<8x192xf32>
    %365 = vector.extract_strided_slice %358 {offsets = [0, 192], sizes = [8, 64], strides = [1, 1]} : vector<8x256xf32> to vector<8x64xf32>
    %366 = math.tanh %365 : vector<8x64xf32>
    %367 = vector.extract_strided_slice %364 {offsets = [0, 0], sizes = [8, 64], strides = [1, 1]} : vector<8x192xf32> to vector<8x64xf32>
    %368 = vector.extract_strided_slice %364 {offsets = [0, 64], sizes = [8, 64], strides = [1, 1]} : vector<8x192xf32> to vector<8x64xf32>
    %369 = vector.extract_strided_slice %364 {offsets = [0, 128], sizes = [8, 64], strides = [1, 1]} : vector<8x192xf32> to vector<8x64xf32>
    %370 = arith.mulf %368, %352 : vector<8x64xf32>
    %371 = arith.mulf %367, %366 : vector<8x64xf32>
    %372 = arith.addf %370, %371 : vector<8x64xf32>
    %373 = math.tanh %372 : vector<8x64xf32>
    %374 = arith.mulf %369, %373 : vector<8x64xf32>
    %c5_92 = arith.constant 5 : index
    %c0_93 = arith.constant 0 : index
    %c0_94 = arith.constant 0 : index
    %375 = vector.load %arg1[%c5_92, %c0_93, %c0_94] : memref<8x8x64xf32, #tpu.memory_space<vmem>>, vector<1x8x64xf32>
    %376 = vector.shape_cast %375 : vector<1x8x64xf32> to vector<8x64xf32>
    %cst_95 = arith.constant 0.000000e+00 : f32
    %377 = vector.broadcast %cst_95 : f32 to vector<8x64xf32>
    %378 = arith.cmpf ogt, %376, %377 : vector<8x64xf32>
    %379 = arith.select %378, %372, %352 : vector<8x64xi1>, vector<8x64xf32>
    %380 = arith.select %378, %374, %353 : vector<8x64xi1>, vector<8x64xf32>
    %381 = vector.extract_strided_slice %213 {offsets = [48, 0], sizes = [8, 256], strides = [1, 1]} : vector<64x256xf32> to vector<8x256xf32>
    %382 = vector.extract_strided_slice %215 {offsets = [8, 0], sizes = [8, 256], strides = [1, 1]} : vector<64x256xf32> to vector<8x256xf32>
    %383 = arith.addf %381, %382 : vector<8x256xf32>
    %cst_96 = arith.constant dense<0.000000e+00> : vector<8x256xf32>
    %384 = tpu.matmul %380, %216, %cst_96 {dimension_numbers = #tpu.dot_dimension_numbers<[1], [0], [0], [1], [0, 0, 1, 1], [], []>} : vector<8x64xf32>, vector<64x256xf32>, vector<8x256xf32> -> vector<8x256xf32>
    %385 = arith.addf %383, %384 : vector<8x256xf32>
    %386 = vector.extract_strided_slice %385 {offsets = [0, 0], sizes = [8, 192], strides = [1, 1]} : vector<8x256xf32> to vector<8x192xf32>
    %387 = arith.negf %386 : vector<8x192xf32>
    %388 = math.exp %387 : vector<8x192xf32>
    %cst_97 = arith.constant 1.000000e+00 : f32
    %389 = vector.broadcast %cst_97 : f32 to vector<8x192xf32>
    %390 = arith.addf %389, %388 : vector<8x192xf32>
    %391 = arith.divf %389, %390 : vector<8x192xf32>
    %392 = vector.extract_strided_slice %385 {offsets = [0, 192], sizes = [8, 64], strides = [1, 1]} : vector<8x256xf32> to vector<8x64xf32>
    %393 = math.tanh %392 : vector<8x64xf32>
    %394 = vector.extract_strided_slice %391 {offsets = [0, 0], sizes = [8, 64], strides = [1, 1]} : vector<8x192xf32> to vector<8x64xf32>
    %395 = vector.extract_strided_slice %391 {offsets = [0, 64], sizes = [8, 64], strides = [1, 1]} : vector<8x192xf32> to vector<8x64xf32>
    %396 = vector.extract_strided_slice %391 {offsets = [0, 128], sizes = [8, 64], strides = [1, 1]} : vector<8x192xf32> to vector<8x64xf32>
    %397 = arith.mulf %395, %379 : vector<8x64xf32>
    %398 = arith.mulf %394, %393 : vector<8x64xf32>
    %399 = arith.addf %397, %398 : vector<8x64xf32>
    %400 = math.tanh %399 : vector<8x64xf32>
    %401 = arith.mulf %396, %400 : vector<8x64xf32>
    %c6_98 = arith.constant 6 : index
    %c0_99 = arith.constant 0 : index
    %c0_100 = arith.constant 0 : index
    %402 = vector.load %arg1[%c6_98, %c0_99, %c0_100] : memref<8x8x64xf32, #tpu.memory_space<vmem>>, vector<1x8x64xf32>
    %403 = vector.shape_cast %402 : vector<1x8x64xf32> to vector<8x64xf32>
    %cst_101 = arith.constant 0.000000e+00 : f32
    %404 = vector.broadcast %cst_101 : f32 to vector<8x64xf32>
    %405 = arith.cmpf ogt, %403, %404 : vector<8x64xf32>
    %406 = arith.select %405, %399, %379 : vector<8x64xi1>, vector<8x64xf32>
    %407 = arith.select %405, %401, %380 : vector<8x64xi1>, vector<8x64xf32>
    %408 = vector.extract_strided_slice %213 {offsets = [56, 0], sizes = [8, 256], strides = [1, 1]} : vector<64x256xf32> to vector<8x256xf32>
    %409 = vector.extract_strided_slice %215 {offsets = [0, 0], sizes = [8, 256], strides = [1, 1]} : vector<64x256xf32> to vector<8x256xf32>
    %410 = arith.addf %408, %409 : vector<8x256xf32>
    %cst_102 = arith.constant dense<0.000000e+00> : vector<8x256xf32>
    %411 = tpu.matmul %407, %216, %cst_102 {dimension_numbers = #tpu.dot_dimension_numbers<[1], [0], [0], [1], [0, 0, 1, 1], [], []>} : vector<8x64xf32>, vector<64x256xf32>, vector<8x256xf32> -> vector<8x256xf32>
    %412 = arith.addf %410, %411 : vector<8x256xf32>
    %413 = vector.extract_strided_slice %412 {offsets = [0, 0], sizes = [8, 192], strides = [1, 1]} : vector<8x256xf32> to vector<8x192xf32>
    %414 = arith.negf %413 : vector<8x192xf32>
    %415 = math.exp %414 : vector<8x192xf32>
    %cst_103 = arith.constant 1.000000e+00 : f32
    %416 = vector.broadcast %cst_103 : f32 to vector<8x192xf32>
    %417 = arith.addf %416, %415 : vector<8x192xf32>
    %418 = arith.divf %416, %417 : vector<8x192xf32>
    %419 = vector.extract_strided_slice %412 {offsets = [0, 192], sizes = [8, 64], strides = [1, 1]} : vector<8x256xf32> to vector<8x64xf32>
    %420 = math.tanh %419 : vector<8x64xf32>
    %421 = vector.extract_strided_slice %418 {offsets = [0, 0], sizes = [8, 64], strides = [1, 1]} : vector<8x192xf32> to vector<8x64xf32>
    %422 = vector.extract_strided_slice %418 {offsets = [0, 64], sizes = [8, 64], strides = [1, 1]} : vector<8x192xf32> to vector<8x64xf32>
    %423 = vector.extract_strided_slice %418 {offsets = [0, 128], sizes = [8, 64], strides = [1, 1]} : vector<8x192xf32> to vector<8x64xf32>
    %424 = arith.mulf %422, %406 : vector<8x64xf32>
    %425 = arith.mulf %421, %420 : vector<8x64xf32>
    %426 = arith.addf %424, %425 : vector<8x64xf32>
    %427 = math.tanh %426 : vector<8x64xf32>
    %428 = arith.mulf %423, %427 : vector<8x64xf32>
    %c7_104 = arith.constant 7 : index
    %c0_105 = arith.constant 0 : index
    %c0_106 = arith.constant 0 : index
    %429 = vector.load %arg1[%c7_104, %c0_105, %c0_106] : memref<8x8x64xf32, #tpu.memory_space<vmem>>, vector<1x8x64xf32>
    %430 = vector.shape_cast %429 : vector<1x8x64xf32> to vector<8x64xf32>
    %cst_107 = arith.constant 0.000000e+00 : f32
    %431 = vector.broadcast %cst_107 : f32 to vector<8x64xf32>
    %432 = arith.cmpf ogt, %430, %431 : vector<8x64xf32>
    %433 = arith.select %432, %428, %407 : vector<8x64xi1>, vector<8x64xf32>
    %cst_108 = arith.constant 0xFF800000 : f32
    %434 = vector.broadcast %cst_108 : f32 to vector<8x64xf32>
    %c0_109 = arith.constant 0 : index
    %c0_110 = arith.constant 0 : index
    %c0_111 = arith.constant 0 : index
    %435 = vector.load %arg1[%c0_109, %c0_110, %c0_111] : memref<8x8x64xf32, #tpu.memory_space<vmem>>, vector<1x8x64xf32>
    %436 = vector.shape_cast %435 : vector<1x8x64xf32> to vector<8x64xf32>
    %cst_112 = arith.constant 0.000000e+00 : f32
    %437 = vector.broadcast %cst_112 : f32 to vector<8x64xf32>
    %438 = arith.cmpf ogt, %436, %437 : vector<8x64xf32>
    %cst_113 = arith.constant 0xFF800000 : f32
    %439 = vector.broadcast %cst_113 : f32 to vector<8x64xf32>
    %440 = arith.select %438, %245, %439 : vector<8x64xi1>, vector<8x64xf32>
    %441 = arith.maximumf %434, %440 : vector<8x64xf32>
    %c1_114 = arith.constant 1 : index
    %c0_115 = arith.constant 0 : index
    %c0_116 = arith.constant 0 : index
    %442 = vector.load %arg1[%c1_114, %c0_115, %c0_116] : memref<8x8x64xf32, #tpu.memory_space<vmem>>, vector<1x8x64xf32>
    %443 = vector.shape_cast %442 : vector<1x8x64xf32> to vector<8x64xf32>
    %cst_117 = arith.constant 0.000000e+00 : f32
    %444 = vector.broadcast %cst_117 : f32 to vector<8x64xf32>
    %445 = arith.cmpf ogt, %443, %444 : vector<8x64xf32>
    %cst_118 = arith.constant 0xFF800000 : f32
    %446 = vector.broadcast %cst_118 : f32 to vector<8x64xf32>
    %447 = arith.select %445, %272, %446 : vector<8x64xi1>, vector<8x64xf32>
    %448 = arith.maximumf %441, %447 : vector<8x64xf32>
    %c2_119 = arith.constant 2 : index
    %c0_120 = arith.constant 0 : index
    %c0_121 = arith.constant 0 : index
    %449 = vector.load %arg1[%c2_119, %c0_120, %c0_121] : memref<8x8x64xf32, #tpu.memory_space<vmem>>, vector<1x8x64xf32>
    %450 = vector.shape_cast %449 : vector<1x8x64xf32> to vector<8x64xf32>
    %cst_122 = arith.constant 0.000000e+00 : f32
    %451 = vector.broadcast %cst_122 : f32 to vector<8x64xf32>
    %452 = arith.cmpf ogt, %450, %451 : vector<8x64xf32>
    %cst_123 = arith.constant 0xFF800000 : f32
    %453 = vector.broadcast %cst_123 : f32 to vector<8x64xf32>
    %454 = arith.select %452, %299, %453 : vector<8x64xi1>, vector<8x64xf32>
    %455 = arith.maximumf %448, %454 : vector<8x64xf32>
    %c3_124 = arith.constant 3 : index
    %c0_125 = arith.constant 0 : index
    %c0_126 = arith.constant 0 : index
    %456 = vector.load %arg1[%c3_124, %c0_125, %c0_126] : memref<8x8x64xf32, #tpu.memory_space<vmem>>, vector<1x8x64xf32>
    %457 = vector.shape_cast %456 : vector<1x8x64xf32> to vector<8x64xf32>
    %cst_127 = arith.constant 0.000000e+00 : f32
    %458 = vector.broadcast %cst_127 : f32 to vector<8x64xf32>
    %459 = arith.cmpf ogt, %457, %458 : vector<8x64xf32>
    %cst_128 = arith.constant 0xFF800000 : f32
    %460 = vector.broadcast %cst_128 : f32 to vector<8x64xf32>
    %461 = arith.select %459, %326, %460 : vector<8x64xi1>, vector<8x64xf32>
    %462 = arith.maximumf %455, %461 : vector<8x64xf32>
    %c4_129 = arith.constant 4 : index
    %c0_130 = arith.constant 0 : index
    %c0_131 = arith.constant 0 : index
    %463 = vector.load %arg1[%c4_129, %c0_130, %c0_131] : memref<8x8x64xf32, #tpu.memory_space<vmem>>, vector<1x8x64xf32>
    %464 = vector.shape_cast %463 : vector<1x8x64xf32> to vector<8x64xf32>
    %cst_132 = arith.constant 0.000000e+00 : f32
    %465 = vector.broadcast %cst_132 : f32 to vector<8x64xf32>
    %466 = arith.cmpf ogt, %464, %465 : vector<8x64xf32>
    %cst_133 = arith.constant 0xFF800000 : f32
    %467 = vector.broadcast %cst_133 : f32 to vector<8x64xf32>
    %468 = arith.select %466, %353, %467 : vector<8x64xi1>, vector<8x64xf32>
    %469 = arith.maximumf %462, %468 : vector<8x64xf32>
    %c5_134 = arith.constant 5 : index
    %c0_135 = arith.constant 0 : index
    %c0_136 = arith.constant 0 : index
    %470 = vector.load %arg1[%c5_134, %c0_135, %c0_136] : memref<8x8x64xf32, #tpu.memory_space<vmem>>, vector<1x8x64xf32>
    %471 = vector.shape_cast %470 : vector<1x8x64xf32> to vector<8x64xf32>
    %cst_137 = arith.constant 0.000000e+00 : f32
    %472 = vector.broadcast %cst_137 : f32 to vector<8x64xf32>
    %473 = arith.cmpf ogt, %471, %472 : vector<8x64xf32>
    %cst_138 = arith.constant 0xFF800000 : f32
    %474 = vector.broadcast %cst_138 : f32 to vector<8x64xf32>
    %475 = arith.select %473, %380, %474 : vector<8x64xi1>, vector<8x64xf32>
    %476 = arith.maximumf %469, %475 : vector<8x64xf32>
    %c6_139 = arith.constant 6 : index
    %c0_140 = arith.constant 0 : index
    %c0_141 = arith.constant 0 : index
    %477 = vector.load %arg1[%c6_139, %c0_140, %c0_141] : memref<8x8x64xf32, #tpu.memory_space<vmem>>, vector<1x8x64xf32>
    %478 = vector.shape_cast %477 : vector<1x8x64xf32> to vector<8x64xf32>
    %cst_142 = arith.constant 0.000000e+00 : f32
    %479 = vector.broadcast %cst_142 : f32 to vector<8x64xf32>
    %480 = arith.cmpf ogt, %478, %479 : vector<8x64xf32>
    %cst_143 = arith.constant 0xFF800000 : f32
    %481 = vector.broadcast %cst_143 : f32 to vector<8x64xf32>
    %482 = arith.select %480, %407, %481 : vector<8x64xi1>, vector<8x64xf32>
    %483 = arith.maximumf %476, %482 : vector<8x64xf32>
    %c7_144 = arith.constant 7 : index
    %c0_145 = arith.constant 0 : index
    %c0_146 = arith.constant 0 : index
    %484 = vector.load %arg1[%c7_144, %c0_145, %c0_146] : memref<8x8x64xf32, #tpu.memory_space<vmem>>, vector<1x8x64xf32>
    %485 = vector.shape_cast %484 : vector<1x8x64xf32> to vector<8x64xf32>
    %cst_147 = arith.constant 0.000000e+00 : f32
    %486 = vector.broadcast %cst_147 : f32 to vector<8x64xf32>
    %487 = arith.cmpf ogt, %485, %486 : vector<8x64xf32>
    %cst_148 = arith.constant 0xFF800000 : f32
    %488 = vector.broadcast %cst_148 : f32 to vector<8x64xf32>
    %489 = arith.select %487, %433, %488 : vector<8x64xi1>, vector<8x64xf32>
    %490 = arith.maximumf %483, %489 : vector<8x64xf32>
    %c0_149 = arith.constant 0 : index
    %c0_150 = arith.constant 0 : index
    %491 = vector.load %arg6[%c0_149, %c0_150] : memref<192x256xf32, #tpu.memory_space<vmem>>, vector<64x256xf32>
    %cst_151 = arith.constant dense<0.000000e+00> : vector<8x256xf32>
    %492 = tpu.matmul %490, %491, %cst_151 {dimension_numbers = #tpu.dot_dimension_numbers<[1], [0], [0], [1], [0, 0, 1, 1], [], []>} : vector<8x64xf32>, vector<64x256xf32>, vector<8x256xf32> -> vector<8x256xf32>
    %c0_152 = arith.constant 0 : index
    %c0_153 = arith.constant 0 : index
    %493 = vector.load %arg7[%c0_152, %c0_153] : memref<1x256xf32, #tpu.memory_space<vmem>>, vector<1x256xf32>
    %494 = vector.broadcast %493 : vector<1x256xf32> to vector<8x256xf32>
    %495 = arith.addf %492, %494 : vector<8x256xf32>
    %c64_154 = arith.constant 64 : index
    %c0_155 = arith.constant 0 : index
    %496 = vector.load %arg6[%c64_154, %c0_155] : memref<192x256xf32, #tpu.memory_space<vmem>>, vector<64x256xf32>
    %cst_156 = arith.constant dense<0.000000e+00> : vector<8x256xf32>
    %497 = tpu.matmul %490, %496, %cst_156 {dimension_numbers = #tpu.dot_dimension_numbers<[1], [0], [0], [1], [0, 0, 1, 1], [], []>} : vector<8x64xf32>, vector<64x256xf32>, vector<8x256xf32> -> vector<8x256xf32>
    %c128_157 = arith.constant 128 : index
    %c0_158 = arith.constant 0 : index
    %498 = vector.load %arg6[%c128_157, %c0_158] : memref<192x256xf32, #tpu.memory_space<vmem>>, vector<64x256xf32>
    %cst_159 = arith.constant 0.000000e+00 : f32
    %499 = vector.broadcast %cst_159 : f32 to vector<1x64xf32>
    %cst_160 = arith.constant 0.000000e+00 : f32
    %500 = vector.broadcast %cst_160 : f32 to vector<1x64xf32>
    %501 = vector.extract_strided_slice %495 {offsets = [0, 0], sizes = [1, 256], strides = [1, 1]} : vector<8x256xf32> to vector<1x256xf32>
    %502 = vector.extract_strided_slice %497 {offsets = [7, 0], sizes = [1, 256], strides = [1, 1]} : vector<8x256xf32> to vector<1x256xf32>
    %503 = arith.addf %501, %502 : vector<1x256xf32>
    %cst_161 = arith.constant dense<0.000000e+00> : vector<1x256xf32>
    %504 = tpu.matmul %499, %498, %cst_161 {dimension_numbers = #tpu.dot_dimension_numbers<[1], [0], [0], [1], [0, 0, 1, 1], [], []>} : vector<1x64xf32>, vector<64x256xf32>, vector<1x256xf32> -> vector<1x256xf32>
    %505 = arith.addf %503, %504 : vector<1x256xf32>
    %506 = vector.extract_strided_slice %505 {offsets = [0, 0], sizes = [1, 192], strides = [1, 1]} : vector<1x256xf32> to vector<1x192xf32>
    %507 = arith.negf %506 : vector<1x192xf32>
    %508 = math.exp %507 : vector<1x192xf32>
    %cst_162 = arith.constant 1.000000e+00 : f32
    %509 = vector.broadcast %cst_162 : f32 to vector<1x192xf32>
    %510 = arith.addf %509, %508 : vector<1x192xf32>
    %511 = arith.divf %509, %510 : vector<1x192xf32>
    %512 = vector.extract_strided_slice %505 {offsets = [0, 192], sizes = [1, 64], strides = [1, 1]} : vector<1x256xf32> to vector<1x64xf32>
    %513 = math.tanh %512 : vector<1x64xf32>
    %514 = vector.extract_strided_slice %511 {offsets = [0, 0], sizes = [1, 64], strides = [1, 1]} : vector<1x192xf32> to vector<1x64xf32>
    %515 = vector.extract_strided_slice %511 {offsets = [0, 64], sizes = [1, 64], strides = [1, 1]} : vector<1x192xf32> to vector<1x64xf32>
    %516 = vector.extract_strided_slice %511 {offsets = [0, 128], sizes = [1, 64], strides = [1, 1]} : vector<1x192xf32> to vector<1x64xf32>
    %517 = arith.mulf %515, %500 : vector<1x64xf32>
    %518 = arith.mulf %514, %513 : vector<1x64xf32>
    %519 = arith.addf %517, %518 : vector<1x64xf32>
    %520 = math.tanh %519 : vector<1x64xf32>
    %521 = arith.mulf %516, %520 : vector<1x64xf32>
    %522 = vector.extract_strided_slice %495 {offsets = [1, 0], sizes = [1, 256], strides = [1, 1]} : vector<8x256xf32> to vector<1x256xf32>
    %523 = vector.extract_strided_slice %497 {offsets = [6, 0], sizes = [1, 256], strides = [1, 1]} : vector<8x256xf32> to vector<1x256xf32>
    %524 = arith.addf %522, %523 : vector<1x256xf32>
    %cst_163 = arith.constant dense<0.000000e+00> : vector<1x256xf32>
    %525 = tpu.matmul %521, %498, %cst_163 {dimension_numbers = #tpu.dot_dimension_numbers<[1], [0], [0], [1], [0, 0, 1, 1], [], []>} : vector<1x64xf32>, vector<64x256xf32>, vector<1x256xf32> -> vector<1x256xf32>
    %526 = arith.addf %524, %525 : vector<1x256xf32>
    %527 = vector.extract_strided_slice %526 {offsets = [0, 0], sizes = [1, 192], strides = [1, 1]} : vector<1x256xf32> to vector<1x192xf32>
    %528 = arith.negf %527 : vector<1x192xf32>
    %529 = math.exp %528 : vector<1x192xf32>
    %cst_164 = arith.constant 1.000000e+00 : f32
    %530 = vector.broadcast %cst_164 : f32 to vector<1x192xf32>
    %531 = arith.addf %530, %529 : vector<1x192xf32>
    %532 = arith.divf %530, %531 : vector<1x192xf32>
    %533 = vector.extract_strided_slice %526 {offsets = [0, 192], sizes = [1, 64], strides = [1, 1]} : vector<1x256xf32> to vector<1x64xf32>
    %534 = math.tanh %533 : vector<1x64xf32>
    %535 = vector.extract_strided_slice %532 {offsets = [0, 0], sizes = [1, 64], strides = [1, 1]} : vector<1x192xf32> to vector<1x64xf32>
    %536 = vector.extract_strided_slice %532 {offsets = [0, 64], sizes = [1, 64], strides = [1, 1]} : vector<1x192xf32> to vector<1x64xf32>
    %537 = vector.extract_strided_slice %532 {offsets = [0, 128], sizes = [1, 64], strides = [1, 1]} : vector<1x192xf32> to vector<1x64xf32>
    %538 = arith.mulf %536, %519 : vector<1x64xf32>
    %539 = arith.mulf %535, %534 : vector<1x64xf32>
    %540 = arith.addf %538, %539 : vector<1x64xf32>
    %541 = math.tanh %540 : vector<1x64xf32>
    %542 = arith.mulf %537, %541 : vector<1x64xf32>
    %543 = vector.extract_strided_slice %495 {offsets = [2, 0], sizes = [1, 256], strides = [1, 1]} : vector<8x256xf32> to vector<1x256xf32>
    %544 = vector.extract_strided_slice %497 {offsets = [5, 0], sizes = [1, 256], strides = [1, 1]} : vector<8x256xf32> to vector<1x256xf32>
    %545 = arith.addf %543, %544 : vector<1x256xf32>
    %cst_165 = arith.constant dense<0.000000e+00> : vector<1x256xf32>
    %546 = tpu.matmul %542, %498, %cst_165 {dimension_numbers = #tpu.dot_dimension_numbers<[1], [0], [0], [1], [0, 0, 1, 1], [], []>} : vector<1x64xf32>, vector<64x256xf32>, vector<1x256xf32> -> vector<1x256xf32>
    %547 = arith.addf %545, %546 : vector<1x256xf32>
    %548 = vector.extract_strided_slice %547 {offsets = [0, 0], sizes = [1, 192], strides = [1, 1]} : vector<1x256xf32> to vector<1x192xf32>
    %549 = arith.negf %548 : vector<1x192xf32>
    %550 = math.exp %549 : vector<1x192xf32>
    %cst_166 = arith.constant 1.000000e+00 : f32
    %551 = vector.broadcast %cst_166 : f32 to vector<1x192xf32>
    %552 = arith.addf %551, %550 : vector<1x192xf32>
    %553 = arith.divf %551, %552 : vector<1x192xf32>
    %554 = vector.extract_strided_slice %547 {offsets = [0, 192], sizes = [1, 64], strides = [1, 1]} : vector<1x256xf32> to vector<1x64xf32>
    %555 = math.tanh %554 : vector<1x64xf32>
    %556 = vector.extract_strided_slice %553 {offsets = [0, 0], sizes = [1, 64], strides = [1, 1]} : vector<1x192xf32> to vector<1x64xf32>
    %557 = vector.extract_strided_slice %553 {offsets = [0, 64], sizes = [1, 64], strides = [1, 1]} : vector<1x192xf32> to vector<1x64xf32>
    %558 = vector.extract_strided_slice %553 {offsets = [0, 128], sizes = [1, 64], strides = [1, 1]} : vector<1x192xf32> to vector<1x64xf32>
    %559 = arith.mulf %557, %540 : vector<1x64xf32>
    %560 = arith.mulf %556, %555 : vector<1x64xf32>
    %561 = arith.addf %559, %560 : vector<1x64xf32>
    %562 = math.tanh %561 : vector<1x64xf32>
    %563 = arith.mulf %558, %562 : vector<1x64xf32>
    %564 = vector.extract_strided_slice %495 {offsets = [3, 0], sizes = [1, 256], strides = [1, 1]} : vector<8x256xf32> to vector<1x256xf32>
    %565 = vector.extract_strided_slice %497 {offsets = [4, 0], sizes = [1, 256], strides = [1, 1]} : vector<8x256xf32> to vector<1x256xf32>
    %566 = arith.addf %564, %565 : vector<1x256xf32>
    %cst_167 = arith.constant dense<0.000000e+00> : vector<1x256xf32>
    %567 = tpu.matmul %563, %498, %cst_167 {dimension_numbers = #tpu.dot_dimension_numbers<[1], [0], [0], [1], [0, 0, 1, 1], [], []>} : vector<1x64xf32>, vector<64x256xf32>, vector<1x256xf32> -> vector<1x256xf32>
    %568 = arith.addf %566, %567 : vector<1x256xf32>
    %569 = vector.extract_strided_slice %568 {offsets = [0, 0], sizes = [1, 192], strides = [1, 1]} : vector<1x256xf32> to vector<1x192xf32>
    %570 = arith.negf %569 : vector<1x192xf32>
    %571 = math.exp %570 : vector<1x192xf32>
    %cst_168 = arith.constant 1.000000e+00 : f32
    %572 = vector.broadcast %cst_168 : f32 to vector<1x192xf32>
    %573 = arith.addf %572, %571 : vector<1x192xf32>
    %574 = arith.divf %572, %573 : vector<1x192xf32>
    %575 = vector.extract_strided_slice %568 {offsets = [0, 192], sizes = [1, 64], strides = [1, 1]} : vector<1x256xf32> to vector<1x64xf32>
    %576 = math.tanh %575 : vector<1x64xf32>
    %577 = vector.extract_strided_slice %574 {offsets = [0, 0], sizes = [1, 64], strides = [1, 1]} : vector<1x192xf32> to vector<1x64xf32>
    %578 = vector.extract_strided_slice %574 {offsets = [0, 64], sizes = [1, 64], strides = [1, 1]} : vector<1x192xf32> to vector<1x64xf32>
    %579 = vector.extract_strided_slice %574 {offsets = [0, 128], sizes = [1, 64], strides = [1, 1]} : vector<1x192xf32> to vector<1x64xf32>
    %580 = arith.mulf %578, %561 : vector<1x64xf32>
    %581 = arith.mulf %577, %576 : vector<1x64xf32>
    %582 = arith.addf %580, %581 : vector<1x64xf32>
    %583 = math.tanh %582 : vector<1x64xf32>
    %584 = arith.mulf %579, %583 : vector<1x64xf32>
    %585 = vector.extract_strided_slice %495 {offsets = [4, 0], sizes = [1, 256], strides = [1, 1]} : vector<8x256xf32> to vector<1x256xf32>
    %586 = vector.extract_strided_slice %497 {offsets = [3, 0], sizes = [1, 256], strides = [1, 1]} : vector<8x256xf32> to vector<1x256xf32>
    %587 = arith.addf %585, %586 : vector<1x256xf32>
    %cst_169 = arith.constant dense<0.000000e+00> : vector<1x256xf32>
    %588 = tpu.matmul %584, %498, %cst_169 {dimension_numbers = #tpu.dot_dimension_numbers<[1], [0], [0], [1], [0, 0, 1, 1], [], []>} : vector<1x64xf32>, vector<64x256xf32>, vector<1x256xf32> -> vector<1x256xf32>
    %589 = arith.addf %587, %588 : vector<1x256xf32>
    %590 = vector.extract_strided_slice %589 {offsets = [0, 0], sizes = [1, 192], strides = [1, 1]} : vector<1x256xf32> to vector<1x192xf32>
    %591 = arith.negf %590 : vector<1x192xf32>
    %592 = math.exp %591 : vector<1x192xf32>
    %cst_170 = arith.constant 1.000000e+00 : f32
    %593 = vector.broadcast %cst_170 : f32 to vector<1x192xf32>
    %594 = arith.addf %593, %592 : vector<1x192xf32>
    %595 = arith.divf %593, %594 : vector<1x192xf32>
    %596 = vector.extract_strided_slice %589 {offsets = [0, 192], sizes = [1, 64], strides = [1, 1]} : vector<1x256xf32> to vector<1x64xf32>
    %597 = math.tanh %596 : vector<1x64xf32>
    %598 = vector.extract_strided_slice %595 {offsets = [0, 0], sizes = [1, 64], strides = [1, 1]} : vector<1x192xf32> to vector<1x64xf32>
    %599 = vector.extract_strided_slice %595 {offsets = [0, 64], sizes = [1, 64], strides = [1, 1]} : vector<1x192xf32> to vector<1x64xf32>
    %600 = vector.extract_strided_slice %595 {offsets = [0, 128], sizes = [1, 64], strides = [1, 1]} : vector<1x192xf32> to vector<1x64xf32>
    %601 = arith.mulf %599, %582 : vector<1x64xf32>
    %602 = arith.mulf %598, %597 : vector<1x64xf32>
    %603 = arith.addf %601, %602 : vector<1x64xf32>
    %604 = math.tanh %603 : vector<1x64xf32>
    %605 = arith.mulf %600, %604 : vector<1x64xf32>
    %606 = vector.extract_strided_slice %495 {offsets = [5, 0], sizes = [1, 256], strides = [1, 1]} : vector<8x256xf32> to vector<1x256xf32>
    %607 = vector.extract_strided_slice %497 {offsets = [2, 0], sizes = [1, 256], strides = [1, 1]} : vector<8x256xf32> to vector<1x256xf32>
    %608 = arith.addf %606, %607 : vector<1x256xf32>
    %cst_171 = arith.constant dense<0.000000e+00> : vector<1x256xf32>
    %609 = tpu.matmul %605, %498, %cst_171 {dimension_numbers = #tpu.dot_dimension_numbers<[1], [0], [0], [1], [0, 0, 1, 1], [], []>} : vector<1x64xf32>, vector<64x256xf32>, vector<1x256xf32> -> vector<1x256xf32>
    %610 = arith.addf %608, %609 : vector<1x256xf32>
    %611 = vector.extract_strided_slice %610 {offsets = [0, 0], sizes = [1, 192], strides = [1, 1]} : vector<1x256xf32> to vector<1x192xf32>
    %612 = arith.negf %611 : vector<1x192xf32>
    %613 = math.exp %612 : vector<1x192xf32>
    %cst_172 = arith.constant 1.000000e+00 : f32
    %614 = vector.broadcast %cst_172 : f32 to vector<1x192xf32>
    %615 = arith.addf %614, %613 : vector<1x192xf32>
    %616 = arith.divf %614, %615 : vector<1x192xf32>
    %617 = vector.extract_strided_slice %610 {offsets = [0, 192], sizes = [1, 64], strides = [1, 1]} : vector<1x256xf32> to vector<1x64xf32>
    %618 = math.tanh %617 : vector<1x64xf32>
    %619 = vector.extract_strided_slice %616 {offsets = [0, 0], sizes = [1, 64], strides = [1, 1]} : vector<1x192xf32> to vector<1x64xf32>
    %620 = vector.extract_strided_slice %616 {offsets = [0, 64], sizes = [1, 64], strides = [1, 1]} : vector<1x192xf32> to vector<1x64xf32>
    %621 = vector.extract_strided_slice %616 {offsets = [0, 128], sizes = [1, 64], strides = [1, 1]} : vector<1x192xf32> to vector<1x64xf32>
    %622 = arith.mulf %620, %603 : vector<1x64xf32>
    %623 = arith.mulf %619, %618 : vector<1x64xf32>
    %624 = arith.addf %622, %623 : vector<1x64xf32>
    %625 = math.tanh %624 : vector<1x64xf32>
    %626 = arith.mulf %621, %625 : vector<1x64xf32>
    %627 = vector.extract_strided_slice %495 {offsets = [6, 0], sizes = [1, 256], strides = [1, 1]} : vector<8x256xf32> to vector<1x256xf32>
    %628 = vector.extract_strided_slice %497 {offsets = [1, 0], sizes = [1, 256], strides = [1, 1]} : vector<8x256xf32> to vector<1x256xf32>
    %629 = arith.addf %627, %628 : vector<1x256xf32>
    %cst_173 = arith.constant dense<0.000000e+00> : vector<1x256xf32>
    %630 = tpu.matmul %626, %498, %cst_173 {dimension_numbers = #tpu.dot_dimension_numbers<[1], [0], [0], [1], [0, 0, 1, 1], [], []>} : vector<1x64xf32>, vector<64x256xf32>, vector<1x256xf32> -> vector<1x256xf32>
    %631 = arith.addf %629, %630 : vector<1x256xf32>
    %632 = vector.extract_strided_slice %631 {offsets = [0, 0], sizes = [1, 192], strides = [1, 1]} : vector<1x256xf32> to vector<1x192xf32>
    %633 = arith.negf %632 : vector<1x192xf32>
    %634 = math.exp %633 : vector<1x192xf32>
    %cst_174 = arith.constant 1.000000e+00 : f32
    %635 = vector.broadcast %cst_174 : f32 to vector<1x192xf32>
    %636 = arith.addf %635, %634 : vector<1x192xf32>
    %637 = arith.divf %635, %636 : vector<1x192xf32>
    %638 = vector.extract_strided_slice %631 {offsets = [0, 192], sizes = [1, 64], strides = [1, 1]} : vector<1x256xf32> to vector<1x64xf32>
    %639 = math.tanh %638 : vector<1x64xf32>
    %640 = vector.extract_strided_slice %637 {offsets = [0, 0], sizes = [1, 64], strides = [1, 1]} : vector<1x192xf32> to vector<1x64xf32>
    %641 = vector.extract_strided_slice %637 {offsets = [0, 64], sizes = [1, 64], strides = [1, 1]} : vector<1x192xf32> to vector<1x64xf32>
    %642 = vector.extract_strided_slice %637 {offsets = [0, 128], sizes = [1, 64], strides = [1, 1]} : vector<1x192xf32> to vector<1x64xf32>
    %643 = arith.mulf %641, %624 : vector<1x64xf32>
    %644 = arith.mulf %640, %639 : vector<1x64xf32>
    %645 = arith.addf %643, %644 : vector<1x64xf32>
    %646 = math.tanh %645 : vector<1x64xf32>
    %647 = arith.mulf %642, %646 : vector<1x64xf32>
    %648 = vector.extract_strided_slice %495 {offsets = [7, 0], sizes = [1, 256], strides = [1, 1]} : vector<8x256xf32> to vector<1x256xf32>
    %649 = vector.extract_strided_slice %497 {offsets = [0, 0], sizes = [1, 256], strides = [1, 1]} : vector<8x256xf32> to vector<1x256xf32>
    %650 = arith.addf %648, %649 : vector<1x256xf32>
    %cst_175 = arith.constant dense<0.000000e+00> : vector<1x256xf32>
    %651 = tpu.matmul %647, %498, %cst_175 {dimension_numbers = #tpu.dot_dimension_numbers<[1], [0], [0], [1], [0, 0, 1, 1], [], []>} : vector<1x64xf32>, vector<64x256xf32>, vector<1x256xf32> -> vector<1x256xf32>
    %652 = arith.addf %650, %651 : vector<1x256xf32>
    %653 = vector.extract_strided_slice %652 {offsets = [0, 0], sizes = [1, 192], strides = [1, 1]} : vector<1x256xf32> to vector<1x192xf32>
    %654 = arith.negf %653 : vector<1x192xf32>
    %655 = math.exp %654 : vector<1x192xf32>
    %cst_176 = arith.constant 1.000000e+00 : f32
    %656 = vector.broadcast %cst_176 : f32 to vector<1x192xf32>
    %657 = arith.addf %656, %655 : vector<1x192xf32>
    %658 = arith.divf %656, %657 : vector<1x192xf32>
    %659 = vector.extract_strided_slice %652 {offsets = [0, 192], sizes = [1, 64], strides = [1, 1]} : vector<1x256xf32> to vector<1x64xf32>
    %660 = math.tanh %659 : vector<1x64xf32>
    %661 = vector.extract_strided_slice %658 {offsets = [0, 0], sizes = [1, 64], strides = [1, 1]} : vector<1x192xf32> to vector<1x64xf32>
    %662 = vector.extract_strided_slice %658 {offsets = [0, 64], sizes = [1, 64], strides = [1, 1]} : vector<1x192xf32> to vector<1x64xf32>
    %663 = vector.extract_strided_slice %658 {offsets = [0, 128], sizes = [1, 64], strides = [1, 1]} : vector<1x192xf32> to vector<1x64xf32>
    %664 = arith.mulf %662, %645 : vector<1x64xf32>
    %665 = arith.mulf %661, %660 : vector<1x64xf32>
    %666 = arith.addf %664, %665 : vector<1x64xf32>
    %667 = math.tanh %666 : vector<1x64xf32>
    %668 = arith.mulf %663, %667 : vector<1x64xf32>
    %669 = tpu.concatenate %521, %542, %563, %584, %605, %626, %647, %668 in 0 : vector<1x64xf32>, vector<1x64xf32>, vector<1x64xf32>, vector<1x64xf32>, vector<1x64xf32>, vector<1x64xf32>, vector<1x64xf32>, vector<1x64xf32> -> vector<8x64xf32>
    %c0_177 = arith.constant 0 : index
    %c0_178 = arith.constant 0 : index
    %670 = vector.load %arg8[%c0_177, %c0_178] : memref<192x256xf32, #tpu.memory_space<vmem>>, vector<64x256xf32>
    %cst_179 = arith.constant dense<0.000000e+00> : vector<8x256xf32>
    %671 = tpu.matmul %669, %670, %cst_179 {dimension_numbers = #tpu.dot_dimension_numbers<[1], [0], [0], [1], [0, 0, 1, 1], [], []>} : vector<8x64xf32>, vector<64x256xf32>, vector<8x256xf32> -> vector<8x256xf32>
    %c0_180 = arith.constant 0 : index
    %c0_181 = arith.constant 0 : index
    %672 = vector.load %arg9[%c0_180, %c0_181] : memref<1x256xf32, #tpu.memory_space<vmem>>, vector<1x256xf32>
    %673 = vector.broadcast %672 : vector<1x256xf32> to vector<8x256xf32>
    %674 = arith.addf %671, %673 : vector<8x256xf32>
    %c64_182 = arith.constant 64 : index
    %c0_183 = arith.constant 0 : index
    %675 = vector.load %arg8[%c64_182, %c0_183] : memref<192x256xf32, #tpu.memory_space<vmem>>, vector<64x256xf32>
    %cst_184 = arith.constant dense<0.000000e+00> : vector<8x256xf32>
    %676 = tpu.matmul %669, %675, %cst_184 {dimension_numbers = #tpu.dot_dimension_numbers<[1], [0], [0], [1], [0, 0, 1, 1], [], []>} : vector<8x64xf32>, vector<64x256xf32>, vector<8x256xf32> -> vector<8x256xf32>
    %c128_185 = arith.constant 128 : index
    %c0_186 = arith.constant 0 : index
    %677 = vector.load %arg8[%c128_185, %c0_186] : memref<192x256xf32, #tpu.memory_space<vmem>>, vector<64x256xf32>
    %cst_187 = arith.constant 0.000000e+00 : f32
    %678 = vector.broadcast %cst_187 : f32 to vector<1x64xf32>
    %cst_188 = arith.constant 0.000000e+00 : f32
    %679 = vector.broadcast %cst_188 : f32 to vector<1x64xf32>
    %680 = vector.extract_strided_slice %674 {offsets = [0, 0], sizes = [1, 256], strides = [1, 1]} : vector<8x256xf32> to vector<1x256xf32>
    %681 = vector.extract_strided_slice %676 {offsets = [7, 0], sizes = [1, 256], strides = [1, 1]} : vector<8x256xf32> to vector<1x256xf32>
    %682 = arith.addf %680, %681 : vector<1x256xf32>
    %cst_189 = arith.constant dense<0.000000e+00> : vector<1x256xf32>
    %683 = tpu.matmul %678, %677, %cst_189 {dimension_numbers = #tpu.dot_dimension_numbers<[1], [0], [0], [1], [0, 0, 1, 1], [], []>} : vector<1x64xf32>, vector<64x256xf32>, vector<1x256xf32> -> vector<1x256xf32>
    %684 = arith.addf %682, %683 : vector<1x256xf32>
    %685 = vector.extract_strided_slice %684 {offsets = [0, 0], sizes = [1, 192], strides = [1, 1]} : vector<1x256xf32> to vector<1x192xf32>
    %686 = arith.negf %685 : vector<1x192xf32>
    %687 = math.exp %686 : vector<1x192xf32>
    %cst_190 = arith.constant 1.000000e+00 : f32
    %688 = vector.broadcast %cst_190 : f32 to vector<1x192xf32>
    %689 = arith.addf %688, %687 : vector<1x192xf32>
    %690 = arith.divf %688, %689 : vector<1x192xf32>
    %691 = vector.extract_strided_slice %684 {offsets = [0, 192], sizes = [1, 64], strides = [1, 1]} : vector<1x256xf32> to vector<1x64xf32>
    %692 = math.tanh %691 : vector<1x64xf32>
    %693 = vector.extract_strided_slice %690 {offsets = [0, 0], sizes = [1, 64], strides = [1, 1]} : vector<1x192xf32> to vector<1x64xf32>
    %694 = vector.extract_strided_slice %690 {offsets = [0, 64], sizes = [1, 64], strides = [1, 1]} : vector<1x192xf32> to vector<1x64xf32>
    %695 = vector.extract_strided_slice %690 {offsets = [0, 128], sizes = [1, 64], strides = [1, 1]} : vector<1x192xf32> to vector<1x64xf32>
    %696 = arith.mulf %694, %679 : vector<1x64xf32>
    %697 = arith.mulf %693, %692 : vector<1x64xf32>
    %698 = arith.addf %696, %697 : vector<1x64xf32>
    %699 = math.tanh %698 : vector<1x64xf32>
    %700 = arith.mulf %695, %699 : vector<1x64xf32>
    %701 = vector.extract_strided_slice %674 {offsets = [1, 0], sizes = [1, 256], strides = [1, 1]} : vector<8x256xf32> to vector<1x256xf32>
    %702 = vector.extract_strided_slice %676 {offsets = [6, 0], sizes = [1, 256], strides = [1, 1]} : vector<8x256xf32> to vector<1x256xf32>
    %703 = arith.addf %701, %702 : vector<1x256xf32>
    %cst_191 = arith.constant dense<0.000000e+00> : vector<1x256xf32>
    %704 = tpu.matmul %700, %677, %cst_191 {dimension_numbers = #tpu.dot_dimension_numbers<[1], [0], [0], [1], [0, 0, 1, 1], [], []>} : vector<1x64xf32>, vector<64x256xf32>, vector<1x256xf32> -> vector<1x256xf32>
    %705 = arith.addf %703, %704 : vector<1x256xf32>
    %706 = vector.extract_strided_slice %705 {offsets = [0, 0], sizes = [1, 192], strides = [1, 1]} : vector<1x256xf32> to vector<1x192xf32>
    %707 = arith.negf %706 : vector<1x192xf32>
    %708 = math.exp %707 : vector<1x192xf32>
    %cst_192 = arith.constant 1.000000e+00 : f32
    %709 = vector.broadcast %cst_192 : f32 to vector<1x192xf32>
    %710 = arith.addf %709, %708 : vector<1x192xf32>
    %711 = arith.divf %709, %710 : vector<1x192xf32>
    %712 = vector.extract_strided_slice %705 {offsets = [0, 192], sizes = [1, 64], strides = [1, 1]} : vector<1x256xf32> to vector<1x64xf32>
    %713 = math.tanh %712 : vector<1x64xf32>
    %714 = vector.extract_strided_slice %711 {offsets = [0, 0], sizes = [1, 64], strides = [1, 1]} : vector<1x192xf32> to vector<1x64xf32>
    %715 = vector.extract_strided_slice %711 {offsets = [0, 64], sizes = [1, 64], strides = [1, 1]} : vector<1x192xf32> to vector<1x64xf32>
    %716 = vector.extract_strided_slice %711 {offsets = [0, 128], sizes = [1, 64], strides = [1, 1]} : vector<1x192xf32> to vector<1x64xf32>
    %717 = arith.mulf %715, %698 : vector<1x64xf32>
    %718 = arith.mulf %714, %713 : vector<1x64xf32>
    %719 = arith.addf %717, %718 : vector<1x64xf32>
    %720 = math.tanh %719 : vector<1x64xf32>
    %721 = arith.mulf %716, %720 : vector<1x64xf32>
    %722 = vector.extract_strided_slice %674 {offsets = [2, 0], sizes = [1, 256], strides = [1, 1]} : vector<8x256xf32> to vector<1x256xf32>
    %723 = vector.extract_strided_slice %676 {offsets = [5, 0], sizes = [1, 256], strides = [1, 1]} : vector<8x256xf32> to vector<1x256xf32>
    %724 = arith.addf %722, %723 : vector<1x256xf32>
    %cst_193 = arith.constant dense<0.000000e+00> : vector<1x256xf32>
    %725 = tpu.matmul %721, %677, %cst_193 {dimension_numbers = #tpu.dot_dimension_numbers<[1], [0], [0], [1], [0, 0, 1, 1], [], []>} : vector<1x64xf32>, vector<64x256xf32>, vector<1x256xf32> -> vector<1x256xf32>
    %726 = arith.addf %724, %725 : vector<1x256xf32>
    %727 = vector.extract_strided_slice %726 {offsets = [0, 0], sizes = [1, 192], strides = [1, 1]} : vector<1x256xf32> to vector<1x192xf32>
    %728 = arith.negf %727 : vector<1x192xf32>
    %729 = math.exp %728 : vector<1x192xf32>
    %cst_194 = arith.constant 1.000000e+00 : f32
    %730 = vector.broadcast %cst_194 : f32 to vector<1x192xf32>
    %731 = arith.addf %730, %729 : vector<1x192xf32>
    %732 = arith.divf %730, %731 : vector<1x192xf32>
    %733 = vector.extract_strided_slice %726 {offsets = [0, 192], sizes = [1, 64], strides = [1, 1]} : vector<1x256xf32> to vector<1x64xf32>
    %734 = math.tanh %733 : vector<1x64xf32>
    %735 = vector.extract_strided_slice %732 {offsets = [0, 0], sizes = [1, 64], strides = [1, 1]} : vector<1x192xf32> to vector<1x64xf32>
    %736 = vector.extract_strided_slice %732 {offsets = [0, 64], sizes = [1, 64], strides = [1, 1]} : vector<1x192xf32> to vector<1x64xf32>
    %737 = vector.extract_strided_slice %732 {offsets = [0, 128], sizes = [1, 64], strides = [1, 1]} : vector<1x192xf32> to vector<1x64xf32>
    %738 = arith.mulf %736, %719 : vector<1x64xf32>
    %739 = arith.mulf %735, %734 : vector<1x64xf32>
    %740 = arith.addf %738, %739 : vector<1x64xf32>
    %741 = math.tanh %740 : vector<1x64xf32>
    %742 = arith.mulf %737, %741 : vector<1x64xf32>
    %743 = vector.extract_strided_slice %674 {offsets = [3, 0], sizes = [1, 256], strides = [1, 1]} : vector<8x256xf32> to vector<1x256xf32>
    %744 = vector.extract_strided_slice %676 {offsets = [4, 0], sizes = [1, 256], strides = [1, 1]} : vector<8x256xf32> to vector<1x256xf32>
    %745 = arith.addf %743, %744 : vector<1x256xf32>
    %cst_195 = arith.constant dense<0.000000e+00> : vector<1x256xf32>
    %746 = tpu.matmul %742, %677, %cst_195 {dimension_numbers = #tpu.dot_dimension_numbers<[1], [0], [0], [1], [0, 0, 1, 1], [], []>} : vector<1x64xf32>, vector<64x256xf32>, vector<1x256xf32> -> vector<1x256xf32>
    %747 = arith.addf %745, %746 : vector<1x256xf32>
    %748 = vector.extract_strided_slice %747 {offsets = [0, 0], sizes = [1, 192], strides = [1, 1]} : vector<1x256xf32> to vector<1x192xf32>
    %749 = arith.negf %748 : vector<1x192xf32>
    %750 = math.exp %749 : vector<1x192xf32>
    %cst_196 = arith.constant 1.000000e+00 : f32
    %751 = vector.broadcast %cst_196 : f32 to vector<1x192xf32>
    %752 = arith.addf %751, %750 : vector<1x192xf32>
    %753 = arith.divf %751, %752 : vector<1x192xf32>
    %754 = vector.extract_strided_slice %747 {offsets = [0, 192], sizes = [1, 64], strides = [1, 1]} : vector<1x256xf32> to vector<1x64xf32>
    %755 = math.tanh %754 : vector<1x64xf32>
    %756 = vector.extract_strided_slice %753 {offsets = [0, 0], sizes = [1, 64], strides = [1, 1]} : vector<1x192xf32> to vector<1x64xf32>
    %757 = vector.extract_strided_slice %753 {offsets = [0, 64], sizes = [1, 64], strides = [1, 1]} : vector<1x192xf32> to vector<1x64xf32>
    %758 = vector.extract_strided_slice %753 {offsets = [0, 128], sizes = [1, 64], strides = [1, 1]} : vector<1x192xf32> to vector<1x64xf32>
    %759 = arith.mulf %757, %740 : vector<1x64xf32>
    %760 = arith.mulf %756, %755 : vector<1x64xf32>
    %761 = arith.addf %759, %760 : vector<1x64xf32>
    %762 = math.tanh %761 : vector<1x64xf32>
    %763 = arith.mulf %758, %762 : vector<1x64xf32>
    %764 = vector.extract_strided_slice %674 {offsets = [4, 0], sizes = [1, 256], strides = [1, 1]} : vector<8x256xf32> to vector<1x256xf32>
    %765 = vector.extract_strided_slice %676 {offsets = [3, 0], sizes = [1, 256], strides = [1, 1]} : vector<8x256xf32> to vector<1x256xf32>
    %766 = arith.addf %764, %765 : vector<1x256xf32>
    %cst_197 = arith.constant dense<0.000000e+00> : vector<1x256xf32>
    %767 = tpu.matmul %763, %677, %cst_197 {dimension_numbers = #tpu.dot_dimension_numbers<[1], [0], [0], [1], [0, 0, 1, 1], [], []>} : vector<1x64xf32>, vector<64x256xf32>, vector<1x256xf32> -> vector<1x256xf32>
    %768 = arith.addf %766, %767 : vector<1x256xf32>
    %769 = vector.extract_strided_slice %768 {offsets = [0, 0], sizes = [1, 192], strides = [1, 1]} : vector<1x256xf32> to vector<1x192xf32>
    %770 = arith.negf %769 : vector<1x192xf32>
    %771 = math.exp %770 : vector<1x192xf32>
    %cst_198 = arith.constant 1.000000e+00 : f32
    %772 = vector.broadcast %cst_198 : f32 to vector<1x192xf32>
    %773 = arith.addf %772, %771 : vector<1x192xf32>
    %774 = arith.divf %772, %773 : vector<1x192xf32>
    %775 = vector.extract_strided_slice %768 {offsets = [0, 192], sizes = [1, 64], strides = [1, 1]} : vector<1x256xf32> to vector<1x64xf32>
    %776 = math.tanh %775 : vector<1x64xf32>
    %777 = vector.extract_strided_slice %774 {offsets = [0, 0], sizes = [1, 64], strides = [1, 1]} : vector<1x192xf32> to vector<1x64xf32>
    %778 = vector.extract_strided_slice %774 {offsets = [0, 64], sizes = [1, 64], strides = [1, 1]} : vector<1x192xf32> to vector<1x64xf32>
    %779 = vector.extract_strided_slice %774 {offsets = [0, 128], sizes = [1, 64], strides = [1, 1]} : vector<1x192xf32> to vector<1x64xf32>
    %780 = arith.mulf %778, %761 : vector<1x64xf32>
    %781 = arith.mulf %777, %776 : vector<1x64xf32>
    %782 = arith.addf %780, %781 : vector<1x64xf32>
    %783 = math.tanh %782 : vector<1x64xf32>
    %784 = arith.mulf %779, %783 : vector<1x64xf32>
    %785 = vector.extract_strided_slice %674 {offsets = [5, 0], sizes = [1, 256], strides = [1, 1]} : vector<8x256xf32> to vector<1x256xf32>
    %786 = vector.extract_strided_slice %676 {offsets = [2, 0], sizes = [1, 256], strides = [1, 1]} : vector<8x256xf32> to vector<1x256xf32>
    %787 = arith.addf %785, %786 : vector<1x256xf32>
    %cst_199 = arith.constant dense<0.000000e+00> : vector<1x256xf32>
    %788 = tpu.matmul %784, %677, %cst_199 {dimension_numbers = #tpu.dot_dimension_numbers<[1], [0], [0], [1], [0, 0, 1, 1], [], []>} : vector<1x64xf32>, vector<64x256xf32>, vector<1x256xf32> -> vector<1x256xf32>
    %789 = arith.addf %787, %788 : vector<1x256xf32>
    %790 = vector.extract_strided_slice %789 {offsets = [0, 0], sizes = [1, 192], strides = [1, 1]} : vector<1x256xf32> to vector<1x192xf32>
    %791 = arith.negf %790 : vector<1x192xf32>
    %792 = math.exp %791 : vector<1x192xf32>
    %cst_200 = arith.constant 1.000000e+00 : f32
    %793 = vector.broadcast %cst_200 : f32 to vector<1x192xf32>
    %794 = arith.addf %793, %792 : vector<1x192xf32>
    %795 = arith.divf %793, %794 : vector<1x192xf32>
    %796 = vector.extract_strided_slice %789 {offsets = [0, 192], sizes = [1, 64], strides = [1, 1]} : vector<1x256xf32> to vector<1x64xf32>
    %797 = math.tanh %796 : vector<1x64xf32>
    %798 = vector.extract_strided_slice %795 {offsets = [0, 0], sizes = [1, 64], strides = [1, 1]} : vector<1x192xf32> to vector<1x64xf32>
    %799 = vector.extract_strided_slice %795 {offsets = [0, 64], sizes = [1, 64], strides = [1, 1]} : vector<1x192xf32> to vector<1x64xf32>
    %800 = vector.extract_strided_slice %795 {offsets = [0, 128], sizes = [1, 64], strides = [1, 1]} : vector<1x192xf32> to vector<1x64xf32>
    %801 = arith.mulf %799, %782 : vector<1x64xf32>
    %802 = arith.mulf %798, %797 : vector<1x64xf32>
    %803 = arith.addf %801, %802 : vector<1x64xf32>
    %804 = math.tanh %803 : vector<1x64xf32>
    %805 = arith.mulf %800, %804 : vector<1x64xf32>
    %806 = vector.extract_strided_slice %674 {offsets = [6, 0], sizes = [1, 256], strides = [1, 1]} : vector<8x256xf32> to vector<1x256xf32>
    %807 = vector.extract_strided_slice %676 {offsets = [1, 0], sizes = [1, 256], strides = [1, 1]} : vector<8x256xf32> to vector<1x256xf32>
    %808 = arith.addf %806, %807 : vector<1x256xf32>
    %cst_201 = arith.constant dense<0.000000e+00> : vector<1x256xf32>
    %809 = tpu.matmul %805, %677, %cst_201 {dimension_numbers = #tpu.dot_dimension_numbers<[1], [0], [0], [1], [0, 0, 1, 1], [], []>} : vector<1x64xf32>, vector<64x256xf32>, vector<1x256xf32> -> vector<1x256xf32>
    %810 = arith.addf %808, %809 : vector<1x256xf32>
    %811 = vector.extract_strided_slice %810 {offsets = [0, 0], sizes = [1, 192], strides = [1, 1]} : vector<1x256xf32> to vector<1x192xf32>
    %812 = arith.negf %811 : vector<1x192xf32>
    %813 = math.exp %812 : vector<1x192xf32>
    %cst_202 = arith.constant 1.000000e+00 : f32
    %814 = vector.broadcast %cst_202 : f32 to vector<1x192xf32>
    %815 = arith.addf %814, %813 : vector<1x192xf32>
    %816 = arith.divf %814, %815 : vector<1x192xf32>
    %817 = vector.extract_strided_slice %810 {offsets = [0, 192], sizes = [1, 64], strides = [1, 1]} : vector<1x256xf32> to vector<1x64xf32>
    %818 = math.tanh %817 : vector<1x64xf32>
    %819 = vector.extract_strided_slice %816 {offsets = [0, 0], sizes = [1, 64], strides = [1, 1]} : vector<1x192xf32> to vector<1x64xf32>
    %820 = vector.extract_strided_slice %816 {offsets = [0, 64], sizes = [1, 64], strides = [1, 1]} : vector<1x192xf32> to vector<1x64xf32>
    %821 = vector.extract_strided_slice %816 {offsets = [0, 128], sizes = [1, 64], strides = [1, 1]} : vector<1x192xf32> to vector<1x64xf32>
    %822 = arith.mulf %820, %803 : vector<1x64xf32>
    %823 = arith.mulf %819, %818 : vector<1x64xf32>
    %824 = arith.addf %822, %823 : vector<1x64xf32>
    %825 = math.tanh %824 : vector<1x64xf32>
    %826 = arith.mulf %821, %825 : vector<1x64xf32>
    %827 = vector.extract_strided_slice %674 {offsets = [7, 0], sizes = [1, 256], strides = [1, 1]} : vector<8x256xf32> to vector<1x256xf32>
    %828 = vector.extract_strided_slice %676 {offsets = [0, 0], sizes = [1, 256], strides = [1, 1]} : vector<8x256xf32> to vector<1x256xf32>
    %829 = arith.addf %827, %828 : vector<1x256xf32>
    %cst_203 = arith.constant dense<0.000000e+00> : vector<1x256xf32>
    %830 = tpu.matmul %826, %677, %cst_203 {dimension_numbers = #tpu.dot_dimension_numbers<[1], [0], [0], [1], [0, 0, 1, 1], [], []>} : vector<1x64xf32>, vector<64x256xf32>, vector<1x256xf32> -> vector<1x256xf32>
    %831 = arith.addf %829, %830 : vector<1x256xf32>
    %832 = vector.extract_strided_slice %831 {offsets = [0, 0], sizes = [1, 192], strides = [1, 1]} : vector<1x256xf32> to vector<1x192xf32>
    %833 = arith.negf %832 : vector<1x192xf32>
    %834 = math.exp %833 : vector<1x192xf32>
    %cst_204 = arith.constant 1.000000e+00 : f32
    %835 = vector.broadcast %cst_204 : f32 to vector<1x192xf32>
    %836 = arith.addf %835, %834 : vector<1x192xf32>
    %837 = arith.divf %835, %836 : vector<1x192xf32>
    %838 = vector.extract_strided_slice %831 {offsets = [0, 192], sizes = [1, 64], strides = [1, 1]} : vector<1x256xf32> to vector<1x64xf32>
    %839 = math.tanh %838 : vector<1x64xf32>
    %840 = vector.extract_strided_slice %837 {offsets = [0, 0], sizes = [1, 64], strides = [1, 1]} : vector<1x192xf32> to vector<1x64xf32>
    %841 = vector.extract_strided_slice %837 {offsets = [0, 64], sizes = [1, 64], strides = [1, 1]} : vector<1x192xf32> to vector<1x64xf32>
    %842 = vector.extract_strided_slice %837 {offsets = [0, 128], sizes = [1, 64], strides = [1, 1]} : vector<1x192xf32> to vector<1x64xf32>
    %843 = arith.mulf %841, %824 : vector<1x64xf32>
    %844 = arith.mulf %840, %839 : vector<1x64xf32>
    %845 = arith.addf %843, %844 : vector<1x64xf32>
    %846 = math.tanh %845 : vector<1x64xf32>
    %847 = arith.mulf %842, %846 : vector<1x64xf32>
    %848 = tpu.concatenate %700, %721, %742, %763, %784, %805, %826, %847 in 0 : vector<1x64xf32>, vector<1x64xf32>, vector<1x64xf32>, vector<1x64xf32>, vector<1x64xf32>, vector<1x64xf32>, vector<1x64xf32>, vector<1x64xf32> -> vector<8x64xf32>
    %849 = tpu.concatenate %847, %826, %805, %784, %763, %742, %721, %700 in 0 : vector<1x64xf32>, vector<1x64xf32>, vector<1x64xf32>, vector<1x64xf32>, vector<1x64xf32>, vector<1x64xf32>, vector<1x64xf32>, vector<1x64xf32> -> vector<8x64xf32>
    %850 = vector.extract_strided_slice %848 {offsets = [0, 0], sizes = [8, 32], strides = [1, 1]} : vector<8x64xf32> to vector<8x32xf32>
    %c0_205 = arith.constant 0 : index
    %c0_206 = arith.constant 0 : index
    %851 = vector.load %arg10[%c0_205, %c0_206] : memref<64x128xf32, #tpu.memory_space<vmem>>, vector<32x128xf32>
    %cst_207 = arith.constant dense<0.000000e+00> : vector<8x128xf32>
    %852 = tpu.matmul %850, %851, %cst_207 {dimension_numbers = #tpu.dot_dimension_numbers<[1], [0], [0], [1], [0, 0, 1, 1], [], []>} : vector<8x32xf32>, vector<32x128xf32>, vector<8x128xf32> -> vector<8x128xf32>
    %853 = vector.extract_strided_slice %849 {offsets = [0, 32], sizes = [8, 32], strides = [1, 1]} : vector<8x64xf32> to vector<8x32xf32>
    %c32 = arith.constant 32 : index
    %c0_208 = arith.constant 0 : index
    %854 = vector.load %arg10[%c32, %c0_208] : memref<64x128xf32, #tpu.memory_space<vmem>>, vector<32x128xf32>
    %cst_209 = arith.constant dense<0.000000e+00> : vector<8x128xf32>
    %855 = tpu.matmul %853, %854, %cst_209 {dimension_numbers = #tpu.dot_dimension_numbers<[1], [0], [0], [1], [0, 0, 1, 1], [], []>} : vector<8x32xf32>, vector<32x128xf32>, vector<8x128xf32> -> vector<8x128xf32>
    %856 = arith.addf %852, %855 : vector<8x128xf32>
    %c0_210 = arith.constant 0 : index
    %c0_211 = arith.constant 0 : index
    %857 = vector.load %arg11[%c0_210, %c0_211] : memref<1x128xf32, #tpu.memory_space<vmem>>, vector<1x128xf32>
    %858 = vector.broadcast %857 : vector<1x128xf32> to vector<8x128xf32>
    %859 = arith.addf %856, %858 : vector<8x128xf32>
    %c0_212 = arith.constant 0 : index
    %c0_213 = arith.constant 0 : index
    %860 = vector.load %arg12[%c0_212, %c0_213] : memref<8x128xf32, #tpu.memory_space<vmem>>, vector<8x128xf32>
    tpu.vector_store %arg12[%c0_212, %c0_213], %859 {strides = array<i32>} : memref<8x128xf32, #tpu.memory_space<vmem>>, vector<8x128xf32>,
    return
  }
}

</mosaic_0001>

<bundles_post_ra>
// kernel: ts_model_forward.1
= control target key start
LH: loop header
LB: loop body
LE: loop exit
PB: predicated region body
PF: predicated region fallthrough
CT: control target
= control target key end

     0   :  { %17 = vsyncpa [#allocation3], 0  ;;  %s7686_s0 = inlined_call_operand.vmem [shape: f32[64,64], index: 0, kind: input, shape index: {}]   ;;  %s7687_s1 = inlined_call_operand.vmem [shape: f32[8,8,64], index: 1, kind: input, shape index: {}]   ;;  %s7688_s2 = inlined_call_operand.hbm [shape: f32[128,256], index: 2, kind: input, shape index: {}]   ;;  %s7689_s3 = inlined_call_operand.vmem [shape: f32[1,256], index: 3, kind: input, shape index: {}]   ;;  %s7690_s4 = inlined_call_operand.vmem [shape: f32[192,256], index: 4, kind: input, shape index: {}]   ;;  %s7691_s5 = inlined_call_operand.vmem [shape: f32[1,256], index: 5, kind: input, shape index: {}]   ;;  %s7692_s6 = inlined_call_operand.vmem [shape: f32[192,256], index: 6, kind: input, shape index: {}]   ;;  %s7693_s7 = inlined_call_operand.vmem [shape: f32[1,256], index: 7, kind: input, shape index: {}]   ;;  %s7694_s8 = inlined_call_operand.hbm [shape: f32[192,256], index: 8, kind: input, shape index: {}]   ;;  %s7695_s9 = inlined_call_operand.vmem [shape: f32[1,256], index: 9, kind: input, shape index: {}]   ;;  %s7696_s10 = inlined_call_operand.hbm [shape: f32[64,128], index: 10, kind: input, shape index: {}]   ;;  %s7697_s11 = inlined_call_operand.vmem [shape: f32[1,128], index: 11, kind: input, shape index: {}]   ;;  %s7698_s12 = inlined_call_operand.vmem [shape: f32[8,128], index: 12, kind: output, shape index: {}]  }
   0x1   :  { %18 = vsyncpa [#allocation5], 0  ;;  %s6300_s21 = smov [#allocation4]   ;;  %s6301_s23 = smov [#allocation2]  }
   0x2   :  { %s50_s22 = sshll.u32 %s6300_s21, 4  ;;  %s28_s24 = sshll.u32 %s6301_s23, 4  ;;  %s51_s22 = int_to_ptr.vmem [resolvable:$true] %s50_s22  ;;  %s6377_s24 = int_to_ptr.vmem [resolvable:$true] %s28_s24 }
   0x3   :  { %s6230_s27 = scalar_lea.hbm %s7694_s8, 6144 }
   0x4   :  { %p6231_p0 = scmp.ne.s32.totalorder %s7694_s8, %s6230_s27  ;;  %p6234_p1 = scmp.lt.u32.totalorder %s6230_s27, %s7694_s8 }
   0x6   :  { %p6236_p2 = pnand %p6234_p1, %p6231_p0 }
   0x8   :  { %6239 = shalt.err (!%p6236_p2)
}
   0x9   :  { %s6240_s14 = scalar_lea.vmem %s51_s22, 6144  ;;  %p6245_p4 = scmp.lt.s32.totalorder %s51_s22, %s51_s22 }
   0xa   :  { %p6241_p3 = scmp.ne.s32.totalorder %s51_s22, %s6240_s14  ;;  %p6246_p5 = scmp.lt.s32.totalorder %s6240_s14, %s6240_s14 }
   0xc   :  { %p6247_p6 = por %p6246_p5, %p6245_p4 }
   0xe   :  { %p6248_p7 = pnand %p6247_p6, %p6241_p3 }
  0x10   :  { %6251 = shalt.err (!%p6248_p7)
}
  0x11   :  { %s6302_s15 = smov 256   ;;  %s6303_s16 = smov 16  }
  0x12   :  { %56 = dma.hbm_to_vmem [thread:$0]  %s7694_s8, 6144, %s51_s22, [#allocation5], %s6302_s15, %s6302_s15, %s6303_s16  }
  0x13   :  { %s6252_s21 = scalar_lea.hbm %s7688_s2, 4096 }
  0x14   :  { %p6253_p8 = scmp.ne.s32.totalorder %s7688_s2, %s6252_s21  ;;  %p6256_p9 = scmp.lt.u32.totalorder %s6252_s21, %s7688_s2 }
  0x16   :  { %p6258_p10 = pnand %p6256_p9, %p6253_p8 }
  0x18   :  { %6261 = shalt.err (!%p6258_p10)
}
  0x19   :  { %s6262_s28 = scalar_lea.vmem %s6377_s24, 4096  ;;  %p6267_p12 = scmp.lt.s32.totalorder %s6377_s24, %s6377_s24 }
  0x1a   :  { %p6263_p11 = scmp.ne.s32.totalorder %s6377_s24, %s6262_s28  ;;  %p6268_p13 = scmp.lt.s32.totalorder %s6262_s28, %s6262_s28 }
  0x1c   :  { %p6269_p0 = por %p6268_p13, %p6267_p12 }
  0x1e   :  { %p6270_p1 = pnand %p6269_p0, %p6263_p11 }
  0x20   :  { %6273 = shalt.err (!%p6270_p1)
}
  0x21   :  { %34 = dma.hbm_to_vmem [thread:$0]  %s7688_s2, 4096, %s6377_s24, [#allocation3], %s6302_s15, %s6302_s15, %s6303_s16  }
  0x22   :  { %s6304_s29 = smov [#allocation6]   ;;  %s6274_s17 = scalar_lea.hbm %s7696_s10, 1024 }
  0x23   :  { %s64_s30 = sshll.u32 %s6304_s29, 4  ;;  %p6275_p2 = scmp.ne.s32.totalorder %s7696_s10, %s6274_s17  ;;  %s65_s30 = int_to_ptr.vmem [resolvable:$true] %s64_s30 }
  0x24   :  { %p6278_p3 = scmp.lt.u32.totalorder %s6274_s17, %s7696_s10 }
  0x26   :  { %p6280_p4 = pnand %p6278_p3, %p6275_p2 }
  0x28   :  { %6283 = shalt.err (!%p6280_p4)
}
  0x29   :  { %s6284_s23 = scalar_lea.vmem %s65_s30, 1024  ;;  %p6289_p6 = scmp.lt.s32.totalorder %s65_s30, %s65_s30 }
  0x2a   :  { %p6285_p5 = scmp.ne.s32.totalorder %s65_s30, %s6284_s23  ;;  %p6290_p7 = scmp.lt.s32.totalorder %s6284_s23, %s6284_s23 }
  0x2c   :  { %p6291_p8 = por %p6290_p7, %p6289_p6 }
  0x2e   :  { %p6292_p9 = pnand %p6291_p8, %p6285_p5 }
  0x30   :  { %6295 = shalt.err (!%p6292_p9)
}
  0x31   :  { %s6305_s2 = smov 128   ;;  %s6306_s24 = smov 8  }
  0x32   :  { %70 = dma.hbm_to_vmem [thread:$0]  %s7696_s10, 1024, %s65_s30, [#allocation5], %s6305_s2, %s6305_s2, %s6306_s24  }
  0x33   :  { %6296 = dma.done.wait [#allocation3], 4096  }
  0x34   :  { %6297 = vsyncadd [#allocation3], 4294963200 }
  0x35   :  { %6298 = dma.done.wait [#allocation5], 7168  }
  0x36   :  { %6299 = vsyncadd [#allocation5], 4294960128  ;;  %v6307_v0 = vmov 0.0   ;;  %v91_v1 = vld [vmem:[#allocation2 + $0x8] sm:$0xff]  ;;  %v93_v2 = vld [vmem:[#allocation2 + $0x18] sm:$0xff]  ;;  %vm118_vm0 = vcmask 523264   ;;  %v108_v57 = vlaneseq }
  0x37   :  { %207 = vmatprep.mubr.f32.mxu0 %v6307_v0  ;;  %1309 = vmatprep.mubr.f32.mxu1 %v6307_v0  ;;  %v90_v3 = vld [vmem:[#allocation2] sm:$0xff]  ;;  %v5118_v4 = vpack.c.bf16 %v93_v2, %v91_v1  ;;  %v92_v5 = vld [vmem:[#allocation2 + $0x10] sm:$0xff]  ;;  %v95_v6 = vld [vmem:[#allocation2 + $0x28] sm:$0xff]  ;;  %s6308_s2 = smov 64   ;;  %vm3594_vm9 = vcmask 1040384   ;;  %vm3596_vm10 = vcmask 1041408  }
  0x38   :  { %v97_v7 = vld [vmem:[#allocation2 + $0x38] sm:$0xff]  ;;  %v5120_v8 = vpack.c.bf16 %v92_v5, %v90_v3  ;;  %v94_v10 = vld [vmem:[#allocation2 + $0x20] sm:$0xff]  ;;  %v96_v11 = vld [vmem:[#allocation2 + $0x30] sm:$0xff]  ;;  %v109_v58 = vshrl.u32 %v108_v57, 7  ;;  %vm3598_vm11 = vcmask 1042432   ;;  %vm3600_vm12 = vcmask 1043456  }
  0x39   :  { %v5122_v9 = vpack.c.bf16 %v97_v7, %v95_v6  ;;  %v99_v12 = vld [vmem:[#allocation2 + $0x48] sm:$0xff]  ;;  %5119 = vmatprep.subr.bf16.mxu0 %v5118_v4  ;;  %v101_v13 = vld [vmem:[#allocation2 + $0x58] sm:$0xff]  ;;  %v5124_v14 = vpack.c.bf16 %v96_v11, %v94_v10  ;;  %v98_v16 = vld [vmem:[#allocation2 + $0x40] sm:$0xff]  ;;  %vm3602_vm13 = vcmask 1044480   ;;  %vm3604_vm14 = vcmask 1045504  }
  0x3a   :  { %5121 = vmatpush1.bf16.msra.mxu0 %v5120_v8  ;;  %v5126_v15 = vpack.c.bf16 %v101_v13, %v99_v12  ;;  %v100_v17 = vld [vmem:[#allocation2 + $0x50] sm:$0xff]  ;;  %v103_v18 = vld [vmem:[#allocation2 + $0x68] sm:$0xff]  ;;  %v105_v19 = vld [vmem:[#allocation2 + $0x78] sm:$0xff]  ;;  %v6497_v59 = vsub.s32 1, %v109_v58  ;;  %v6507_v3 = vsub.s32 0, %v109_v58  ;;  %vm3606_vm15 = vcmask 1046528  }
  0x3b   :  { %5123 = vmatprep.subr.bf16.mxu0 %v5122_v9  ;;  %v5128_v20 = vpack.c.bf16 %v100_v17, %v98_v16  ;;  %v5130_v21 = vpack.c.bf16 %v105_v19, %v103_v18  ;;  %v102_v22 = vld [vmem:[#allocation2 + $0x60] sm:$0xff]  ;;  %v104_v23 = vld [vmem:[#allocation2 + $0x70] sm:$0xff]  ;;  %v257_v24 = vld [vmem:[#allocation2 + $0x88] sm:$0xff] }
  0x3c   :  { %v259_v25 = vld [vmem:[#allocation2 + $0x98] sm:$0xff]  ;;  %v5132_v26 = vpack.c.bf16 %v104_v23, %v102_v22  ;;  %v256_v28 = vld [vmem:[#allocation2 + $0x80] sm:$0xff]  ;;  %v258_v29 = vld [vmem:[#allocation2 + $0x90] sm:$0xff] }
  0x3d   :  { %v6422_v27 = vpack.c.bf16 %v259_v25, %v257_v24  ;;  %v261_v30 = vld [vmem:[#allocation2 + $0xa8] sm:$0xff]  ;;  %v263_v31 = vld [vmem:[#allocation2 + $0xb8] sm:$0xff]  ;;  %v82_v32 = vld [vmem:[%s7686_s0] sm:$0xff]  ;;  %v6427_v33 = vpack.c.bf16 %v258_v29, %v256_v28 }
  0x3e   :  { %5125 = vmatpush1.bf16.msra.mxu0 %v5124_v14  ;;  %v6430_v34 = vpack.c.bf16 %v263_v31, %v261_v30  ;;  %v260_v35 = vld [vmem:[#allocation2 + $0xa0] sm:$0xff]  ;;  %v262_v36 = vld [vmem:[#allocation2 + $0xb0] sm:$0xff]  ;;  %v265_v37 = vld [vmem:[#allocation2 + $0xc8] sm:$0xff] }
  0x3f   :  { %5127 = vmatprep.subr.bf16.mxu0 %v5126_v15  ;;  %v267_v38 = vld [vmem:[#allocation2 + $0xd8] sm:$0xff]  ;;  %v83_v39 = vld [vmem:[%s7686_s0 + $0x8] sm:$0xff]  ;;  %v6438_v40 = vpack.c.bf16 %v262_v36, %v260_v35  ;;  %v264_v42 = vld [vmem:[#allocation2 + $0xc0] sm:$0xff] }
  0x40   :  { %v6441_v41 = vpack.c.bf16 %v267_v38, %v265_v37  ;;  %v266_v43 = vld [vmem:[#allocation2 + $0xd0] sm:$0xff]  ;;  %v269_v44 = vld [vmem:[#allocation2 + $0xe8] sm:$0xff]  ;;  %v271_v45 = vld [vmem:[#allocation2 + $0xf8] sm:$0xff] }
  0x41   :  { %v84_v46 = vld [vmem:[%s7686_s0 + $0x10] sm:$0xff]  ;;  %v6449_v47 = vpack.c.bf16 %v266_v43, %v264_v42  ;;  %v6452_v48 = vpack.c.bf16 %v271_v45, %v269_v44  ;;  %v268_v49 = vld [vmem:[#allocation2 + $0xe0] sm:$0xff]  ;;  %v85_v51 = vld [vmem:[%s7686_s0 + $0x18] sm:$0xff] }
  0x42   :  { %5129 = vmatpush1.bf16.msra.mxu0 %v5128_v20  ;;  %v270_v50 = vld [vmem:[#allocation2 + $0xf0] sm:$0xff]  ;;  %v86_v53 = vld [vmem:[%s7686_s0 + $0x20] sm:$0xff]  ;;  %v87_v54 = vld [vmem:[%s7686_s0 + $0x28] sm:$0xff] }
  0x43   :  { %5131 = vmatprep.subr.bf16.mxu0 %v5130_v21  ;;  %v6460_v52 = vpack.c.bf16 %v270_v50, %v268_v49  ;;  %v88_v55 = vld [vmem:[%s7686_s0 + $0x30] sm:$0xff]  ;;  %v89_v56 = vld [vmem:[%s7686_s0 + $0x38] sm:$0xff]  ;;  %v106_v60 = vld [vmem:[%s7689_s3] sm:$0x3] }
  0x44   :  { %v6503_v61 = vrot.slane %v106_v60, %v6497_v59  ;;  %v6510_v4 = vrot.slane %v106_v60, %v6507_v3  ;;  %v1215_v12 = vld [vmem:[%s7690_s4 + $0x8] sm:$0xff]  ;;  %v1217_v13 = vld [vmem:[%s7690_s4 + $0x18] sm:$0xff]  ;;  %v1214_v14 = vld [vmem:[%s7690_s4] sm:$0xff] }
  0x45   :  { %v5262_v15 = vpack.c.bf16 %v1217_v13, %v1215_v12  ;;  %v1216_v16 = vld [vmem:[%s7690_s4 + $0x10] sm:$0xff]  ;;  %v1219_v17 = vld [vmem:[%s7690_s4 + $0x28] sm:$0xff]  ;;  %v1221_v18 = vld [vmem:[%s7690_s4 + $0x38] sm:$0xff] }
  0x46   :  { %5133 = vmatpush1.bf16.msra.mxu0 %v5132_v26  ;;  %v5264_v19 = vpack.c.bf16 %v1216_v16, %v1214_v14  ;;  %v5266_v20 = vpack.c.bf16 %v1221_v18, %v1219_v17  ;;  %v1218_v21 = vld [vmem:[%s7690_s4 + $0x20] sm:$0xff]  ;;  %v1220_v22 = vld [vmem:[%s7690_s4 + $0x30] sm:$0xff]  ;;  %v1223_v23 = vld [vmem:[%s7690_s4 + $0x48] sm:$0xff] }
  0x47   :  { %5135 = vmatprep.subr.bf16.mxu0 %v6422_v27  ;;  %5263 = vmatprep.subr.bf16.mxu1 %v5262_v15  ;;  %v1225_v24 = vld [vmem:[%s7690_s4 + $0x58] sm:$0xff]  ;;  %v5268_v25 = vpack.c.bf16 %v1220_v22, %v1218_v21  ;;  %v1222_v28 = vld [vmem:[%s7690_s4 + $0x40] sm:$0xff]  ;;  %v1224_v29 = vld [vmem:[%s7690_s4 + $0x50] sm:$0xff] }
  0x48   :  { %5265 = vmatpush1.bf16.msra.mxu1 %v5264_v19  ;;  %v5270_v26 = vpack.c.bf16 %v1225_v24, %v1223_v23  ;;  %v1227_v30 = vld [vmem:[%s7690_s4 + $0x68] sm:$0xff]  ;;  %v1229_v31 = vld [vmem:[%s7690_s4 + $0x78] sm:$0xff]  ;;  %v1226_v36 = vld [vmem:[%s7690_s4 + $0x60] sm:$0xff] }
  0x49   :  { %4956 = vmatmul.mubr.msk.f32.vlgmr.msra.gmra.mrb[0].mxu0 %vm118_vm0, %v82_v32  ;;  %5267 = vmatprep.subr.bf16.mxu1 %v5266_v20  ;;  %v5272_v32 = vpack.c.bf16 %v1224_v29, %v1222_v28  ;;  %v5274_v35 = vpack.c.bf16 %v1229_v31, %v1227_v30  ;;  %v1228_v37 = vld [vmem:[%s7690_s4 + $0x70] sm:$0xff]  ;;  %v6567_v50 = vld [vmem:[%s7687_s1] sm:$0xff]  ;;  %v6600_v17 = vld [vmem:[%s7687_s1 + $0x8] sm:$0xff] }
  0x4a   :  { %5137 = vmatpush1.bf16.msra.mxu0 %v6427_v33  ;;  %213 = vmatprep.mubr.f32.mxu0 %v6307_v0  ;;  %vm379_vm1 = vcmp.gt.f32.partialorder %v6567_v50, 0.0  ;;  %vm498_vm2 = vcmp.gt.f32.partialorder %v6600_v17, 0.0 }
  0x4b   :  { %5139 = vmatprep.subr.bf16.mxu0 %v6430_v34 }
  0x4c   :  { %5269 = vmatpush1.bf16.msra.mxu1 %v5268_v25 }
  0x4d   :  { %4957 = vmatmul.mubr.msk.f32.gmra.mrb[2].mxu0 %vm118_vm0, %v83_v39  ;;  %5271 = vmatprep.subr.bf16.mxu1 %v5270_v26  ;;  %v5276_v39 = vpack.c.bf16 %v1228_v37, %v1226_v36 }
  0x4e   :  { %219 = vmatprep.mubr.f32.mxu0 %v6307_v0  ;;  %5141 = vmatpush1.bf16.msra.mxu0 %v6438_v40 }
  0x4f   :  { %5143 = vmatprep.subr.bf16.mxu0 %v6441_v41 }
  0x50   :  { %5273 = vmatpush1.bf16.msra.mxu1 %v5272_v32 }
  0x51   :  { %4958 = vmatmul.mubr.msk.f32.gmra.mrb[4].mxu0 %vm118_vm0, %v84_v46  ;;  %5275 = vmatprep.subr.bf16.mxu1 %v5274_v35 }
  0x52   :  { %225 = vmatprep.mubr.f32.mxu0 %v6307_v0  ;;  %5145 = vmatpush1.bf16.msra.mxu0 %v6449_v47 }
  0x53   :  { %5147 = vmatprep.subr.bf16.mxu0 %v6452_v48 }
  0x54   :  { %5277 = vmatpush1.bf16.msra.mxu1 %v5276_v39 }
  0x55   :  { %4959 = vmatmul.mubr.msk.f32.gmra.mrb[6].mxu0 %vm118_vm0, %v85_v51 }
  0x56   :  { %231 = vmatprep.mubr.f32.mxu0 %v6307_v0  ;;  %5149 = vmatpush1.bf16.msra.mxu0 %v6460_v52 }
  0x57   :  { %5151 = vmatprep.subr.bf16.mxu0 %v6422_v27 }
  0x59   :  { %4960 = vmatmul.mubr.msk.f32.gmra.mrb[8].mxu0 %vm118_vm0, %v86_v53 }
  0x5a   :  { %237 = vmatprep.mubr.f32.mxu0 %v6307_v0 }
  0x5d   :  { %4961 = vmatmul.mubr.msk.f32.gmra.mrb[10].mxu0 %vm118_vm0, %v87_v54 }
  0x5e   :  { %243 = vmatprep.mubr.f32.mxu0 %v6307_v0 }
  0x61   :  { %4962 = vmatmul.mubr.msk.f32.gmra.mrb[12].mxu0 %vm118_vm0, %v88_v55 }
  0x62   :  { %249 = vmatprep.mubr.f32.mxu0 %v6307_v0 }
  0x65   :  { %4963 = vmatmul.mubr.msk.f32.gmra.mrb[14].mxu0 %vm118_vm0, %v89_v56 }
  0x66   :  { %339 = vmatprep.mubr.f32.mxu0 %v6307_v0 }
  0x69   :  { %340 = vmatmul.mubr.f32.vlgmr.msra.gmra.mrb[0].mxu0 %v6307_v0 }
  0x6a   :  { %5153 = vmatpush1.bf16.msra.mxu0 %v6427_v33  ;;  %453 = vmatprep.mubr.f32.mxu0 %v6307_v0 }
  0x6b   :  { %5155 = vmatprep.subr.bf16.mxu0 %v6430_v34 }
  0x6e   :  { %5157 = vmatpush1.bf16.msra.mxu0 %v6438_v40 }
  0x6f   :  { %5159 = vmatprep.subr.bf16.mxu0 %v6441_v41 }
  0x72   :  { %5161 = vmatpush1.bf16.msra.mxu0 %v6449_v47 }
  0x73   :  { %5163 = vmatprep.subr.bf16.mxu0 %v6452_v48 }
  0x76   :  { %5165 = vmatpush1.bf16.msra.mxu0 %v6460_v52 }
  0x77   :  { %5167 = vmatprep.subr.bf16.mxu0 %v6422_v27 }
 0x13c   :  { %v341_v62 = vpop.f32.mrb[0].mxu0 }
 0x13d   :  { %v343_v63 = vpop.f32.mrb[1].mxu0  ;;  %v5754_v5 = vadd.f32 %v341_v62, %v6510_v4 }
 0x13e   :  { %v5755_v1 = vadd.f32 %v343_v63, %v6503_v61 }
 0x13f   :  { %v4964_v6 = vmul.f32 -1.442695, %v5754_v5 }
 0x140   :  { %5846 = vtanh.f32 %v5755_v1  ;;  %v4965_v45 = vmul.f32 -1.442695, %v5755_v1 }
 0x141   :  { %5848 = vpow2.f32 %v4964_v6 }
 0x14a   :  { %v5847_v2 = vpop.eup %5846 }
 0x14b   :  { %363 = vrot.lane.b32.xlu0 %v5847_v2, %s6308_s2  ;;  %v5849_v7 = vpop.eup %5848 }
 0x14c   :  { %v354_v8 = vadd.f32 1.0, %v5849_v7 }
 0x14e   :  { %5850 = vrcp.f32 %v354_v8 }
 0x158   :  { %v5851_v9 = vpop.eup %5850 }
 0x159   :  { %v361_v38 = vmul.f32 0.0, %v5851_v9 }
 0x1bd   :  { %v364_v10 = vpop.permute.xlu0 %363 }
 0x1be   :  { %v366_v11 = vmul.f32 %v5851_v9, %v364_v10 }
 0x1c0   :  { %368 = vrot.lane.b32.xlu0 %v366_v11, %s6308_s2 }
 0x232   :  { %v369_v42 = vpop.permute.xlu0 %368 }
 0x233   :  { %v371_v43 = vadd.f32 %v369_v42, %v361_v38 }
 0x235   :  { %5852 = vtanh.f32 %v371_v43 }
 0x236   :  { %5854 = vpow2.f32 %v4965_v45 }
 0x23f   :  { %v5853_v44 = vpop.eup %5852 }
 0x240   :  { %374 = vrot.lane.b32.xlu1 %v5853_v44, %s6308_s2  ;;  %v5855_v46 = vpop.eup %5854 }
 0x241   :  { %v355_v49 = vadd.f32 1.0, %v5855_v46 }
 0x243   :  { %5856 = vrcp.f32 %v355_v49 }
 0x244   :  { %381 = vrot.lane.b32.xlu1 %v371_v43, %s6308_s2 }
 0x24d   :  { %v5857_v51 = vpop.eup %5856 }
 0x2b2   :  { %v375_v53 = vpop.permute.xlu1 %374 }
 0x2b3   :  { %v377_v54 = vmul.f32 %v5857_v51, %v375_v53  ;;  %v6634_v51 = vld [vmem:[%s7687_s1 + $0x10] sm:$0xff] }
 0x2b4   :  { %vm617_vm3 = vcmp.gt.f32.partialorder %v6634_v51, 0.0 }
 0x2b5   :  { %v6572_v55 = vsel %vm379_vm1, %v377_v54, 0.0 }
 0x2b6   :  { %v382_v56 = vpop.permute.xlu1 %381  ;;  %4966 = vmatmul.mubr.msk.f32.vlgmr.msra.gmra.mrb[2].mxu0 %vm118_vm0, %v6572_v55  ;;  %4994 = vmatmul.mubr.msk.f32.vlgmr.msra.gmra.mrb[0].mxu1 %vm118_vm0, %v6572_v55 }
 0x2b7   :  { %v384_v57 = vsel %vm379_vm1, %v382_v56, 0.0  ;;  %5169 = vmatpush1.bf16.msra.mxu0 %v6427_v33  ;;  %572 = vmatprep.mubr.f32.mxu0 %v6307_v0 }
 0x2b8   :  { %476 = vrot.lane.b32.xlu1 %v384_v57, %s6308_s2  ;;  %5171 = vmatprep.subr.bf16.mxu0 %v6430_v34 }
 0x2b9   :  { %1315 = vmatprep.mubr.f32.mxu1 %v6307_v0 }
 0x2bb   :  { %5173 = vmatpush1.bf16.msra.mxu0 %v6438_v40 }
 0x2bc   :  { %5175 = vmatprep.subr.bf16.mxu0 %v6441_v41 }
 0x2bf   :  { %5177 = vmatpush1.bf16.msra.mxu0 %v6449_v47 }
 0x2c0   :  { %5179 = vmatprep.subr.bf16.mxu0 %v6452_v48 }
 0x2c3   :  { %5181 = vmatpush1.bf16.msra.mxu0 %v6460_v52 }
 0x2c4   :  { %5183 = vmatprep.subr.bf16.mxu0 %v6422_v27 }
 0x32a   :  { %v477_v10 = vpop.permute.xlu1 %476 }
 0x389   :  { %v455_v58 = vpop.f32.mrb[2].mxu0 }
 0x38a   :  { %v457_v60 = vpop.f32.mrb[3].mxu0  ;;  %v5756_v1 = vadd.f32 %v455_v58, %v6510_v4 }
 0x38b   :  { %v5757_v62 = vadd.f32 %v457_v60, %v6503_v61 }
 0x38c   :  { %v4967_v2 = vmul.f32 -1.442695, %v5756_v1 }
 0x38d   :  { %5858 = vtanh.f32 %v5757_v62  ;;  %v4968_v15 = vmul.f32 -1.442695, %v5757_v62 }
 0x38e   :  { %5860 = vpow2.f32 %v4967_v2 }
 0x397   :  { %v5859_v63 = vpop.eup %5858 }
 0x398   :  { %481 = vrot.lane.b32.xlu0 %v5859_v63, %s6308_s2  ;;  %v5861_v5 = vpop.eup %5860 }
 0x399   :  { %v468_v6 = vadd.f32 1.0, %v5861_v5 }
 0x39b   :  { %5862 = vrcp.f32 %v468_v6 }
 0x3a5   :  { %v5863_v7 = vpop.eup %5862 }
 0x3a6   :  { %v479_v11 = vmul.f32 %v5863_v7, %v477_v10 }
 0x40a   :  { %v482_v8 = vpop.permute.xlu0 %481 }
 0x40b   :  { %v484_v9 = vmul.f32 %v5863_v7, %v482_v8 }
 0x40d   :  { %486 = vrot.lane.b32.xlu0 %v484_v9, %s6308_s2 }
 0x47f   :  { %v487_v12 = vpop.permute.xlu0 %486 }
 0x480   :  { %v489_v13 = vadd.f32 %v487_v12, %v479_v11 }
 0x482   :  { %5864 = vtanh.f32 %v489_v13  ;;  %500 = vrot.lane.b32.xlu0 %v489_v13, %s6308_s2 }
 0x483   :  { %5866 = vpow2.f32 %v4968_v15 }
 0x48c   :  { %v5865_v14 = vpop.eup %5864 }
 0x48d   :  { %492 = vrot.lane.b32.xlu1 %v5865_v14, %s6308_s2  ;;  %v5867_v16 = vpop.eup %5866 }
 0x48e   :  { %v469_v18 = vadd.f32 1.0, %v5867_v16 }
 0x490   :  { %5868 = vrcp.f32 %v469_v18 }
 0x49a   :  { %v5869_v21 = vpop.eup %5868 }
 0x4f4   :  { %v501_v19 = vpop.permute.xlu0 %500 }
 0x4f5   :  { %v503_v20 = vsel %vm498_vm2, %v501_v19, %v384_v57 }
 0x4f6   :  { %595 = vrot.lane.b32.xlu0 %v503_v20, %s6308_s2 }
 0x4ff   :  { %v493_v22 = vpop.permute.xlu1 %492 }
 0x500   :  { %v495_v23 = vmul.f32 %v5869_v21, %v493_v22  ;;  %v6668_v21 = vld [vmem:[%s7687_s1 + $0x18] sm:$0xff] }
 0x501   :  { %vm736_vm4 = vcmp.gt.f32.partialorder %v6668_v21, 0.0 }
 0x502   :  { %v6609_v24 = vsel %vm498_vm2, %v495_v23, %v6572_v55 }
 0x503   :  { %4970 = vmatmul.mubr.msk.f32.vlgmr.msra.gmra.mrb[4].mxu0 %vm118_vm0, %v6609_v24  ;;  %4995 = vmatmul.mubr.msk.f32.gmra.mrb[2].mxu1 %vm118_vm0, %v6609_v24 }
 0x504   :  { %5185 = vmatpush1.bf16.msra.mxu0 %v6427_v33  ;;  %691 = vmatprep.mubr.f32.mxu0 %v6307_v0 }
 0x505   :  { %5187 = vmatprep.subr.bf16.mxu0 %v6430_v34  ;;  %1321 = vmatprep.mubr.f32.mxu1 %v6307_v0 }
 0x508   :  { %5189 = vmatpush1.bf16.msra.mxu0 %v6438_v40 }
 0x509   :  { %5191 = vmatprep.subr.bf16.mxu0 %v6441_v41 }
 0x50c   :  { %5193 = vmatpush1.bf16.msra.mxu0 %v6449_v47 }
 0x50d   :  { %5195 = vmatprep.subr.bf16.mxu0 %v6452_v48 }
 0x510   :  { %5197 = vmatpush1.bf16.msra.mxu0 %v6460_v52 }
 0x511   :  { %5199 = vmatprep.subr.bf16.mxu0 %v6422_v27 }
 0x568   :  { %v596_v39 = vpop.permute.xlu0 %595 }
 0x5d6   :  { %v574_v25 = vpop.f32.mrb[4].mxu0 }
 0x5d7   :  { %v576_v26 = vpop.f32.mrb[5].mxu0  ;;  %v5758_v30 = vadd.f32 %v574_v25, %v6510_v4 }
 0x5d8   :  { %v5759_v28 = vadd.f32 %v576_v26, %v6503_v61 }
 0x5d9   :  { %v4971_v31 = vmul.f32 -1.442695, %v5758_v30 }
 0x5da   :  { %5870 = vtanh.f32 %v5759_v28  ;;  %v4972_v46 = vmul.f32 -1.442695, %v5759_v28 }
 0x5db   :  { %5872 = vpow2.f32 %v4971_v31 }
 0x5e4   :  { %v5871_v29 = vpop.eup %5870 }
 0x5e5   :  { %600 = vrot.lane.b32.xlu1 %v5871_v29, %s6308_s2  ;;  %v5873_v32 = vpop.eup %5872 }
 0x5e6   :  { %v587_v35 = vadd.f32 1.0, %v5873_v32 }
 0x5e8   :  { %5874 = vrcp.f32 %v587_v35 }
 0x5f2   :  { %v5875_v36 = vpop.eup %5874 }
 0x5f3   :  { %v598_v42 = vmul.f32 %v5875_v36, %v596_v39 }
 0x657   :  { %v601_v37 = vpop.permute.xlu1 %600 }
 0x658   :  { %v603_v38 = vmul.f32 %v5875_v36, %v601_v37 }
 0x65a   :  { %605 = vrot.lane.b32.xlu1 %v603_v38, %s6308_s2 }
 0x6cc   :  { %v606_v43 = vpop.permute.xlu1 %605 }
 0x6cd   :  { %v608_v44 = vadd.f32 %v606_v43, %v598_v42 }
 0x6cf   :  { %5876 = vtanh.f32 %v608_v44  ;;  %619 = vrot.lane.b32.xlu1 %v608_v44, %s6308_s2 }
 0x6d0   :  { %5878 = vpow2.f32 %v4972_v46 }
 0x6d9   :  { %v5877_v45 = vpop.eup %5876 }
 0x6da   :  { %611 = vrot.lane.b32.xlu0 %v5877_v45, %s6308_s2  ;;  %v5879_v49 = vpop.eup %5878 }
 0x6db   :  { %v588_v53 = vadd.f32 1.0, %v5879_v49 }
 0x6dd   :  { %5880 = vrcp.f32 %v588_v53 }
 0x6e7   :  { %v5881_v57 = vpop.eup %5880 }
 0x741   :  { %v620_v54 = vpop.permute.xlu1 %619 }
 0x742   :  { %v622_v56 = vsel %vm617_vm3, %v620_v54, %v503_v20 }
 0x743   :  { %714 = vrot.lane.b32.xlu1 %v622_v56, %s6308_s2 }
 0x74c   :  { %v612_v58 = vpop.permute.xlu0 %611 }
 0x74d   :  { %v614_v60 = vmul.f32 %v5881_v57, %v612_v58 }
 0x74f   :  { %v6643_v62 = vsel %vm617_vm3, %v614_v60, %v6609_v24  ;;  %v6702_v60 = vld [vmem:[%s7687_s1 + $0x20] sm:$0xff] }
 0x750   :  { %4974 = vmatmul.mubr.msk.f32.vlgmr.msra.gmra.mrb[6].mxu0 %vm118_vm0, %v6643_v62  ;;  %4996 = vmatmul.mubr.msk.f32.gmra.mrb[4].mxu1 %vm118_vm0, %v6643_v62  ;;  %vm855_vm5 = vcmp.gt.f32.partialorder %v6702_v60, 0.0 }
 0x751   :  { %5201 = vmatpush1.bf16.msra.mxu0 %v6427_v33  ;;  %810 = vmatprep.mubr.f32.mxu0 %v6307_v0 }
 0x752   :  { %5203 = vmatprep.subr.bf16.mxu0 %v6430_v34  ;;  %1327 = vmatprep.mubr.f32.mxu1 %v6307_v0 }
 0x755   :  { %5205 = vmatpush1.bf16.msra.mxu0 %v6438_v40 }
 0x756   :  { %5207 = vmatprep.subr.bf16.mxu0 %v6441_v41 }
 0x759   :  { %5209 = vmatpush1.bf16.msra.mxu0 %v6449_v47 }
 0x75a   :  { %5211 = vmatprep.subr.bf16.mxu0 %v6452_v48 }
 0x75d   :  { %5213 = vmatpush1.bf16.msra.mxu0 %v6460_v52 }
 0x75e   :  { %5215 = vmatprep.subr.bf16.mxu0 %v6422_v27 }
 0x7b5   :  { %v715_v13 = vpop.permute.xlu1 %714 }
 0x823   :  { %v693_v63 = vpop.f32.mrb[6].mxu0 }
 0x824   :  { %v695_v1 = vpop.f32.mrb[7].mxu0  ;;  %v5760_v6 = vadd.f32 %v693_v63, %v6510_v4 }
 0x825   :  { %v5761_v2 = vadd.f32 %v695_v1, %v6503_v61 }
 0x826   :  { %v4975_v7 = vmul.f32 -1.442695, %v5760_v6 }
 0x827   :  { %5882 = vtanh.f32 %v5761_v2  ;;  %v4976_v19 = vmul.f32 -1.442695, %v5761_v2 }
 0x828   :  { %5884 = vpow2.f32 %v4975_v7 }
 0x831   :  { %v5883_v5 = vpop.eup %5882 }
 0x832   :  { %719 = vrot.lane.b32.xlu0 %v5883_v5, %s6308_s2  ;;  %v5885_v8 = vpop.eup %5884 }
 0x833   :  { %v706_v9 = vadd.f32 1.0, %v5885_v8 }
 0x835   :  { %5886 = vrcp.f32 %v706_v9 }
 0x83f   :  { %v5887_v10 = vpop.eup %5886 }
 0x840   :  { %v717_v14 = vmul.f32 %v5887_v10, %v715_v13 }
 0x8a4   :  { %v720_v11 = vpop.permute.xlu0 %719 }
 0x8a5   :  { %v722_v12 = vmul.f32 %v5887_v10, %v720_v11 }
 0x8a7   :  { %724 = vrot.lane.b32.xlu0 %v722_v12, %s6308_s2 }
 0x919   :  { %v725_v15 = vpop.permute.xlu0 %724 }
 0x91a   :  { %v727_v16 = vadd.f32 %v725_v15, %v717_v14 }
 0x91c   :  { %5888 = vtanh.f32 %v727_v16  ;;  %738 = vrot.lane.b32.xlu0 %v727_v16, %s6308_s2 }
 0x91d   :  { %5890 = vpow2.f32 %v4976_v19 }
 0x926   :  { %v5889_v18 = vpop.eup %5888 }
 0x927   :  { %730 = vrot.lane.b32.xlu1 %v5889_v18, %s6308_s2  ;;  %v5891_v20 = vpop.eup %5890 }
 0x928   :  { %v707_v22 = vadd.f32 1.0, %v5891_v20 }
 0x92a   :  { %5892 = vrcp.f32 %v707_v22 }
 0x934   :  { %v5893_v26 = vpop.eup %5892 }
 0x98e   :  { %v739_v23 = vpop.permute.xlu0 %738 }
 0x98f   :  { %v741_v25 = vsel %vm736_vm4, %v739_v23, %v622_v56 }
 0x990   :  { %833 = vrot.lane.b32.xlu0 %v741_v25, %s6308_s2 }
 0x999   :  { %v731_v28 = vpop.permute.xlu1 %730 }
 0x99a   :  { %v733_v29 = vmul.f32 %v5893_v26, %v731_v28 }
 0x99c   :  { %v6677_v30 = vsel %vm736_vm4, %v733_v29, %v6643_v62 }
 0x99d   :  { %4978 = vmatmul.mubr.msk.f32.vlgmr.msra.gmra.mrb[8].mxu0 %vm118_vm0, %v6677_v30  ;;  %4997 = vmatmul.mubr.msk.f32.gmra.mrb[6].mxu1 %vm118_vm0, %v6677_v30 }
 0x99e   :  { %5217 = vmatpush1.bf16.msra.mxu0 %v6427_v33  ;;  %929 = vmatprep.mubr.f32.mxu0 %v6307_v0 }
 0x99f   :  { %5219 = vmatprep.subr.bf16.mxu0 %v6430_v34  ;;  %1333 = vmatprep.mubr.f32.mxu1 %v6307_v0 }
 0x9a2   :  { %5221 = vmatpush1.bf16.msra.mxu0 %v6438_v40 }
 0x9a3   :  { %5223 = vmatprep.subr.bf16.mxu0 %v6441_v41 }
 0x9a6   :  { %5225 = vmatpush1.bf16.msra.mxu0 %v6449_v47 }
 0x9a7   :  { %5227 = vmatprep.subr.bf16.mxu0 %v6452_v48 }
 0x9aa   :  { %5229 = vmatpush1.bf16.msra.mxu0 %v6460_v52 }
 0x9ab   :  { %5231 = vmatprep.subr.bf16.mxu0 %v6422_v27 }
 0xa02   :  { %v834_v46 = vpop.permute.xlu0 %833 }
 0xa70   :  { %v812_v31 = vpop.f32.mrb[8].mxu0 }
 0xa71   :  { %v814_v32 = vpop.f32.mrb[9].mxu0  ;;  %v5762_v37 = vadd.f32 %v812_v31, %v6510_v4  ;;  %v6736_v31 = vld [vmem:[%s7687_s1 + $0x28] sm:$0xff] }
 0xa72   :  { %v5763_v35 = vadd.f32 %v814_v32, %v6503_v61  ;;  %vm974_vm6 = vcmp.gt.f32.partialorder %v6736_v31, 0.0 }
 0xa73   :  { %v4979_v38 = vmul.f32 -1.442695, %v5762_v37 }
 0xa74   :  { %5894 = vtanh.f32 %v5763_v35  ;;  %v4980_v57 = vmul.f32 -1.442695, %v5763_v35 }
 0xa75   :  { %5896 = vpow2.f32 %v4979_v38 }
 0xa7e   :  { %v5895_v36 = vpop.eup %5894 }
 0xa7f   :  { %838 = vrot.lane.b32.xlu1 %v5895_v36, %s6308_s2  ;;  %v5897_v39 = vpop.eup %5896 }
 0xa80   :  { %v825_v42 = vadd.f32 1.0, %v5897_v39 }
 0xa82   :  { %5898 = vrcp.f32 %v825_v42 }
 0xa8c   :  { %v5899_v43 = vpop.eup %5898 }
 0xa8d   :  { %v836_v49 = vmul.f32 %v5899_v43, %v834_v46 }
 0xaf1   :  { %v839_v44 = vpop.permute.xlu1 %838 }
 0xaf2   :  { %v841_v45 = vmul.f32 %v5899_v43, %v839_v44 }
 0xaf4   :  { %843 = vrot.lane.b32.xlu1 %v841_v45, %s6308_s2 }
 0xb66   :  { %v844_v53 = vpop.permute.xlu1 %843 }
 0xb67   :  { %v846_v54 = vadd.f32 %v844_v53, %v836_v49 }
 0xb69   :  { %5900 = vtanh.f32 %v846_v54  ;;  %857 = vrot.lane.b32.xlu1 %v846_v54, %s6308_s2 }
 0xb6a   :  { %5902 = vpow2.f32 %v4980_v57 }
 0xb73   :  { %v5901_v56 = vpop.eup %5900 }
 0xb74   :  { %849 = vrot.lane.b32.xlu0 %v5901_v56, %s6308_s2  ;;  %v5903_v58 = vpop.eup %5902 }
 0xb75   :  { %v826_v63 = vadd.f32 1.0, %v5903_v58 }
 0xb77   :  { %5904 = vrcp.f32 %v826_v63 }
 0xb81   :  { %v5905_v5 = vpop.eup %5904 }
 0xbdb   :  { %v858_v1 = vpop.permute.xlu1 %857 }
 0xbdc   :  { %v860_v2 = vsel %vm855_vm5, %v858_v1, %v741_v25  ;;  %v6769_v1 = vld [vmem:[%s7687_s1 + $0x30] sm:$0xff] }
 0xbdd   :  { %952 = vrot.lane.b32.xlu1 %v860_v2, %s6308_s2  ;;  %vm1093_vm7 = vcmp.gt.f32.partialorder %v6769_v1, 0.0 }
 0xbe6   :  { %v850_v6 = vpop.permute.xlu0 %849 }
 0xbe7   :  { %v852_v7 = vmul.f32 %v5905_v5, %v850_v6 }
 0xbe9   :  { %v6711_v8 = vsel %vm855_vm5, %v852_v7, %v6677_v30 }
 0xbea   :  { %4982 = vmatmul.mubr.msk.f32.vlgmr.msra.gmra.mrb[10].mxu0 %vm118_vm0, %v6711_v8  ;;  %4998 = vmatmul.mubr.msk.f32.gmra.mrb[8].mxu1 %vm118_vm0, %v6711_v8 }
 0xbeb   :  { %5233 = vmatpush1.bf16.msra.mxu0 %v6427_v33  ;;  %1048 = vmatprep.mubr.f32.mxu0 %v6307_v0 }
 0xbec   :  { %5235 = vmatprep.subr.bf16.mxu0 %v6430_v34  ;;  %1339 = vmatprep.mubr.f32.mxu1 %v6307_v0 }
 0xbef   :  { %5237 = vmatpush1.bf16.msra.mxu0 %v6438_v40 }
 0xbf0   :  { %5239 = vmatprep.subr.bf16.mxu0 %v6441_v41 }
 0xbf3   :  { %5241 = vmatpush1.bf16.msra.mxu0 %v6449_v47 }
 0xbf4   :  { %5243 = vmatprep.subr.bf16.mxu0 %v6452_v48 }
 0xbf7   :  { %5245 = vmatpush1.bf16.msra.mxu0 %v6460_v52 }
 0xbf8   :  { %5247 = vmatprep.subr.bf16.mxu0 %v6422_v27 }
 0xc4f   :  { %v953_v27 = vpop.permute.xlu1 %952 }
 0xcbd   :  { %v931_v9 = vpop.f32.mrb[10].mxu0 }
 0xcbe   :  { %v933_v10 = vpop.f32.mrb[11].mxu0  ;;  %v5764_v13 = vadd.f32 %v931_v9, %v6510_v4 }
 0xcbf   :  { %v5765_v11 = vadd.f32 %v933_v10, %v6503_v61 }
 0xcc0   :  { %v4983_v14 = vmul.f32 -1.442695, %v5764_v13 }
 0xcc1   :  { %5906 = vtanh.f32 %v5765_v11  ;;  %v4984_v28 = vmul.f32 -1.442695, %v5765_v11 }
 0xcc2   :  { %5908 = vpow2.f32 %v4983_v14 }
 0xccb   :  { %v5907_v12 = vpop.eup %5906 }
 0xccc   :  { %957 = vrot.lane.b32.xlu0 %v5907_v12, %s6308_s2  ;;  %v5909_v15 = vpop.eup %5908 }
 0xccd   :  { %v944_v16 = vadd.f32 1.0, %v5909_v15 }
 0xccf   :  { %5910 = vrcp.f32 %v944_v16 }
 0xcd9   :  { %v5911_v18 = vpop.eup %5910 }
 0xcda   :  { %v955_v22 = vmul.f32 %v5911_v18, %v953_v27 }
 0xd3e   :  { %v958_v19 = vpop.permute.xlu0 %957 }
 0xd3f   :  { %v960_v20 = vmul.f32 %v5911_v18, %v958_v19 }
 0xd41   :  { %962 = vrot.lane.b32.xlu0 %v960_v20, %s6308_s2 }
 0xdb3   :  { %v963_v23 = vpop.permute.xlu0 %962 }
 0xdb4   :  { %v965_v25 = vadd.f32 %v963_v23, %v955_v22 }
 0xdb6   :  { %5912 = vtanh.f32 %v965_v25  ;;  %976 = vrot.lane.b32.xlu0 %v965_v25, %s6308_s2  ;;  %v1361_v25 = vld [vmem:[%s7690_s4 + $0x98] sm:$0xff] }
 0xdb7   :  { %5914 = vpow2.f32 %v4984_v28  ;;  %v1360_v28 = vld [vmem:[%s7690_s4 + $0x90] sm:$0xff] }
 0xdc0   :  { %v5913_v26 = vpop.eup %5912 }
 0xdc1   :  { %968 = vrot.lane.b32.xlu1 %v5913_v26, %s6308_s2  ;;  %v5915_v29 = vpop.eup %5914 }
 0xdc2   :  { %v945_v32 = vadd.f32 1.0, %v5915_v29  ;;  %v1363_v29 = vld [vmem:[%s7690_s4 + $0xa8] sm:$0xff] }
 0xdc4   :  { %5916 = vrcp.f32 %v945_v32  ;;  %v1365_v32 = vld [vmem:[%s7690_s4 + $0xb8] sm:$0xff] }
 0xdce   :  { %v5917_v37 = vpop.eup %5916 }
 0xe28   :  { %v977_v35 = vpop.permute.xlu0 %976 }
 0xe29   :  { %v979_v36 = vsel %vm974_vm6, %v977_v35, %v860_v2 }
 0xe2a   :  { %1071 = vrot.lane.b32.xlu0 %v979_v36, %s6308_s2 }
 0xe33   :  { %v969_v38 = vpop.permute.xlu1 %968 }
 0xe34   :  { %v971_v39 = vmul.f32 %v5917_v37, %v969_v38  ;;  %v1362_v37 = vld [vmem:[%s7690_s4 + $0xa0] sm:$0xff]  ;;  %v1364_v38 = vld [vmem:[%s7690_s4 + $0xb0] sm:$0xff] }
 0xe36   :  { %v6745_v42 = vsel %vm974_vm6, %v971_v39, %v6711_v8  ;;  %v1367_v39 = vld [vmem:[%s7690_s4 + $0xc8] sm:$0xff] }
 0xe37   :  { %4986 = vmatmul.mubr.msk.f32.vlgmr.msra.gmra.mrb[12].mxu0 %vm118_vm0, %v6745_v42  ;;  %4999 = vmatmul.mubr.msk.f32.gmra.mrb[10].mxu1 %vm118_vm0, %v6745_v42 }
 0xe38   :  { %5249 = vmatpush1.bf16.msra.mxu0 %v6427_v33  ;;  %1167 = vmatprep.mubr.f32.mxu0 %v6307_v0 }
 0xe39   :  { %5251 = vmatprep.subr.bf16.mxu0 %v6430_v34  ;;  %1345 = vmatprep.mubr.f32.mxu1 %v6307_v0 }
 0xe3c   :  { %5253 = vmatpush1.bf16.msra.mxu0 %v6438_v40 }
 0xe3d   :  { %5255 = vmatprep.subr.bf16.mxu0 %v6441_v41 }
 0xe40   :  { %5257 = vmatpush1.bf16.msra.mxu0 %v6449_v47 }
 0xe41   :  { %5259 = vmatprep.subr.bf16.mxu0 %v6452_v48 }
 0xe44   :  { %5261 = vmatpush1.bf16.msra.mxu0 %v6460_v52 }
 0xe9c   :  { %v1072_v52 = vpop.permute.xlu0 %1071 }
 0xf0a   :  { %v1050_v43 = vpop.f32.mrb[12].mxu0 }
 0xf0b   :  { %v1052_v44 = vpop.f32.mrb[13].mxu0  ;;  %v5766_v34 = vadd.f32 %v1050_v43, %v6510_v4  ;;  %v1369_v43 = vld [vmem:[%s7690_s4 + $0xd8] sm:$0xff] }
 0xf0c   :  { %v5767_v33 = vadd.f32 %v1052_v44, %v6503_v61  ;;  %v5284_v44 = vpack.c.bf16 %v1364_v38, %v1362_v37  ;;  %v1499_v38 = vld [vmem:[%s7690_s4 + $0x160] sm:$0xff] }
 0xf0d   :  { %v4987_v46 = vmul.f32 -1.442695, %v5766_v34  ;;  %v1368_v34 = vld [vmem:[%s7690_s4 + $0xd0] sm:$0xff] }
 0xf0e   :  { %5918 = vtanh.f32 %v5767_v33  ;;  %v4988_v58 = vmul.f32 -1.442695, %v5767_v33  ;;  %v5286_v33 = vpack.c.bf16 %v1369_v43, %v1367_v39  ;;  %v1501_v39 = vld [vmem:[%s7690_s4 + $0x170] sm:$0xff] }
 0xf0f   :  { %5920 = vpow2.f32 %v4987_v46 }
 0xf18   :  { %v5919_v45 = vpop.eup %5918 }
 0xf19   :  { %1076 = vrot.lane.b32.xlu1 %v5919_v45, %s6308_s2  ;;  %v5921_v40 = vpop.eup %5920  ;;  %v1366_v45 = vld [vmem:[%s7690_s4 + $0xc0] sm:$0xff] }
 0xf1a   :  { %v1063_v41 = vadd.f32 1.0, %v5921_v40  ;;  %v5288_v46 = vpack.c.bf16 %v1368_v34, %v1366_v45 }
 0xf1c   :  { %5922 = vrcp.f32 %v1063_v41 }
 0xf26   :  { %v5923_v47 = vpop.eup %5922 }
 0xf27   :  { %v1074_v53 = vmul.f32 %v5923_v47, %v1072_v52  ;;  %v1373_v52 = vld [vmem:[%s7690_s4 + $0xf8] sm:$0xff] }
 0xf8b   :  { %v1077_v49 = vpop.permute.xlu1 %1076 }
 0xf8c   :  { %v1079_v48 = vmul.f32 %v5923_v47, %v1077_v49 }
 0xf8e   :  { %1081 = vrot.lane.b32.xlu1 %v1079_v48, %s6308_s2  ;;  %v1371_v48 = vld [vmem:[%s7690_s4 + $0xe8] sm:$0xff] }
0x1000   :  { %v1082_v54 = vpop.permute.xlu1 %1081 }
0x1001   :  { %v1084_v56 = vadd.f32 %v1082_v54, %v1074_v53  ;;  %v5290_v53 = vpack.c.bf16 %v1373_v52, %v1371_v48  ;;  %v1370_v54 = vld [vmem:[%s7690_s4 + $0xe0] sm:$0xff] }
0x1003   :  { %5924 = vtanh.f32 %v1084_v56  ;;  %1095 = vrot.lane.b32.xlu1 %v1084_v56, %s6308_s2  ;;  %v1372_v56 = vld [vmem:[%s7690_s4 + $0xf0] sm:$0xff] }
0x1004   :  { %5926 = vpow2.f32 %v4988_v58  ;;  %v1488_v58 = vld [vmem:[%s7690_s4 + $0x108] sm:$0xff] }
0x100d   :  { %v5925_v57 = vpop.eup %5924 }
0x100e   :  { %1087 = vrot.lane.b32.xlu0 %v5925_v57, %s6308_s2  ;;  %v5927_v63 = vpop.eup %5926  ;;  %v5292_v57 = vpack.c.bf16 %v1372_v56, %v1370_v54 }
0x100f   :  { %v1064_v2 = vadd.f32 1.0, %v5927_v63  ;;  %v1490_v63 = vld [vmem:[%s7690_s4 + $0x118] sm:$0xff] }
0x1011   :  { %5928 = vrcp.f32 %v1064_v2 }
0x101b   :  { %v5929_v7 = vpop.eup %5928 }
0x1075   :  { %v1096_v5 = vpop.permute.xlu1 %1095 }
0x1076   :  { %v1098_v6 = vsel %vm1093_vm7, %v1096_v5, %v979_v36  ;;  %v5282_v36 = vpack.c.bf16 %v1365_v32, %v1363_v29  ;;  %v6844_v5 = vpack.c.bf16 %v1490_v63, %v1488_v58  ;;  %v1495_v29 = vld [vmem:[%s7690_s4 + $0x140] sm:$0xff]  ;;  %v1497_v32 = vld [vmem:[%s7690_s4 + $0x150] sm:$0xff] }
0x1077   :  { %1190 = vrot.lane.b32.xlu1 %v1098_v6, %s6308_s2 }
0x1080   :  { %v1088_v9 = vpop.permute.xlu0 %1087 }
0x1081   :  { %v1090_v10 = vmul.f32 %v5929_v7, %v1088_v9 }
0x1083   :  { %v6778_v11 = vsel %vm1093_vm7, %v1090_v10, %v6745_v42  ;;  %v6851_v10 = vld [vmem:[%s7687_s1 + $0x38] sm:$0xff] }
0x1084   :  { %4990 = vmatmul.mubr.msk.f32.vlgmr.msra.gmra.mrb[14].mxu0 %vm118_vm0, %v6778_v11  ;;  %5000 = vmatmul.mubr.msk.f32.gmra.mrb[12].mxu1 %vm118_vm0, %v6778_v11  ;;  %vm1212_vm8 = vcmp.gt.f32.partialorder %v6851_v10, 0.0  ;;  %v2562_v10 = vld [vmem:[%s7692_s6 + $0xd8] sm:$0xff] }
0x1085   :  { %1351 = vmatprep.mubr.f32.mxu1 %v6307_v0  ;;  %2544 = vmatprep.mubr.f32.mxu0 %v6307_v0 }
0x10e9   :  { %v1191_v40 = vpop.permute.xlu1 %1190 }
0x1157   :  { %v1169_v12 = vpop.f32.mrb[14].mxu0 }
0x1158   :  { %v1171_v13 = vpop.f32.mrb[15].mxu0  ;;  %v5768_v16 = vadd.f32 %v1169_v12, %v6510_v4  ;;  %v1358_v4 = vld [vmem:[%s7690_s4 + $0x80] sm:$0xff] }
0x1159   :  { %v5769_v14 = vadd.f32 %v1171_v13, %v6503_v61  ;;  %v1359_v61 = vld [vmem:[%s7690_s4 + $0x88] sm:$0xff]  ;;  %v5280_v35 = vpack.c.bf16 %v1360_v28, %v1358_v4  ;;  %v1498_v4 = vld [vmem:[%s7690_s4 + $0x158] sm:$0xff] }
0x115a   :  { %v4991_v18 = vmul.f32 -1.442695, %v5768_v16  ;;  %v5278_v26 = vpack.c.bf16 %v1361_v25, %v1359_v61  ;;  %v1493_v61 = vld [vmem:[%s7690_s4 + $0x130] sm:$0xff]  ;;  %v1496_v25 = vld [vmem:[%s7690_s4 + $0x148] sm:$0xff] }
0x115b   :  { %5930 = vtanh.f32 %v5769_v14  ;;  %v4992_v6 = vmul.f32 -1.442695, %v5769_v14  ;;  %v1487_v14 = vld [vmem:[%s7690_s4 + $0x100] sm:$0xff]  ;;  %v6894_v28 = vpack.c.bf16 %v1498_v4, %v1496_v25 }
0x115c   :  { %5932 = vpow2.f32 %v4991_v18  ;;  %5279 = vmatprep.subr.bf16.mxu1 %v5278_v26  ;;  %v1489_v18 = vld [vmem:[%s7690_s4 + $0x110] sm:$0xff] }
0x115d   :  { %5281 = vmatpush1.bf16.msra.mxu1 %v5280_v35  ;;  %v1502_v35 = vld [vmem:[%s7690_s4 + $0x178] sm:$0xff] }
0x115e   :  { %5283 = vmatprep.subr.bf16.mxu1 %v5282_v36  ;;  %v6912_v36 = vpack.c.bf16 %v1497_v32, %v1495_v29 }
0x1161   :  { %5285 = vmatpush1.bf16.msra.mxu1 %v5284_v44 }
0x1162   :  { %5287 = vmatprep.subr.bf16.mxu1 %v5286_v33 }
0x1165   :  { %v5931_v15 = vpop.eup %5930  ;;  %5289 = vmatpush1.bf16.msra.mxu1 %v5288_v46 }
0x1166   :  { %1195 = vrot.lane.b32.xlu0 %v5931_v15, %s6308_s2  ;;  %v5933_v19 = vpop.eup %5932  ;;  %5291 = vmatprep.subr.bf16.mxu1 %v5290_v53 }
0x1167   :  { %v1182_v20 = vadd.f32 1.0, %v5933_v19  ;;  %v1492_v19 = vld [vmem:[%s7690_s4 + $0x128] sm:$0xff] }
0x1169   :  { %5934 = vrcp.f32 %v1182_v20  ;;  %5293 = vmatpush1.bf16.msra.mxu1 %v5292_v57  ;;  %v1494_v20 = vld [vmem:[%s7690_s4 + $0x138] sm:$0xff] }
0x116a   :  { %5295 = vmatprep.subr.bf16.mxu1 %v6844_v5 }
0x1173   :  { %v5935_v27 = vpop.eup %5934 }
0x1174   :  { %v1193_v41 = vmul.f32 %v5935_v27, %v1191_v40 }
0x11d8   :  { %v1196_v22 = vpop.permute.xlu0 %1195 }
0x11d9   :  { %v1198_v23 = vmul.f32 %v5935_v27, %v1196_v22  ;;  %v6871_v27 = vpack.c.bf16 %v1489_v18, %v1487_v14  ;;  %v6873_v22 = vpack.c.bf16 %v1494_v20, %v1492_v19 }
0x11db   :  { %1200 = vrot.lane.b32.xlu0 %v1198_v23, %s6308_s2  ;;  %v1491_v23 = vld [vmem:[%s7690_s4 + $0x120] sm:$0xff] }
0x11dc   :  { %v6891_v26 = vpack.c.bf16 %v1493_v61, %v1491_v23 }
0x124d   :  { %v1201_v47 = vpop.permute.xlu0 %1200 }
0x124e   :  { %v1203_v49 = vadd.f32 %v1201_v47, %v1193_v41 }
0x1250   :  { %5936 = vtanh.f32 %v1203_v49 }
0x1251   :  { %5938 = vpow2.f32 %v4992_v6 }
0x125a   :  { %v5937_v2 = vpop.eup %5936 }
0x125b   :  { %1206 = vrot.lane.b32.xlu1 %v5937_v2, %s6308_s2  ;;  %v5939_v7 = vpop.eup %5938 }
0x125c   :  { %v1183_v9 = vadd.f32 1.0, %v5939_v7 }
0x125e   :  { %5940 = vrcp.f32 %v1183_v9 }
0x1268   :  { %v5941_v12 = vpop.eup %5940 }
0x12cd   :  { %v1207_v13 = vpop.permute.xlu1 %1206 }
0x12ce   :  { %v1209_v15 = vmul.f32 %v5941_v12, %v1207_v13 }
0x12d0   :  { %v1213_v16 = vsel %vm1212_vm8, %v1209_v15, %v6778_v11 }
0x12d1   :  { %5001 = vmatmul.mubr.msk.f32.gmra.mrb[14].mxu1 %vm118_vm0, %v1213_v16 }
0x12d2   :  { %1438 = vmatprep.mubr.f32.mxu1 %v6307_v0 }
0x12d9   :  { %5002 = vmatmul.mubr.msk.f32.vlgmr.msra.gmra.mrb[14].mxu1 %vm118_vm0, %v6572_v55  ;;  %v1500_v55 = vld [vmem:[%s7690_s4 + $0x168] sm:$0xff] }
0x12da   :  { %5297 = vmatpush1.bf16.msra.mxu1 %v6871_v27  ;;  %1444 = vmatprep.mubr.f32.mxu1 %v6307_v0  ;;  %v6915_v37 = vpack.c.bf16 %v1502_v35, %v1500_v55 }
0x12db   :  { %5299 = vmatprep.subr.bf16.mxu1 %v6873_v22 }
0x12dd   :  { %5003 = vmatmul.mubr.msk.f32.gmra.mrb[12].mxu1 %vm118_vm0, %v6609_v24  ;;  %v6927_v24 = vpack.c.bf16 %v1501_v39, %v1499_v38 }
0x12de   :  { %1450 = vmatprep.mubr.f32.mxu1 %v6307_v0  ;;  %5301 = vmatpush1.bf16.msra.mxu1 %v6891_v26 }
0x12df   :  { %5303 = vmatprep.subr.bf16.mxu1 %v6894_v28 }
0x12e1   :  { %5004 = vmatmul.mubr.msk.f32.gmra.mrb[10].mxu1 %vm118_vm0, %v6643_v62  ;;  %v1230_v62 = vld [vmem:[%s7691_s5] sm:$0x3] }
0x12e2   :  { %1456 = vmatprep.mubr.f32.mxu1 %v6307_v0  ;;  %5305 = vmatpush1.bf16.msra.mxu1 %v6912_v36  ;;  %v6965_v44 = vrot.slane %v1230_v62, %v6507_v3 }
0x12e3   :  { %5307 = vmatprep.subr.bf16.mxu1 %v6915_v37 }
0x12e5   :  { %5005 = vmatmul.mubr.msk.f32.gmra.mrb[8].mxu1 %vm118_vm0, %v6677_v30  ;;  %v6960_v30 = vrot.slane %v1230_v62, %v6497_v59 }
0x12e6   :  { %1462 = vmatprep.mubr.f32.mxu1 %v6307_v0  ;;  %5309 = vmatpush1.bf16.msra.mxu1 %v6927_v24 }
0x12e7   :  { %5311 = vmatprep.subr.bf16.mxu1 %v6844_v5 }
0x12e9   :  { %5006 = vmatmul.mubr.msk.f32.gmra.mrb[6].mxu1 %vm118_vm0, %v6711_v8 }
0x12ea   :  { %1468 = vmatprep.mubr.f32.mxu1 %v6307_v0 }
0x12ed   :  { %5007 = vmatmul.mubr.msk.f32.gmra.mrb[4].mxu1 %vm118_vm0, %v6745_v42 }
0x12ee   :  { %1474 = vmatprep.mubr.f32.mxu1 %v6307_v0 }
0x12f1   :  { %5008 = vmatmul.mubr.msk.f32.gmra.mrb[2].mxu1 %vm118_vm0, %v6778_v11 }
0x12f2   :  { %1480 = vmatprep.mubr.f32.mxu1 %v6307_v0 }
0x12f5   :  { %5009 = vmatmul.mubr.msk.f32.gmra.mrb[0].mxu1 %vm118_vm0, %v1213_v16 }
0x12f6   :  { %1569 = vmatprep.mubr.f32.mxu1 %v6307_v0 }
0x12fd   :  { %1570 = vmatmul.mubr.f32.vlgmr.msra.gmra.mrb[0].mxu1 %v6307_v0 }
0x12fe   :  { %5313 = vmatpush1.bf16.msra.mxu1 %v6871_v27  ;;  %1683 = vmatprep.mubr.f32.mxu1 %v6307_v0 }
0x12ff   :  { %5315 = vmatprep.subr.bf16.mxu1 %v6873_v22 }
0x1302   :  { %5317 = vmatpush1.bf16.msra.mxu1 %v6891_v26 }
0x1303   :  { %5319 = vmatprep.subr.bf16.mxu1 %v6894_v28 }
0x1306   :  { %5321 = vmatpush1.bf16.msra.mxu1 %v6912_v36 }
0x1307   :  { %5323 = vmatprep.subr.bf16.mxu1 %v6915_v37 }
0x130a   :  { %5325 = vmatpush1.bf16.msra.mxu1 %v6927_v24 }
0x130b   :  { %5327 = vmatprep.subr.bf16.mxu1 %v6844_v5 }
0x13d0   :  { %v1571_v8 = vpop.f32.mrb[0].mxu1 }
0x13d1   :  { %v1573_v42 = vpop.f32.mrb[1].mxu1  ;;  %v5770_v33 = vadd.f32 %v1571_v8, %v6965_v44 }
0x13d2   :  { %v5771_v11 = vadd.f32 %v1573_v42, %v6960_v30 }
0x13d3   :  { %v5010_v45 = vmul.f32 -1.442695, %v5770_v33 }
0x13d4   :  { %5942 = vtanh.f32 %v5771_v11  ;;  %v5011_v54 = vmul.f32 -1.442695, %v5771_v11 }
0x13d5   :  { %5944 = vpow2.f32 %v5010_v45 }
0x13de   :  { %v5943_v43 = vpop.eup %5942 }
0x13df   :  { %1593 = vrot.lane.b32.xlu0 %v5943_v43, %s6308_s2  ;;  %v5945_v34 = vpop.eup %5944 }
0x13e0   :  { %v1584_v46 = vadd.f32 1.0, %v5945_v34 }
0x13e2   :  { %5946 = vrcp.f32 %v1584_v46 }
0x13ec   :  { %v5947_v40 = vpop.eup %5946 }
0x13ed   :  { %v1591_v49 = vmul.f32 0.0, %v5947_v40 }
0x1451   :  { %v1594_v41 = vpop.permute.xlu0 %1593 }
0x1452   :  { %v1596_v47 = vmul.f32 %v5947_v40, %v1594_v41 }
0x1454   :  { %1598 = vrot.lane.b32.xlu1 %v1596_v47, %s6308_s2 }
0x14c6   :  { %v1599_v48 = vpop.permute.xlu1 %1598 }
0x14c7   :  { %v1601_v52 = vadd.f32 %v1599_v48, %v1591_v49 }
0x14c9   :  { %5948 = vtanh.f32 %v1601_v52  ;;  %1609 = vrot.lane.b32.xlu1 %v1601_v52, %s6308_s2 }
0x14ca   :  { %5950 = vpow2.f32 %v5011_v54 }
0x14d3   :  { %v5949_v53 = vpop.eup %5948 }
0x14d4   :  { %1604 = vrot.lane.b32.xlu0 %v5949_v53, %s6308_s2  ;;  %v5951_v56 = vpop.eup %5950 }
0x14d5   :  { %v1585_v57 = vadd.f32 1.0, %v5951_v56 }
0x14d7   :  { %5952 = vrcp.f32 %v1585_v57 }
0x14e1   :  { %v5953_v2 = vpop.eup %5952 }
0x153b   :  { %v1610_v58 = vpop.permute.xlu1 %1609 }
0x153c   :  { %v1612_v63 = vsel %vm379_vm1, %v1610_v58, 0.0 }
0x153d   :  { %1706 = vrot.lane.b32.xlu1 %v1612_v63, %s6308_s2 }
0x1546   :  { %v1605_v6 = vpop.permute.xlu0 %1604 }
0x1547   :  { %v1607_v7 = vmul.f32 %v5953_v2, %v1605_v6 }
0x1549   :  { %v1613_v9 = vsel %vm379_vm1, %v1607_v7, 0.0  ;;  %v2434_v45 = vsel %vm379_vm1, %v1607_v7, -inf  ;;  %vm4795_vm1 = vcmask 261120  }
0x154a   :  { %5012 = vmatmul.mubr.msk.f32.vlgmr.msra.gmra.mrb[2].mxu1 %vm118_vm0, %v1613_v9 }
0x154b   :  { %5329 = vmatpush1.bf16.msra.mxu1 %v6871_v27  ;;  %1801 = vmatprep.mubr.f32.mxu1 %v6307_v0 }
0x154c   :  { %5331 = vmatprep.subr.bf16.mxu1 %v6873_v22 }
0x154f   :  { %5333 = vmatpush1.bf16.msra.mxu1 %v6891_v26 }
0x1550   :  { %5335 = vmatprep.subr.bf16.mxu1 %v6894_v28 }
0x1553   :  { %5337 = vmatpush1.bf16.msra.mxu1 %v6912_v36 }
0x1554   :  { %5339 = vmatprep.subr.bf16.mxu1 %v6915_v37 }
0x1557   :  { %5341 = vmatpush1.bf16.msra.mxu1 %v6927_v24 }
0x1558   :  { %5343 = vmatprep.subr.bf16.mxu1 %v6844_v5 }
0x15af   :  { %v1707_v4 = vpop.permute.xlu1 %1706 }
0x161d   :  { %v1685_v12 = vpop.f32.mrb[2].mxu1 }
0x161e   :  { %v1687_v13 = vpop.f32.mrb[3].mxu1  ;;  %v5772_v14 = vadd.f32 %v1685_v12, %v6965_v44 }
0x161f   :  { %v5773_v15 = vadd.f32 %v1687_v13, %v6960_v30 }
0x1620   :  { %v5013_v18 = vmul.f32 -1.442695, %v5772_v14 }
0x1621   :  { %5954 = vtanh.f32 %v5773_v15  ;;  %v5014_v38 = vmul.f32 -1.442695, %v5773_v15 }
0x1622   :  { %5956 = vpow2.f32 %v5013_v18 }
0x162b   :  { %v5955_v16 = vpop.eup %5954 }
0x162c   :  { %1711 = vrot.lane.b32.xlu0 %v5955_v16, %s6308_s2  ;;  %v5957_v19 = vpop.eup %5956 }
0x162d   :  { %v1698_v20 = vadd.f32 1.0, %v5957_v19 }
0x162f   :  { %5958 = vrcp.f32 %v1698_v20 }
0x1639   :  { %v5959_v23 = vpop.eup %5958 }
0x163a   :  { %v1709_v29 = vmul.f32 %v5959_v23, %v1707_v4 }
0x169e   :  { %v1712_v61 = vpop.permute.xlu0 %1711 }
0x169f   :  { %v1714_v25 = vmul.f32 %v5959_v23, %v1712_v61 }
0x16a1   :  { %1716 = vrot.lane.b32.xlu0 %v1714_v25, %s6308_s2 }
0x1713   :  { %v1717_v32 = vpop.permute.xlu0 %1716 }
0x1714   :  { %v1719_v55 = vadd.f32 %v1717_v32, %v1709_v29 }
0x1716   :  { %5960 = vtanh.f32 %v1719_v55  ;;  %1727 = vrot.lane.b32.xlu0 %v1719_v55, %s6308_s2 }
0x1717   :  { %5962 = vpow2.f32 %v5014_v38 }
0x1720   :  { %v5961_v35 = vpop.eup %5960 }
0x1721   :  { %1722 = vrot.lane.b32.xlu1 %v5961_v35, %s6308_s2  ;;  %v5963_v39 = vpop.eup %5962 }
0x1722   :  { %v1699_v62 = vadd.f32 1.0, %v5963_v39 }
0x1724   :  { %5964 = vrcp.f32 %v1699_v62 }
0x172e   :  { %v5965_v11 = vpop.eup %5964 }
0x1788   :  { %v1728_v8 = vpop.permute.xlu0 %1727 }
0x1789   :  { %v1730_v42 = vsel %vm498_vm2, %v1728_v8, %v1612_v63 }
0x178a   :  { %1824 = vrot.lane.b32.xlu0 %v1730_v42, %s6308_s2 }
0x1793   :  { %v1723_v43 = vpop.permute.xlu1 %1722 }
0x1794   :  { %v1725_v33 = vmul.f32 %v5965_v11, %v1723_v43 }
0x1796   :  { %v1731_v34 = vsel %vm498_vm2, %v1725_v33, %v1613_v9  ;;  %v2435_v46 = vsel %vm498_vm2, %v1725_v33, -inf }
0x1797   :  { %v2436_v40 = vmax.f32 %v2434_v45, %v2435_v46  ;;  %5015 = vmatmul.mubr.msk.f32.vlgmr.msra.gmra.mrb[4].mxu1 %vm118_vm0, %v1731_v34 }
0x1798   :  { %5345 = vmatpush1.bf16.msra.mxu1 %v6871_v27  ;;  %1919 = vmatprep.mubr.f32.mxu1 %v6307_v0 }
0x1799   :  { %5347 = vmatprep.subr.bf16.mxu1 %v6873_v22 }
0x179c   :  { %5349 = vmatpush1.bf16.msra.mxu1 %v6891_v26 }
0x179d   :  { %5351 = vmatprep.subr.bf16.mxu1 %v6894_v28 }
0x17a0   :  { %5353 = vmatpush1.bf16.msra.mxu1 %v6912_v36 }
0x17a1   :  { %5355 = vmatprep.subr.bf16.mxu1 %v6915_v37 }
0x17a4   :  { %5357 = vmatpush1.bf16.msra.mxu1 %v6927_v24 }
0x17a5   :  { %5359 = vmatprep.subr.bf16.mxu1 %v6844_v5 }
0x17fc   :  { %v1825_v58 = vpop.permute.xlu0 %1824 }
0x186a   :  { %v1803_v50 = vpop.f32.mrb[4].mxu1 }
0x186b   :  { %v1805_v17 = vpop.f32.mrb[5].mxu1  ;;  %v5774_v49 = vadd.f32 %v1803_v50, %v6965_v44 }
0x186c   :  { %v5775_v41 = vadd.f32 %v1805_v17, %v6960_v30 }
0x186d   :  { %v5016_v48 = vmul.f32 -1.442695, %v5774_v49 }
0x186e   :  { %5966 = vtanh.f32 %v5775_v41  ;;  %v5017_v9 = vmul.f32 -1.442695, %v5775_v41 }
0x186f   :  { %5968 = vpow2.f32 %v5016_v48 }
0x1878   :  { %v5967_v47 = vpop.eup %5966 }
0x1879   :  { %1829 = vrot.lane.b32.xlu1 %v5967_v47, %s6308_s2  ;;  %v5969_v52 = vpop.eup %5968 }
0x187a   :  { %v1816_v53 = vadd.f32 1.0, %v5969_v52 }
0x187c   :  { %5970 = vrcp.f32 %v1816_v53 }
0x1886   :  { %v5971_v54 = vpop.eup %5970 }
0x1887   :  { %v1827_v63 = vmul.f32 %v5971_v54, %v1825_v58 }
0x18eb   :  { %v1830_v56 = vpop.permute.xlu1 %1829 }
0x18ec   :  { %v1832_v57 = vmul.f32 %v5971_v54, %v1830_v56 }
0x18ee   :  { %1834 = vrot.lane.b32.xlu1 %v1832_v57, %s6308_s2 }
0x1960   :  { %v1835_v2 = vpop.permute.xlu1 %1834 }
0x1961   :  { %v1837_v6 = vadd.f32 %v1835_v2, %v1827_v63 }
0x1963   :  { %5972 = vtanh.f32 %v1837_v6  ;;  %1845 = vrot.lane.b32.xlu1 %v1837_v6, %s6308_s2 }
0x1964   :  { %5974 = vpow2.f32 %v5017_v9 }
0x196d   :  { %v5973_v7 = vpop.eup %5972 }
0x196e   :  { %1840 = vrot.lane.b32.xlu0 %v5973_v7, %s6308_s2  ;;  %v5975_v12 = vpop.eup %5974 }
0x196f   :  { %v1817_v13 = vadd.f32 1.0, %v5975_v12 }
0x1971   :  { %5976 = vrcp.f32 %v1817_v13 }
0x197b   :  { %v5977_v14 = vpop.eup %5976 }
0x19d5   :  { %v1846_v15 = vpop.permute.xlu1 %1845 }
0x19d6   :  { %v1848_v16 = vsel %vm617_vm3, %v1846_v15, %v1730_v42 }
0x19d7   :  { %1942 = vrot.lane.b32.xlu1 %v1848_v16, %s6308_s2 }
0x19e0   :  { %v1841_v18 = vpop.permute.xlu0 %1840 }
0x19e1   :  { %v1843_v19 = vmul.f32 %v5977_v14, %v1841_v18 }
0x19e3   :  { %v1849_v20 = vsel %vm617_vm3, %v1843_v19, %v1731_v34  ;;  %v2437_v23 = vsel %vm617_vm3, %v1843_v19, -inf }
0x19e4   :  { %v7024_v61 = vmax.f32 %v2436_v40, %v2437_v23  ;;  %5018 = vmatmul.mubr.msk.f32.vlgmr.msra.gmra.mrb[6].mxu1 %vm118_vm0, %v1849_v20 }
0x19e5   :  { %5361 = vmatpush1.bf16.msra.mxu1 %v6871_v27  ;;  %2037 = vmatprep.mubr.f32.mxu1 %v6307_v0 }
0x19e6   :  { %5363 = vmatprep.subr.bf16.mxu1 %v6873_v22 }
0x19e9   :  { %5365 = vmatpush1.bf16.msra.mxu1 %v6891_v26 }
0x19ea   :  { %5367 = vmatprep.subr.bf16.mxu1 %v6894_v28 }
0x19ed   :  { %5369 = vmatpush1.bf16.msra.mxu1 %v6912_v36 }
0x19ee   :  { %5371 = vmatprep.subr.bf16.mxu1 %v6915_v37 }
0x19f1   :  { %5373 = vmatpush1.bf16.msra.mxu1 %v6927_v24 }
0x19f2   :  { %5375 = vmatprep.subr.bf16.mxu1 %v6844_v5 }
0x1a49   :  { %v1943_v42 = vpop.permute.xlu1 %1942 }
0x1ab7   :  { %v1921_v51 = vpop.f32.mrb[6].mxu1 }
0x1ab8   :  { %v1923_v25 = vpop.f32.mrb[7].mxu1  ;;  %v5776_v32 = vadd.f32 %v1921_v51, %v6965_v44 }
0x1ab9   :  { %v5777_v4 = vadd.f32 %v1923_v25, %v6960_v30 }
0x1aba   :  { %v5019_v55 = vmul.f32 -1.442695, %v5776_v32 }
0x1abb   :  { %5978 = vtanh.f32 %v5777_v4  ;;  %v5020_v34 = vmul.f32 -1.442695, %v5777_v4 }
0x1abc   :  { %5980 = vpow2.f32 %v5019_v55 }
0x1ac5   :  { %v5979_v29 = vpop.eup %5978 }
0x1ac6   :  { %1947 = vrot.lane.b32.xlu0 %v5979_v29, %s6308_s2  ;;  %v5981_v35 = vpop.eup %5980 }
0x1ac7   :  { %v1934_v38 = vadd.f32 1.0, %v5981_v35 }
0x1ac9   :  { %5982 = vrcp.f32 %v1934_v38 }
0x1ad3   :  { %v5983_v39 = vpop.eup %5982 }
0x1ad4   :  { %v1945_v11 = vmul.f32 %v5983_v39, %v1943_v42 }
0x1b38   :  { %v1948_v62 = vpop.permute.xlu0 %1947 }
0x1b39   :  { %v1950_v8 = vmul.f32 %v5983_v39, %v1948_v62 }
0x1b3b   :  { %1952 = vrot.lane.b32.xlu0 %v1950_v8, %s6308_s2 }
0x1bad   :  { %v1953_v43 = vpop.permute.xlu0 %1952 }
0x1bae   :  { %v1955_v33 = vadd.f32 %v1953_v43, %v1945_v11 }
0x1bb0   :  { %5984 = vtanh.f32 %v1955_v33  ;;  %1963 = vrot.lane.b32.xlu0 %v1955_v33, %s6308_s2 }
0x1bb1   :  { %5986 = vpow2.f32 %v5020_v34 }
0x1bba   :  { %v5985_v45 = vpop.eup %5984 }
0x1bbb   :  { %1958 = vrot.lane.b32.xlu1 %v5985_v45, %s6308_s2  ;;  %v5987_v46 = vpop.eup %5986 }
0x1bbc   :  { %v1935_v40 = vadd.f32 1.0, %v5987_v46 }
0x1bbe   :  { %5988 = vrcp.f32 %v1935_v40 }
0x1bc8   :  { %v5989_v41 = vpop.eup %5988 }
0x1c22   :  { %v1964_v50 = vpop.permute.xlu0 %1963 }
0x1c23   :  { %v1966_v17 = vsel %vm736_vm4, %v1964_v50, %v1848_v16 }
0x1c24   :  { %2060 = vrot.lane.b32.xlu0 %v1966_v17, %s6308_s2 }
0x1c2d   :  { %v1959_v47 = vpop.permute.xlu1 %1958 }
0x1c2e   :  { %v1961_v49 = vmul.f32 %v5989_v41, %v1959_v47 }
0x1c30   :  { %v1967_v48 = vsel %vm736_vm4, %v1961_v49, %v1849_v20  ;;  %v2439_v52 = vsel %vm736_vm4, %v1961_v49, -inf }
0x1c31   :  { %v2440_v53 = vmax.f32 %v7024_v61, %v2439_v52  ;;  %5021 = vmatmul.mubr.msk.f32.vlgmr.msra.gmra.mrb[8].mxu1 %vm118_vm0, %v1967_v48 }
0x1c32   :  { %5377 = vmatpush1.bf16.msra.mxu1 %v6871_v27  ;;  %2155 = vmatprep.mubr.f32.mxu1 %v6307_v0 }
0x1c33   :  { %5379 = vmatprep.subr.bf16.mxu1 %v6873_v22 }
0x1c36   :  { %5381 = vmatpush1.bf16.msra.mxu1 %v6891_v26 }
0x1c37   :  { %5383 = vmatprep.subr.bf16.mxu1 %v6894_v28 }
0x1c3a   :  { %5385 = vmatpush1.bf16.msra.mxu1 %v6912_v36 }
0x1c3b   :  { %5387 = vmatprep.subr.bf16.mxu1 %v6915_v37 }
0x1c3e   :  { %5389 = vmatpush1.bf16.msra.mxu1 %v6927_v24 }
0x1c3f   :  { %5391 = vmatprep.subr.bf16.mxu1 %v6844_v5 }
0x1c96   :  { %v2061_v13 = vpop.permute.xlu0 %2060 }
0x1d04   :  { %v2039_v21 = vpop.f32.mrb[8].mxu1 }
0x1d05   :  { %v2041_v54 = vpop.f32.mrb[9].mxu1  ;;  %v5778_v58 = vadd.f32 %v2039_v21, %v6965_v44 }
0x1d06   :  { %v5779_v56 = vadd.f32 %v2041_v54, %v6960_v30 }
0x1d07   :  { %v5022_v63 = vmul.f32 -1.442695, %v5778_v58 }
0x1d08   :  { %5990 = vtanh.f32 %v5779_v56  ;;  %v5023_v19 = vmul.f32 -1.442695, %v5779_v56 }
0x1d09   :  { %5992 = vpow2.f32 %v5022_v63 }
0x1d12   :  { %v5991_v57 = vpop.eup %5990 }
0x1d13   :  { %2065 = vrot.lane.b32.xlu1 %v5991_v57, %s6308_s2  ;;  %v5993_v2 = vpop.eup %5992 }
0x1d14   :  { %v2052_v6 = vadd.f32 1.0, %v5993_v2 }
0x1d16   :  { %5994 = vrcp.f32 %v2052_v6 }
0x1d20   :  { %v5995_v7 = vpop.eup %5994 }
0x1d21   :  { %v2063_v15 = vmul.f32 %v5995_v7, %v2061_v13 }
0x1d85   :  { %v2066_v9 = vpop.permute.xlu1 %2065 }
0x1d86   :  { %v2068_v12 = vmul.f32 %v5995_v7, %v2066_v9 }
0x1d88   :  { %2070 = vrot.lane.b32.xlu1 %v2068_v12, %s6308_s2 }
0x1dfa   :  { %v2071_v16 = vpop.permute.xlu1 %2070 }
0x1dfb   :  { %v2073_v14 = vadd.f32 %v2071_v16, %v2063_v15 }
0x1dfd   :  { %5996 = vtanh.f32 %v2073_v14  ;;  %2081 = vrot.lane.b32.xlu1 %v2073_v14, %s6308_s2 }
0x1dfe   :  { %5998 = vpow2.f32 %v5023_v19 }
0x1e07   :  { %v5997_v18 = vpop.eup %5996 }
0x1e08   :  { %2076 = vrot.lane.b32.xlu0 %v5997_v18, %s6308_s2  ;;  %v5999_v20 = vpop.eup %5998 }
0x1e09   :  { %v2053_v23 = vadd.f32 1.0, %v5999_v20 }
0x1e0b   :  { %6000 = vrcp.f32 %v2053_v23 }
0x1e15   :  { %v6001_v25 = vpop.eup %6000 }
0x1e6f   :  { %v2082_v61 = vpop.permute.xlu1 %2081 }
0x1e70   :  { %v2084_v51 = vsel %vm855_vm5, %v2082_v61, %v1966_v17 }
0x1e71   :  { %2178 = vrot.lane.b32.xlu1 %v2084_v51, %s6308_s2 }
0x1e7a   :  { %v2077_v4 = vpop.permute.xlu0 %2076 }
0x1e7b   :  { %v2079_v29 = vmul.f32 %v6001_v25, %v2077_v4 }
0x1e7d   :  { %v2085_v32 = vsel %vm855_vm5, %v2079_v29, %v1967_v48  ;;  %v2441_v55 = vsel %vm855_vm5, %v2079_v29, -inf }
0x1e7e   :  { %v7073_v35 = vmax.f32 %v2440_v53, %v2441_v55  ;;  %5024 = vmatmul.mubr.msk.f32.vlgmr.msra.gmra.mrb[10].mxu1 %vm118_vm0, %v2085_v32 }
0x1e7f   :  { %5393 = vmatpush1.bf16.msra.mxu1 %v6871_v27  ;;  %2273 = vmatprep.mubr.f32.mxu1 %v6307_v0 }
0x1e80   :  { %5395 = vmatprep.subr.bf16.mxu1 %v6873_v22 }
0x1e83   :  { %5397 = vmatpush1.bf16.msra.mxu1 %v6891_v26 }
0x1e84   :  { %5399 = vmatprep.subr.bf16.mxu1 %v6894_v28 }
0x1e87   :  { %5401 = vmatpush1.bf16.msra.mxu1 %v6912_v36 }
0x1e88   :  { %5403 = vmatprep.subr.bf16.mxu1 %v6915_v37 }
0x1e8b   :  { %5405 = vmatpush1.bf16.msra.mxu1 %v6927_v24 }
0x1e8c   :  { %5407 = vmatprep.subr.bf16.mxu1 %v6844_v5 }
0x1ee3   :  { %v2179_v5 = vpop.permute.xlu1 %2178 }
0x1f51   :  { %v2157_v60 = vpop.f32.mrb[10].mxu1 }
0x1f52   :  { %v2159_v38 = vpop.f32.mrb[11].mxu1  ;;  %v5780_v8 = vadd.f32 %v2157_v60, %v6965_v44 }
0x1f53   :  { %v5781_v39 = vadd.f32 %v2159_v38, %v6960_v30 }
0x1f54   :  { %v5025_v42 = vmul.f32 -1.442695, %v5780_v8 }
0x1f55   :  { %6002 = vtanh.f32 %v5781_v39  ;;  %v5026_v41 = vmul.f32 -1.442695, %v5781_v39 }
0x1f56   :  { %6004 = vpow2.f32 %v5025_v42 }
0x1f5f   :  { %v6003_v62 = vpop.eup %6002 }
0x1f60   :  { %2183 = vrot.lane.b32.xlu0 %v6003_v62, %s6308_s2  ;;  %v6005_v11 = vpop.eup %6004 }
0x1f61   :  { %v2170_v43 = vadd.f32 1.0, %v6005_v11 }
0x1f63   :  { %6006 = vrcp.f32 %v2170_v43  ;;  %v2452_v43 = vld [vmem:[%s7692_s6 + $0x18] sm:$0xff] }
0x1f6d   :  { %v6007_v33 = vpop.eup %6006 }
0x1f6e   :  { %v2181_v46 = vmul.f32 %v6007_v33, %v2179_v5  ;;  %v2456_v5 = vld [vmem:[%s7692_s6 + $0x38] sm:$0xff] }
0x1fd2   :  { %v2184_v45 = vpop.permute.xlu0 %2183 }
0x1fd3   :  { %v2186_v34 = vmul.f32 %v6007_v33, %v2184_v45  ;;  %v2451_v45 = vld [vmem:[%s7692_s6 + $0x10] sm:$0xff] }
0x1fd5   :  { %2188 = vrot.lane.b32.xlu0 %v2186_v34, %s6308_s2  ;;  %v2454_v34 = vld [vmem:[%s7692_s6 + $0x28] sm:$0xff] }
0x2047   :  { %v2189_v40 = vpop.permute.xlu0 %2188 }
0x2048   :  { %v2191_v50 = vadd.f32 %v2189_v40, %v2181_v46  ;;  %v5426_v40 = vpack.c.bf16 %v2456_v5, %v2454_v34  ;;  %v2556_v5 = vld [vmem:[%s7692_s6 + $0xa8] sm:$0xff] }
0x204a   :  { %6008 = vtanh.f32 %v2191_v50  ;;  %2199 = vrot.lane.b32.xlu0 %v2191_v50, %s6308_s2  ;;  %v2453_v50 = vld [vmem:[%s7692_s6 + $0x20] sm:$0xff] }
0x204b   :  { %6010 = vpow2.f32 %v5026_v41  ;;  %v2458_v41 = vld [vmem:[%s7692_s6 + $0x48] sm:$0xff] }
0x2054   :  { %v6009_v17 = vpop.eup %6008 }
0x2055   :  { %2194 = vrot.lane.b32.xlu1 %v6009_v17, %s6308_s2  ;;  %v6011_v47 = vpop.eup %6010  ;;  %v2455_v17 = vld [vmem:[%s7692_s6 + $0x30] sm:$0xff] }
0x2056   :  { %v2171_v49 = vadd.f32 1.0, %v6011_v47  ;;  %v2460_v47 = vld [vmem:[%s7692_s6 + $0x58] sm:$0xff] }
0x2058   :  { %6012 = vrcp.f32 %v2171_v49  ;;  %v5428_v49 = vpack.c.bf16 %v2455_v17, %v2453_v50 }
0x2062   :  { %v6013_v53 = vpop.eup %6012 }
0x20bc   :  { %v2200_v48 = vpop.permute.xlu0 %2199 }
0x20bd   :  { %v2202_v52 = vsel %vm974_vm6, %v2200_v48, %v2084_v51  ;;  %v5430_v48 = vpack.c.bf16 %v2460_v47, %v2458_v41  ;;  %v2555_v41 = vld [vmem:[%s7692_s6 + $0xa0] sm:$0xff]  ;;  %v2557_v47 = vld [vmem:[%s7692_s6 + $0xb0] sm:$0xff] }
0x20be   :  { %2296 = vrot.lane.b32.xlu0 %v2202_v52, %s6308_s2 }
0x20c7   :  { %v2195_v21 = vpop.permute.xlu1 %2194 }
0x20c8   :  { %v2197_v54 = vmul.f32 %v6013_v53, %v2195_v21  ;;  %v2459_v53 = vld [vmem:[%s7692_s6 + $0x50] sm:$0xff] }
0x20ca   :  { %v2203_v56 = vsel %vm974_vm6, %v2197_v54, %v2085_v32  ;;  %v2443_v57 = vsel %vm974_vm6, %v2197_v54, -inf }
0x20cb   :  { %v2444_v58 = vmax.f32 %v7073_v35, %v2443_v57  ;;  %5027 = vmatmul.mubr.msk.f32.vlgmr.msra.gmra.mrb[12].mxu1 %vm118_vm0, %v2203_v56  ;;  %v2464_v57 = vld [vmem:[%s7692_s6 + $0x78] sm:$0xff] }
0x20cc   :  { %5409 = vmatpush1.bf16.msra.mxu1 %v6871_v27  ;;  %2391 = vmatprep.mubr.f32.mxu1 %v6307_v0 }
0x20cd   :  { %5411 = vmatprep.subr.bf16.mxu1 %v6873_v22 }
0x20d0   :  { %5413 = vmatpush1.bf16.msra.mxu1 %v6891_v26 }
0x20d1   :  { %5415 = vmatprep.subr.bf16.mxu1 %v6894_v28 }
0x20d4   :  { %5417 = vmatpush1.bf16.msra.mxu1 %v6912_v36 }
0x20d5   :  { %5419 = vmatprep.subr.bf16.mxu1 %v6915_v37 }
0x20d8   :  { %5421 = vmatpush1.bf16.msra.mxu1 %v6927_v24 }
0x2130   :  { %v2297_v24 = vpop.permute.xlu0 %2296 }
0x219e   :  { %v2275_v31 = vpop.f32.mrb[12].mxu1 }
0x219f   :  { %v2277_v63 = vpop.f32.mrb[13].mxu1  ;;  %v5782_v22 = vadd.f32 %v2275_v31, %v6965_v44 }
0x21a0   :  { %v5783_v2 = vadd.f32 %v2277_v63, %v6960_v30  ;;  %v2461_v63 = vld [vmem:[%s7692_s6 + $0x60] sm:$0xff] }
0x21a1   :  { %v5028_v6 = vmul.f32 -1.442695, %v5782_v22 }
0x21a2   :  { %6014 = vtanh.f32 %v5783_v2  ;;  %v5029_v16 = vmul.f32 -1.442695, %v5783_v2  ;;  %v2463_v2 = vld [vmem:[%s7692_s6 + $0x70] sm:$0xff] }
0x21a3   :  { %6016 = vpow2.f32 %v5028_v6  ;;  %v5436_v22 = vpack.c.bf16 %v2463_v2, %v2461_v63 }
0x21ac   :  { %v6015_v27 = vpop.eup %6014 }
0x21ad   :  { %2301 = vrot.lane.b32.xlu1 %v6015_v27, %s6308_s2  ;;  %v6017_v26 = vpop.eup %6016 }
0x21ae   :  { %v2288_v28 = vadd.f32 1.0, %v6017_v26  ;;  %v2552_v26 = vld [vmem:[%s7692_s6 + $0x88] sm:$0xff] }
0x21b0   :  { %6018 = vrcp.f32 %v2288_v28  ;;  %v2554_v28 = vld [vmem:[%s7692_s6 + $0x98] sm:$0xff] }
0x21ba   :  { %v6019_v36 = vpop.eup %6018 }
0x21bb   :  { %v2299_v9 = vmul.f32 %v6019_v36, %v2297_v24  ;;  %v2641_v24 = vld [vmem:[%s7692_s6 + $0x118] sm:$0xff] }
0x221f   :  { %v2302_v7 = vpop.permute.xlu1 %2301 }
0x2220   :  { %v2304_v37 = vmul.f32 %v6019_v36, %v2302_v7  ;;  %v5438_v36 = vpack.c.bf16 %v2554_v28, %v2552_v26 }
0x2222   :  { %2306 = vrot.lane.b32.xlu1 %v2304_v37, %s6308_s2  ;;  %v2639_v37 = vld [vmem:[%s7692_s6 + $0x108] sm:$0xff] }
0x2294   :  { %v2307_v12 = vpop.permute.xlu1 %2306 }
0x2295   :  { %v2309_v13 = vadd.f32 %v2307_v12, %v2299_v9  ;;  %v7193_v9 = vpack.c.bf16 %v2641_v24, %v2639_v37  ;;  %v2638_v12 = vld [vmem:[%s7692_s6 + $0x100] sm:$0xff] }
0x2297   :  { %6020 = vtanh.f32 %v2309_v13  ;;  %2317 = vrot.lane.b32.xlu1 %v2309_v13, %s6308_s2  ;;  %v2640_v13 = vld [vmem:[%s7692_s6 + $0x110] sm:$0xff]  ;;  %5471 = vmatprep.subr.bf16.mxu1 %v7193_v9 }
0x2298   :  { %6022 = vpow2.f32 %v5029_v16  ;;  %v2643_v16 = vld [vmem:[%s7692_s6 + $0x128] sm:$0xff] }
0x22a1   :  { %v6021_v15 = vpop.eup %6020 }
0x22a2   :  { %2312 = vrot.lane.b32.xlu0 %v6021_v15, %s6308_s2  ;;  %v6023_v14 = vpop.eup %6022  ;;  %v7201_v15 = vpack.c.bf16 %v2640_v13, %v2638_v12 }
0x22a3   :  { %v2289_v18 = vadd.f32 1.0, %v6023_v14  ;;  %v2645_v14 = vld [vmem:[%s7692_s6 + $0x138] sm:$0xff] }
0x22a5   :  { %6024 = vrcp.f32 %v2289_v18  ;;  %v7211_v18 = vpack.c.bf16 %v2645_v14, %v2643_v16 }
0x22af   :  { %v6025_v23 = vpop.eup %6024 }
0x2309   :  { %v2318_v19 = vpop.permute.xlu1 %2317 }
0x230a   :  { %v2320_v20 = vsel %vm1093_vm7, %v2318_v19, %v2202_v52  ;;  %v2457_v52 = vld [vmem:[%s7692_s6 + $0x40] sm:$0xff] }
0x230b   :  { %2414 = vrot.lane.b32.xlu1 %v2320_v20, %s6308_s2  ;;  %v5432_v21 = vpack.c.bf16 %v2459_v53, %v2457_v52  ;;  %v2642_v19 = vld [vmem:[%s7692_s6 + $0x120] sm:$0xff]  ;;  %v2644_v20 = vld [vmem:[%s7692_s6 + $0x130] sm:$0xff] }
0x230c   :  { %v2559_v52 = vld [vmem:[%s7692_s6 + $0xc0] sm:$0xff]  ;;  %v2561_v53 = vld [vmem:[%s7692_s6 + $0xd0] sm:$0xff] }
0x2314   :  { %v2313_v61 = vpop.permute.xlu0 %2312 }
0x2315   :  { %v2315_v51 = vmul.f32 %v6025_v23, %v2313_v61  ;;  %v7219_v23 = vpack.c.bf16 %v2644_v20, %v2642_v19  ;;  %v2647_v61 = vld [vmem:[%s7692_s6 + $0x148] sm:$0xff] }
0x2317   :  { %v2321_v25 = vsel %vm1093_vm7, %v2315_v51, %v2203_v56  ;;  %v2445_v4 = vsel %vm1093_vm7, %v2315_v51, -inf  ;;  %v2462_v56 = vld [vmem:[%s7692_s6 + $0x68] sm:$0xff]  ;;  %v2649_v51 = vld [vmem:[%s7692_s6 + $0x158] sm:$0xff] }
0x2318   :  { %v7121_v29 = vmax.f32 %v2444_v58, %v2445_v4  ;;  %5030 = vmatmul.mubr.msk.f32.vlgmr.msra.gmra.mrb[14].mxu1 %vm118_vm0, %v2321_v25  ;;  %v5434_v31 = vpack.c.bf16 %v2464_v57, %v2462_v56  ;;  %v7229_v25 = vpack.c.bf16 %v2649_v51, %v2647_v61  ;;  %v2646_v4 = vld [vmem:[%s7692_s6 + $0x140] sm:$0xff]  ;;  %v5448_v56 = vpack.c.bf16 %v2561_v53, %v2559_v52 }
0x2319   :  { %2838 = vmatprep.mubr.f32.mxu1 %v6307_v0  ;;  %5473 = vmatpush1.bf16.msra.mxu1 %v7201_v15 }
0x231a   :  { %5475 = vmatprep.subr.bf16.mxu1 %v7211_v18 }
0x231d   :  { %5477 = vmatpush1.bf16.msra.mxu1 %v7219_v23 }
0x231e   :  { %5479 = vmatprep.subr.bf16.mxu1 %v7229_v25 }
0x237d   :  { %v2415_v54 = vpop.permute.xlu1 %2414 }
0x23eb   :  { %v2393_v32 = vpop.f32.mrb[14].mxu1 }
0x23ec   :  { %v2395_v55 = vpop.f32.mrb[15].mxu1  ;;  %v5784_v38 = vadd.f32 %v2393_v32, %v6965_v44  ;;  %v2449_v44 = vld [vmem:[%s7692_s6] sm:$0xff]  ;;  %v2648_v32 = vld [vmem:[%s7692_s6 + $0x150] sm:$0xff] }
0x23ed   :  { %v7126_v35 = vadd.f32 %v2395_v55, %v6960_v30  ;;  %v2450_v30 = vld [vmem:[%s7692_s6 + $0x8] sm:$0xff]  ;;  %v5424_v46 = vpack.c.bf16 %v2451_v45, %v2449_v44  ;;  %v7237_v55 = vpack.c.bf16 %v2648_v32, %v2646_v4  ;;  %v2553_v45 = vld [vmem:[%s7692_s6 + $0x90] sm:$0xff] }
0x23ee   :  { %v5031_v1 = vmul.f32 -1.442695, %v5784_v38  ;;  %v5422_v33 = vpack.c.bf16 %v2452_v43, %v2450_v30  ;;  %v2653_v38 = vld [vmem:[%s7692_s6 + $0x178] sm:$0xff] }
0x23ef   :  { %6026 = vtanh.f32 %v7126_v35  ;;  %5481 = vmatpush1.bf16.msra.mxu1 %v7237_v55 }
0x23f0   :  { %6028 = vpow2.f32 %v5031_v1  ;;  %5423 = vmatprep.subr.bf16.mxu0 %v5422_v33  ;;  %v2551_v33 = vld [vmem:[%s7692_s6 + $0x80] sm:$0xff] }
0x23f1   :  { %5425 = vmatpush1.bf16.msra.mxu0 %v5424_v46 }
0x23f2   :  { %5427 = vmatprep.subr.bf16.mxu0 %v5426_v40  ;;  %v5440_v40 = vpack.c.bf16 %v2553_v45, %v2551_v33 }
0x23f5   :  { %5429 = vmatpush1.bf16.msra.mxu0 %v5428_v49  ;;  %v2560_v49 = vld [vmem:[%s7692_s6 + $0xc8] sm:$0xff] }
0x23f6   :  { %5431 = vmatprep.subr.bf16.mxu0 %v5430_v48  ;;  %v5446_v48 = vpack.c.bf16 %v2562_v10, %v2560_v49 }
0x23f9   :  { %v6027_v60 = vpop.eup %6026  ;;  %5433 = vmatpush1.bf16.msra.mxu0 %v5432_v21  ;;  %v2564_v21 = vld [vmem:[%s7692_s6 + $0xe8] sm:$0xff] }
0x23fa   :  { %2419 = vrot.lane.b32.xlu0 %v6027_v60, %s6308_s2  ;;  %v6029_v39 = vpop.eup %6028  ;;  %5435 = vmatprep.subr.bf16.mxu0 %v5434_v31  ;;  %v2651_v60 = vld [vmem:[%s7692_s6 + $0x168] sm:$0xff]  ;;  %v2565_v31 = vld [vmem:[%s7692_s6 + $0xf0] sm:$0xff] }
0x23fb   :  { %v2406_v62 = vadd.f32 1.0, %v6029_v39  ;;  %v7247_v1 = vpack.c.bf16 %v2653_v38, %v2651_v60  ;;  %v2650_v39 = vld [vmem:[%s7692_s6 + $0x160] sm:$0xff] }
0x23fd   :  { %6030 = vrcp.f32 %v2406_v62  ;;  %5437 = vmatpush1.bf16.msra.mxu0 %v5436_v22  ;;  %v2652_v62 = vld [vmem:[%s7692_s6 + $0x170] sm:$0xff]  ;;  %5483 = vmatprep.subr.bf16.mxu1 %v7247_v1  ;;  %v2465_v22 = vld [vmem:[%s7693_s7] sm:$0x3] }
0x23fe   :  { %5439 = vmatprep.subr.bf16.mxu0 %v5438_v36  ;;  %v2474_v26 = vrot.slane %v2465_v22, %v6497_v59 }
0x2407   :  { %v6031_v8 = vpop.eup %6030 }
0x2408   :  { %v2417_v58 = vmul.f32 %v6031_v8, %v2415_v54  ;;  %v2566_v54 = vld [vmem:[%s7692_s6 + $0xf8] sm:$0xff] }
0x2409   :  { %v5450_v57 = vpack.c.bf16 %v2566_v54, %v2564_v21 }
0x246c   :  { %v2420_v42 = vpop.permute.xlu0 %2419 }
0x246d   :  { %v2422_v11 = vmul.f32 %v6031_v8, %v2420_v42  ;;  %v7255_v8 = vpack.c.bf16 %v2652_v62, %v2650_v39  ;;  %v5032_v42 = vmul.f32 -1.442695, %v7126_v35  ;;  %v2558_v35 = vld [vmem:[%s7692_s6 + $0xb8] sm:$0xff] }
0x246e   :  { %v5442_v17 = vpack.c.bf16 %v2558_v35, %v2556_v5 }
0x246f   :  { %2424 = vrot.lane.b32.xlu0 %v2422_v11, %s6308_s2  ;;  %5485 = vmatpush1.bf16.msra.mxu1 %v7255_v8 }
0x2470   :  { %5503 = vmatprep.subr.bf16.mxu1 %v7193_v9 }
0x24e1   :  { %v2425_v27 = vpop.permute.xlu0 %2424 }
0x24e2   :  { %v2427_v6 = vadd.f32 %v2425_v27, %v2417_v58  ;;  %v2563_v58 = vld [vmem:[%s7692_s6 + $0xe0] sm:$0xff] }
0x24e3   :  { %v5452_v63 = vpack.c.bf16 %v2565_v31, %v2563_v58 }
0x24e4   :  { %6032 = vtanh.f32 %v2427_v6  ;;  %v2470_v6 = vrot.slane %v2465_v22, %v6507_v3 }
0x24e5   :  { %6034 = vpow2.f32 %v5032_v42 }
0x24ee   :  { %v6033_v7 = vpop.eup %6032 }
0x24ef   :  { %2430 = vrot.lane.b32.xlu1 %v6033_v7, %s6308_s2  ;;  %v6035_v11 = vpop.eup %6034 }
0x24f0   :  { %v2407_v30 = vadd.f32 1.0, %v6035_v11 }
0x24f2   :  { %6036 = vrcp.f32 %v2407_v30 }
0x24fc   :  { %v6037_v43 = vpop.eup %6036 }
0x2561   :  { %v2431_v44 = vpop.permute.xlu1 %2430 }
0x2562   :  { %v2433_v34 = vmul.f32 %v6037_v43, %v2431_v44 }
0x2564   :  { %v2447_v46 = vsel %vm1212_vm8, %v2433_v34, -inf }
0x2565   :  { %v2448_v50 = vmax.f32 %v7121_v29, %v2447_v46  ;;  %v5444_v29 = vpack.c.bf16 %v2557_v47, %v2555_v41 }
0x2567   :  { %5033 = vmatmul.mubr.msk.f32.vlgmr.msra.gmra.mrb[16].mxu0 %vm118_vm0, %v2448_v50 }
0x2568   :  { %5441 = vmatpush1.bf16.msra.mxu0 %v5440_v40  ;;  %2631 = vmatprep.mubr.f32.mxu0 %v6307_v0 }
0x2569   :  { %5443 = vmatprep.subr.bf16.mxu0 %v5442_v17 }
0x256c   :  { %5445 = vmatpush1.bf16.msra.mxu0 %v5444_v29 }
0x256d   :  { %5447 = vmatprep.subr.bf16.mxu0 %v5446_v48 }
0x2570   :  { %5449 = vmatpush1.bf16.msra.mxu0 %v5448_v56 }
0x2571   :  { %5451 = vmatprep.subr.bf16.mxu0 %v5450_v57 }
0x2574   :  { %5453 = vmatpush1.bf16.msra.mxu0 %v5452_v63 }
0x2575   :  { %5455 = vmatprep.subr.bf16.mxu0 %v7193_v9 }
0x2577   :  { %5034 = vmatmul.mubr.msk.f32.vlgmr.msra.gmra.mrb[18].mxu0 %vm118_vm0, %v2448_v50 }
0x2578   :  { %5457 = vmatpush1.bf16.msra.mxu0 %v7201_v15  ;;  %2726 = vmatprep.mubr.f32.mxu0 %v6307_v0 }
0x2579   :  { %5459 = vmatprep.subr.bf16.mxu0 %v7211_v18 }
0x257c   :  { %5461 = vmatpush1.bf16.msra.mxu0 %v7219_v23 }
0x257d   :  { %5463 = vmatprep.subr.bf16.mxu0 %v7229_v25 }
0x2580   :  { %5465 = vmatpush1.bf16.msra.mxu0 %v7237_v55 }
0x2581   :  { %5467 = vmatprep.subr.bf16.mxu0 %v7247_v1 }
0x2584   :  { %5469 = vmatpush1.bf16.msra.mxu0 %v7255_v8 }
0x2585   :  { %5487 = vmatprep.subr.bf16.mxu0 %v7193_v9 }
0x2587   :  { %2727 = vmatmul.mubr.f32.vlgmr.msra.gmra.mrb[20].mxu0 %v6307_v0 }
0x2588   :  { %5489 = vmatpush1.bf16.msra.mxu0 %v7201_v15  ;;  %2960 = vmatprep.mubr.f32.mxu0 %v6307_v0 }
0x2589   :  { %5491 = vmatprep.subr.bf16.mxu0 %v7211_v18 }
0x258c   :  { %5493 = vmatpush1.bf16.msra.mxu0 %v7219_v23 }
0x258d   :  { %5495 = vmatprep.subr.bf16.mxu0 %v7229_v25 }
0x2590   :  { %5497 = vmatpush1.bf16.msra.mxu0 %v7237_v55 }
0x2591   :  { %5499 = vmatprep.subr.bf16.mxu0 %v7247_v1 }
0x2594   :  { %5501 = vmatpush1.bf16.msra.mxu0 %v7255_v8 }
0x2595   :  { %5519 = vmatprep.subr.bf16.mxu0 %v7193_v9 }
0x263a   :  { %v2546_v2 = vpop.f32.mrb[16].mxu0 }
0x263b   :  { %v2548_v27 = vpop.f32.mrb[17].mxu0  ;;  %v2547_v28 = vadd.f32 %v2546_v2, %v2470_v6 }
0x263c   :  { %v2549_v36 = vadd.f32 %v2548_v27, %v2474_v26 }
0x264a   :  { %v2633_v7 = vpop.f32.mrb[18].mxu0 }
0x264b   :  { %v2765_v37 = vrot.slane %v2633_v7, 5  ;;  %v2886_v24 = vrot.slane %v2633_v7, 3  ;;  %v3008_v12 = vrot.slane %v2633_v7, 1  ;;  %v2635_v13 = vpop.f32.mrb[19].mxu0  ;;  %v2656_v16 = vrot.slane %v2633_v7, 7 }
0x264c   :  { %v2766_v14 = vrot.slane %v2635_v13, 5  ;;  %v2887_v19 = vrot.slane %v2635_v13, 3  ;;  %v3009_v20 = vrot.slane %v2635_v13, 1  ;;  %v2657_v61 = vrot.slane %v2635_v13, 7 }
0x264d   :  { %v7334_v51 = vadd.f32 %v2656_v16, %v2547_v28  ;;  %v7336_v4 = vadd.f32 %v2765_v37, %v2547_v28  ;;  %v7338_v32 = vadd.f32 %v2886_v24, %v2547_v28  ;;  %v7340_v60 = vadd.f32 %v3008_v12, %v2547_v28 }
0x264e   :  { %v7342_v38 = vadd.f32 %v2657_v61, %v2549_v36  ;;  %v7344_v39 = vadd.f32 %v2766_v14, %v2549_v36  ;;  %v7346_v62 = vadd.f32 %v2887_v19, %v2549_v36  ;;  %v7348_v42 = vadd.f32 %v3009_v20, %v2549_v36 }
0x265a   :  { %v2728_v11 = vpop.f32.mrb[20].mxu0 }
0x265b   :  { %v2730_v30 = vpop.f32.mrb[21].mxu0  ;;  %v2733_v33 = vadd.f32 %v2728_v11, %v7334_v51 }
0x265c   :  { %v2734_v43 = vadd.f32 %v2730_v30, %v7342_v38 }
0x265d   :  { %v5035_v45 = vmul.f32 -1.442695, %v2733_v33 }
0x265e   :  { %6038 = vtanh.f32 %v2734_v43  ;;  %v5036_v49 = vmul.f32 -1.442695, %v2734_v43 }
0x265f   :  { %6040 = vpow2.f32 %v5035_v45 }
0x2668   :  { %v6039_v44 = vpop.eup %6038 }
0x2669   :  { %2750 = vrot.lane.b32.xlu0 %v6039_v44, %s6308_s2  ;;  %v6041_v34 = vpop.eup %6040 }
0x266a   :  { %v2741_v5 = vadd.f32 1.0, %v6041_v34 }
0x266c   :  { %6042 = vrcp.f32 %v2741_v5 }
0x2676   :  { %v6043_v35 = vpop.eup %6042 }
0x2677   :  { %v2748_v50 = vmul.f32 0.0, %v6043_v35 }
0x26db   :  { %v2751_v46 = vpop.permute.xlu0 %2750 }
0x26dc   :  { %v2753_v40 = vmul.f32 %v6043_v35, %v2751_v46 }
0x26de   :  { %2755 = vrot.lane.b32.xlu1 %v2753_v40, %s6308_s2 }
0x2750   :  { %v2756_v17 = vpop.permute.xlu1 %2755 }
0x2751   :  { %v2758_v41 = vadd.f32 %v2756_v17, %v2748_v50 }
0x2753   :  { %6044 = vtanh.f32 %v2758_v41  ;;  %v2867_v36 = vrot.slane %v2758_v41, 7 }
0x2754   :  { %6046 = vpow2.f32 %v5036_v49 }
0x275d   :  { %v6045_v47 = vpop.eup %6044 }
0x275e   :  { %2761 = vrot.lane.b32.xlu0 %v6045_v47, %s6308_s2  ;;  %v6047_v10 = vpop.eup %6046 }
0x275f   :  { %v2742_v29 = vadd.f32 1.0, %v6047_v10 }
0x2761   :  { %6048 = vrcp.f32 %v2742_v29 }
0x276b   :  { %v6049_v48 = vpop.eup %6048 }
0x27d0   :  { %v2762_v52 = vpop.permute.xlu0 %2761 }
0x27d1   :  { %v7355_v53 = vmul.f32 %v6049_v48, %v2762_v52 }
0x27d3   :  { %5037 = vmatmul.mubr.msk.f32.vlgmr.msra.gmra.mrb[16].mxu1 %vm118_vm0, %v7355_v53 }
0x27d4   :  { %5505 = vmatpush1.bf16.msra.mxu1 %v7201_v15  ;;  %3082 = vmatprep.mubr.f32.mxu1 %v6307_v0 }
0x27d5   :  { %5507 = vmatprep.subr.bf16.mxu1 %v7211_v18 }
0x27d8   :  { %5509 = vmatpush1.bf16.msra.mxu1 %v7219_v23 }
0x27d9   :  { %5511 = vmatprep.subr.bf16.mxu1 %v7229_v25 }
0x27dc   :  { %5513 = vmatpush1.bf16.msra.mxu1 %v7237_v55 }
0x27dd   :  { %5515 = vmatprep.subr.bf16.mxu1 %v7247_v1 }
0x27e0   :  { %5517 = vmatpush1.bf16.msra.mxu1 %v7255_v8 }
0x27e1   :  { %5535 = vmatprep.subr.bf16.mxu1 %v7193_v9 }
0x28a6   :  { %v2840_v21 = vpop.f32.mrb[16].mxu1 }
0x28a7   :  { %v2842_v54 = vpop.f32.mrb[17].mxu1  ;;  %v2847_v31 = vrot.slane %v2840_v21, 7 }
0x28a8   :  { %v2848_v56 = vrot.slane %v2842_v54, 7 }
0x28a9   :  { %v2851_v63 = vadd.f32 %v2847_v31, %v7336_v4 }
0x28aa   :  { %v2852_v57 = vadd.f32 %v2848_v56, %v7344_v39 }
0x28ab   :  { %v5038_v2 = vmul.f32 -1.442695, %v2851_v63 }
0x28ac   :  { %6050 = vtanh.f32 %v2852_v57  ;;  %v5039_v13 = vmul.f32 -1.442695, %v2852_v57 }
0x28ad   :  { %6052 = vpow2.f32 %v5038_v2 }
0x28b6   :  { %v6051_v58 = vpop.eup %6050 }
0x28b7   :  { %2871 = vrot.lane.b32.xlu1 %v6051_v58, %s6308_s2  ;;  %v6053_v27 = vpop.eup %6052 }
0x28b8   :  { %v2859_v22 = vadd.f32 1.0, %v6053_v27 }
0x28ba   :  { %6054 = vrcp.f32 %v2859_v22 }
0x28c4   :  { %v6055_v6 = vpop.eup %6054 }
0x28c5   :  { %v2869_v7 = vmul.f32 %v6055_v6, %v2867_v36 }
0x2929   :  { %v2872_v26 = vpop.permute.xlu1 %2871 }
0x292a   :  { %v2874_v28 = vmul.f32 %v6055_v6, %v2872_v26 }
0x292c   :  { %2876 = vrot.lane.b32.xlu0 %v2874_v28, %s6308_s2 }
0x299e   :  { %v2877_v37 = vpop.permute.xlu0 %2876 }
0x299f   :  { %v2879_v24 = vadd.f32 %v2877_v37, %v2869_v7 }
0x29a1   :  { %6056 = vtanh.f32 %v2879_v24  ;;  %v2989_v47 = vrot.slane %v2879_v24, 7 }
0x29a2   :  { %6058 = vpow2.f32 %v5039_v13 }
0x29ab   :  { %v6057_v12 = vpop.eup %6056 }
0x29ac   :  { %2882 = vrot.lane.b32.xlu1 %v6057_v12, %s6308_s2  ;;  %v6059_v16 = vpop.eup %6058 }
0x29ad   :  { %v2860_v14 = vadd.f32 1.0, %v6059_v16 }
0x29af   :  { %6060 = vrcp.f32 %v2860_v14 }
0x29b9   :  { %v6061_v19 = vpop.eup %6060 }
0x2a1e   :  { %v2883_v20 = vpop.permute.xlu1 %2882 }
0x2a1f   :  { %v2885_v61 = vmul.f32 %v6061_v19, %v2883_v20 }
0x2a21   :  { %v2893_v11 = vrot.slane %v2885_v61, 1  ;;  %v3595_v31 = vsel %vm3594_vm9, %v7355_v53, %v2885_v61 }
0x2a23   :  { %5040 = vmatmul.mubr.msk.f32.vlgmr.msra.gmra.mrb[22].mxu0 %vm118_vm0, %v2893_v11 }
0x2a24   :  { %5521 = vmatpush1.bf16.msra.mxu0 %v7201_v15  ;;  %3198 = vmatprep.mubr.f32.mxu0 %v6307_v0 }
0x2a25   :  { %5523 = vmatprep.subr.bf16.mxu0 %v7211_v18 }
0x2a28   :  { %5525 = vmatpush1.bf16.msra.mxu0 %v7219_v23 }
0x2a29   :  { %5527 = vmatprep.subr.bf16.mxu0 %v7229_v25 }
0x2a2c   :  { %5529 = vmatpush1.bf16.msra.mxu0 %v7237_v55 }
0x2a2d   :  { %5531 = vmatprep.subr.bf16.mxu0 %v7247_v1 }
0x2a30   :  { %5533 = vmatpush1.bf16.msra.mxu0 %v7255_v8 }
0x2a31   :  { %5551 = vmatprep.subr.bf16.mxu0 %v7193_v9 }
0x2af6   :  { %v2962_v30 = vpop.f32.mrb[22].mxu0 }
0x2af7   :  { %v2964_v43 = vpop.f32.mrb[23].mxu0  ;;  %v2969_v34 = vrot.slane %v2962_v30, 6 }
0x2af8   :  { %v2970_v44 = vrot.slane %v2964_v43, 6 }
0x2af9   :  { %v2973_v5 = vadd.f32 %v2969_v34, %v7338_v32 }
0x2afa   :  { %v2974_v33 = vadd.f32 %v2970_v44, %v7346_v62 }
0x2afb   :  { %v5041_v35 = vmul.f32 -1.442695, %v2973_v5 }
0x2afc   :  { %6062 = vtanh.f32 %v2974_v33  ;;  %v5042_v52 = vmul.f32 -1.442695, %v2974_v33 }
0x2afd   :  { %6064 = vpow2.f32 %v5041_v35 }
0x2b06   :  { %v6063_v45 = vpop.eup %6062 }
0x2b07   :  { %2993 = vrot.lane.b32.xlu0 %v6063_v45, %s6308_s2  ;;  %v6065_v46 = vpop.eup %6064 }
0x2b08   :  { %v2981_v40 = vadd.f32 1.0, %v6065_v46 }
0x2b0a   :  { %6066 = vrcp.f32 %v2981_v40 }
0x2b14   :  { %v6067_v50 = vpop.eup %6066 }
0x2b15   :  { %v2991_v49 = vmul.f32 %v6067_v50, %v2989_v47 }
0x2b79   :  { %v2994_v17 = vpop.permute.xlu0 %2993 }
0x2b7a   :  { %v2996_v41 = vmul.f32 %v6067_v50, %v2994_v17 }
0x2b7c   :  { %2998 = vrot.lane.b32.xlu1 %v2996_v41, %s6308_s2 }
0x2bee   :  { %v2999_v10 = vpop.permute.xlu1 %2998 }
0x2bef   :  { %v3001_v29 = vadd.f32 %v2999_v10, %v2991_v49 }
0x2bf1   :  { %6068 = vtanh.f32 %v3001_v29  ;;  %v3111_v16 = vrot.slane %v3001_v29, 7 }
0x2bf2   :  { %6070 = vpow2.f32 %v5042_v52 }
0x2bfb   :  { %v6069_v48 = vpop.eup %6068 }
0x2bfc   :  { %3004 = vrot.lane.b32.xlu0 %v6069_v48, %s6308_s2  ;;  %v6071_v21 = vpop.eup %6070 }
0x2bfd   :  { %v2982_v54 = vadd.f32 1.0, %v6071_v21 }
0x2bff   :  { %6072 = vrcp.f32 %v2982_v54 }
0x2c09   :  { %v6073_v56 = vpop.eup %6072 }
0x2c6e   :  { %v3005_v57 = vpop.permute.xlu0 %3004 }
0x2c6f   :  { %v3007_v58 = vmul.f32 %v6073_v56, %v3005_v57 }
0x2c71   :  { %v3015_v63 = vrot.slane %v3007_v58, 2  ;;  %v3597_v2 = vsel %vm3596_vm10, %v3595_v31, %v3007_v58 }
0x2c73   :  { %5043 = vmatmul.mubr.msk.f32.vlgmr.msra.gmra.mrb[18].mxu1 %vm118_vm0, %v3015_v63 }
0x2c74   :  { %5537 = vmatpush1.bf16.msra.mxu1 %v7201_v15  ;;  %3314 = vmatprep.mubr.f32.mxu1 %v6307_v0 }
0x2c75   :  { %5539 = vmatprep.subr.bf16.mxu1 %v7211_v18 }
0x2c78   :  { %5541 = vmatpush1.bf16.msra.mxu1 %v7219_v23 }
0x2c79   :  { %5543 = vmatprep.subr.bf16.mxu1 %v7229_v25 }
0x2c7c   :  { %5545 = vmatpush1.bf16.msra.mxu1 %v7237_v55 }
0x2c7d   :  { %5547 = vmatprep.subr.bf16.mxu1 %v7247_v1 }
0x2c80   :  { %5549 = vmatpush1.bf16.msra.mxu1 %v7255_v8 }
0x2c81   :  { %5567 = vmatprep.subr.bf16.mxu1 %v7193_v9 }
0x2d46   :  { %v3084_v53 = vpop.f32.mrb[18].mxu1 }
0x2d47   :  { %v3086_v27 = vpop.f32.mrb[19].mxu1  ;;  %v3091_v28 = vrot.slane %v3084_v53, 5 }
0x2d48   :  { %v3092_v22 = vrot.slane %v3086_v27, 5 }
0x2d49   :  { %v3095_v36 = vadd.f32 %v3091_v28, %v7340_v60 }
0x2d4a   :  { %v3096_v6 = vadd.f32 %v3092_v22, %v7348_v42 }
0x2d4b   :  { %v5044_v7 = vmul.f32 -1.442695, %v3095_v36 }
0x2d4c   :  { %6074 = vtanh.f32 %v3096_v6  ;;  %v5045_v11 = vmul.f32 -1.442695, %v3096_v6 }
0x2d4d   :  { %6076 = vpow2.f32 %v5044_v7 }
0x2d56   :  { %v6075_v26 = vpop.eup %6074 }
0x2d57   :  { %3115 = vrot.lane.b32.xlu1 %v6075_v26, %s6308_s2  ;;  %v6077_v37 = vpop.eup %6076 }
0x2d58   :  { %v3103_v24 = vadd.f32 1.0, %v6077_v37 }
0x2d5a   :  { %6078 = vrcp.f32 %v3103_v24 }
0x2d64   :  { %v6079_v12 = vpop.eup %6078 }
0x2d65   :  { %v3113_v14 = vmul.f32 %v6079_v12, %v3111_v16 }
0x2dc9   :  { %v3116_v13 = vpop.permute.xlu1 %3115 }
0x2dca   :  { %v3118_v9 = vmul.f32 %v6079_v12, %v3116_v13 }
0x2dcc   :  { %3120 = vrot.lane.b32.xlu0 %v3118_v9, %s6308_s2 }
0x2e3e   :  { %v3121_v19 = vpop.permute.xlu0 %3120 }
0x2e3f   :  { %v3123_v20 = vadd.f32 %v3121_v19, %v3113_v14 }
0x2e41   :  { %6080 = vtanh.f32 %v3123_v20  ;;  %v3227_v54 = vrot.slane %v3123_v20, 7 }
0x2e42   :  { %6082 = vpow2.f32 %v5045_v11 }
0x2e4b   :  { %v6081_v61 = vpop.eup %6080 }
0x2e4c   :  { %3126 = vrot.lane.b32.xlu1 %v6081_v61, %s6308_s2  ;;  %v6083_v30 = vpop.eup %6082 }
0x2e4d   :  { %v3104_v43 = vadd.f32 1.0, %v6083_v30 }
0x2e4f   :  { %6084 = vrcp.f32 %v3104_v43 }
0x2e59   :  { %v6085_v44 = vpop.eup %6084 }
0x2ebe   :  { %v3127_v33 = vpop.permute.xlu1 %3126 }
0x2ebf   :  { %v3129_v45 = vmul.f32 %v6085_v44, %v3127_v33 }
0x2ec1   :  { %v3131_v34 = vrot.slane %v3129_v45, 3  ;;  %v3599_v5 = vsel %vm3598_vm11, %v3597_v2, %v3129_v45 }
0x2ec3   :  { %5046 = vmatmul.mubr.msk.f32.vlgmr.msra.gmra.mrb[24].mxu0 %vm118_vm0, %v3131_v34 }
0x2ec4   :  { %5553 = vmatpush1.bf16.msra.mxu0 %v7201_v15  ;;  %3430 = vmatprep.mubr.f32.mxu0 %v6307_v0 }
0x2ec5   :  { %5555 = vmatprep.subr.bf16.mxu0 %v7211_v18 }
0x2ec8   :  { %5557 = vmatpush1.bf16.msra.mxu0 %v7219_v23 }
0x2ec9   :  { %5559 = vmatprep.subr.bf16.mxu0 %v7229_v25 }
0x2ecc   :  { %5561 = vmatpush1.bf16.msra.mxu0 %v7237_v55 }
0x2ecd   :  { %5563 = vmatprep.subr.bf16.mxu0 %v7247_v1 }
0x2ed0   :  { %5565 = vmatpush1.bf16.msra.mxu0 %v7255_v8 }
0x2f96   :  { %v3200_v35 = vpop.f32.mrb[24].mxu0 }
0x2f97   :  { %v3202_v46 = vpop.f32.mrb[25].mxu0  ;;  %v3207_v41 = vrot.slane %v3200_v35, 4 }
0x2f98   :  { %v3208_v40 = vrot.slane %v3202_v46, 4 }
0x2f99   :  { %v3211_v47 = vadd.f32 %v3207_v41, %v7334_v51 }
0x2f9a   :  { %v3212_v50 = vadd.f32 %v3208_v40, %v7342_v38 }
0x2f9b   :  { %v5047_v49 = vmul.f32 -1.442695, %v3211_v47 }
0x2f9c   :  { %6086 = vtanh.f32 %v3212_v50  ;;  %v5048_v31 = vmul.f32 -1.442695, %v3212_v50 }
0x2f9d   :  { %6088 = vpow2.f32 %v5047_v49 }
0x2fa6   :  { %v6087_v17 = vpop.eup %6086 }
0x2fa7   :  { %3231 = vrot.lane.b32.xlu0 %v6087_v17, %s6308_s2  ;;  %v6089_v10 = vpop.eup %6088 }
0x2fa8   :  { %v3219_v29 = vadd.f32 1.0, %v6089_v10 }
0x2faa   :  { %6090 = vrcp.f32 %v3219_v29 }
0x2fb4   :  { %v6091_v48 = vpop.eup %6090 }
0x2fb5   :  { %v3229_v56 = vmul.f32 %v6091_v48, %v3227_v54 }
0x3019   :  { %v3232_v52 = vpop.permute.xlu0 %3231 }
0x301a   :  { %v3234_v21 = vmul.f32 %v6091_v48, %v3232_v52 }
0x301c   :  { %3236 = vrot.lane.b32.xlu1 %v3234_v21, %s6308_s2 }
0x308e   :  { %v3237_v38 = vpop.permute.xlu1 %3236 }
0x308f   :  { %v3239_v57 = vadd.f32 %v3237_v38, %v3229_v56 }
0x3091   :  { %6092 = vtanh.f32 %v3239_v57  ;;  %v3343_v12 = vrot.slane %v3239_v57, 7 }
0x3092   :  { %6094 = vpow2.f32 %v5048_v31 }
0x309b   :  { %v6093_v58 = vpop.eup %6092 }
0x309c   :  { %3242 = vrot.lane.b32.xlu0 %v6093_v58, %s6308_s2  ;;  %v6095_v51 = vpop.eup %6094 }
0x309d   :  { %v3220_v63 = vadd.f32 1.0, %v6095_v51 }
0x309f   :  { %6096 = vrcp.f32 %v3220_v63 }
0x30a9   :  { %v6097_v2 = vpop.eup %6096 }
0x310e   :  { %v3243_v53 = vpop.permute.xlu0 %3242 }
0x310f   :  { %v3245_v27 = vmul.f32 %v6097_v2, %v3243_v53 }
0x3111   :  { %v3247_v22 = vrot.slane %v3245_v27, 4  ;;  %v3601_v6 = vsel %vm3600_vm12, %v3599_v5, %v3245_v27 }
0x3113   :  { %5049 = vmatmul.mubr.msk.f32.vlgmr.msra.gmra.mrb[20].mxu1 %vm118_vm0, %v3247_v22 }
0x3114   :  { %5569 = vmatpush1.bf16.msra.mxu1 %v7201_v15  ;;  %3546 = vmatprep.mubr.f32.mxu1 %v6307_v0 }
0x3115   :  { %5571 = vmatprep.subr.bf16.mxu1 %v7211_v18 }
0x3118   :  { %5573 = vmatpush1.bf16.msra.mxu1 %v7219_v23 }
0x3119   :  { %5575 = vmatprep.subr.bf16.mxu1 %v7229_v25 }
0x311c   :  { %5577 = vmatpush1.bf16.msra.mxu1 %v7237_v55 }
0x311d   :  { %5579 = vmatprep.subr.bf16.mxu1 %v7247_v1 }
0x3120   :  { %5581 = vmatpush1.bf16.msra.mxu1 %v7255_v8 }
0x31e6   :  { %v3316_v26 = vpop.f32.mrb[20].mxu1 }
0x31e7   :  { %v3318_v28 = vpop.f32.mrb[21].mxu1  ;;  %v3323_v18 = vrot.slane %v3316_v26, 3 }
0x31e8   :  { %v3324_v36 = vrot.slane %v3318_v28, 3 }
0x31e9   :  { %v3327_v23 = vadd.f32 %v3323_v18, %v7336_v4 }
0x31ea   :  { %v3328_v7 = vadd.f32 %v3324_v36, %v7344_v39 }
0x31eb   :  { %v5050_v37 = vmul.f32 -1.442695, %v3327_v23  ;;  %v3611_v23 = vld [vmem:[#allocation4 + $0x18] sm:$0xff] }
0x31ec   :  { %6098 = vtanh.f32 %v3328_v7  ;;  %v5051_v14 = vmul.f32 -1.442695, %v3328_v7 }
0x31ed   :  { %6100 = vpow2.f32 %v5050_v37  ;;  %v3608_v37 = vld [vmem:[#allocation4] sm:$0xff] }
0x31f6   :  { %v6099_v15 = vpop.eup %6098 }
0x31f7   :  { %3347 = vrot.lane.b32.xlu1 %v6099_v15, %s6308_s2  ;;  %v6101_v25 = vpop.eup %6100 }
0x31f8   :  { %v3335_v55 = vadd.f32 1.0, %v6101_v25 }
0x31fa   :  { %6102 = vrcp.f32 %v3335_v55  ;;  %v3610_v55 = vld [vmem:[#allocation4 + $0x10] sm:$0xff] }
0x3204   :  { %v6103_v1 = vpop.eup %6102 }
0x3205   :  { %v3345_v13 = vmul.f32 %v6103_v1, %v3343_v12  ;;  %v3710_v12 = vld [vmem:[#allocation4 + $0x80] sm:$0xff] }
0x3269   :  { %v3348_v24 = vpop.permute.xlu1 %3347 }
0x326a   :  { %v3350_v8 = vmul.f32 %v6103_v1, %v3348_v24  ;;  %v3711_v1 = vld [vmem:[#allocation4 + $0x88] sm:$0xff]  ;;  %v3713_v24 = vld [vmem:[#allocation4 + $0x98] sm:$0xff] }
0x326c   :  { %3352 = vrot.lane.b32.xlu0 %v3350_v8, %s6308_s2  ;;  %v5598_v8 = vpack.c.bf16 %v3713_v24, %v3711_v1 }
0x326e   :  { %5599 = vmatprep.subr.bf16.mxu1 %v5598_v8 }
0x32de   :  { %v3353_v39 = vpop.permute.xlu0 %3352 }
0x32df   :  { %v3355_v9 = vadd.f32 %v3353_v39, %v3345_v13  ;;  %v3712_v13 = vld [vmem:[#allocation4 + $0x90] sm:$0xff]  ;;  %v3613_v39 = vld [vmem:[#allocation4 + $0x28] sm:$0xff] }
0x32e1   :  { %6104 = vtanh.f32 %v3355_v9  ;;  %v3459_v10 = vrot.slane %v3355_v9, 7  ;;  %v5600_v9 = vpack.c.bf16 %v3712_v13, %v3710_v12  ;;  %v3801_v12 = vld [vmem:[#allocation4 + $0x120] sm:$0xff]  ;;  %v3803_v13 = vld [vmem:[#allocation4 + $0x130] sm:$0xff] }
0x32e2   :  { %6106 = vpow2.f32 %v5051_v14  ;;  %v3612_v14 = vld [vmem:[#allocation4 + $0x20] sm:$0xff] }
0x32eb   :  { %v6105_v16 = vpop.eup %6104 }
0x32ec   :  { %3358 = vrot.lane.b32.xlu1 %v6105_v16, %s6308_s2  ;;  %v6107_v4 = vpop.eup %6106  ;;  %v3615_v16 = vld [vmem:[#allocation4 + $0x38] sm:$0xff] }
0x32ed   :  { %v3336_v19 = vadd.f32 1.0, %v6107_v4  ;;  %v3614_v4 = vld [vmem:[#allocation4 + $0x30] sm:$0xff] }
0x32ef   :  { %6108 = vrcp.f32 %v3336_v19  ;;  %v5586_v19 = vpack.c.bf16 %v3615_v16, %v3613_v39  ;;  %v3806_v39 = vld [vmem:[#allocation4 + $0x148] sm:$0xff]  ;;  %v7479_v16 = vpack.c.bf16 %v3803_v13, %v3801_v12 }
0x32f9   :  { %v6109_v20 = vpop.eup %6108 }
0x335e   :  { %v3359_v61 = vpop.permute.xlu1 %3358 }
0x335f   :  { %v3361_v11 = vmul.f32 %v6109_v20, %v3359_v61  ;;  %v5588_v20 = vpack.c.bf16 %v3614_v4, %v3612_v14  ;;  %v3715_v61 = vld [vmem:[#allocation4 + $0xa8] sm:$0xff]  ;;  %v3805_v4 = vld [vmem:[#allocation4 + $0x140] sm:$0xff] }
0x3361   :  { %v3363_v30 = vrot.slane %v3361_v11, 5  ;;  %v3603_v43 = vsel %vm3602_vm13, %v3601_v6, %v3361_v11  ;;  %v3717_v11 = vld [vmem:[#allocation4 + $0xb8] sm:$0xff] }
0x3363   :  { %5052 = vmatmul.mubr.msk.f32.vlgmr.msra.gmra.mrb[26].mxu0 %vm118_vm0, %v3363_v30  ;;  %v3714_v30 = vld [vmem:[#allocation4 + $0xa0] sm:$0xff] }
0x3364   :  { %3703 = vmatprep.mubr.f32.mxu0 %v6307_v0 }
0x3436   :  { %v3432_v44 = vpop.f32.mrb[26].mxu0 }
0x3437   :  { %v3434_v33 = vpop.f32.mrb[27].mxu0  ;;  %v3439_v35 = vrot.slane %v3432_v44, 2  ;;  %v3716_v44 = vld [vmem:[#allocation4 + $0xb0] sm:$0xff] }
0x3438   :  { %v3440_v45 = vrot.slane %v3434_v33, 2  ;;  %v3617_v33 = vld [vmem:[#allocation4 + $0x48] sm:$0xff] }
0x3439   :  { %v3443_v46 = vadd.f32 %v3439_v35, %v7338_v32  ;;  %v3616_v35 = vld [vmem:[#allocation4 + $0x40] sm:$0xff] }
0x343a   :  { %v3444_v34 = vadd.f32 %v3440_v45, %v7346_v62  ;;  %v3619_v45 = vld [vmem:[#allocation4 + $0x58] sm:$0xff] }
0x343b   :  { %v5053_v40 = vmul.f32 -1.442695, %v3443_v46  ;;  %v3618_v46 = vld [vmem:[#allocation4 + $0x50] sm:$0xff] }
0x343c   :  { %6110 = vtanh.f32 %v3444_v34  ;;  %v5054_v32 = vmul.f32 -1.442695, %v3444_v34  ;;  %v5604_v34 = vpack.c.bf16 %v3716_v44, %v3714_v30  ;;  %v3809_v30 = vld [vmem:[#allocation4 + $0x160] sm:$0xff] }
0x343d   :  { %6112 = vpow2.f32 %v5053_v40  ;;  %v3719_v40 = vld [vmem:[#allocation4 + $0xc8] sm:$0xff] }
0x3446   :  { %v6111_v5 = vpop.eup %6110 }
0x3447   :  { %3463 = vrot.lane.b32.xlu0 %v6111_v5, %s6308_s2  ;;  %v6113_v50 = vpop.eup %6112  ;;  %v5590_v5 = vpack.c.bf16 %v3619_v45, %v3617_v33  ;;  %v3624_v33 = vld [vmem:[%s7695_s9] sm:$0x3]  ;;  %s6311_s9 = smov 96  }
0x3448   :  { %v3451_v17 = vadd.f32 1.0, %v6113_v50  ;;  %v3721_v50 = vld [vmem:[#allocation4 + $0xd8] sm:$0xff]  ;;  %v3629_v45 = vrot.slane %v3624_v33, %v6507_v3 }
0x344a   :  { %6114 = vrcp.f32 %v3451_v17  ;;  %v3718_v17 = vld [vmem:[#allocation4 + $0xc0] sm:$0xff] }
0x3454   :  { %v6115_v41 = vpop.eup %6114 }
0x3455   :  { %v3461_v29 = vmul.f32 %v6115_v41, %v3459_v10  ;;  %v3621_v10 = vld [vmem:[#allocation4 + $0x68] sm:$0xff] }
0x34b9   :  { %v3464_v47 = vpop.permute.xlu0 %3463 }
0x34ba   :  { %v3466_v49 = vmul.f32 %v6115_v41, %v3464_v47  ;;  %v3720_v41 = vld [vmem:[#allocation4 + $0xd0] sm:$0xff]  ;;  %v5592_v47 = vpack.c.bf16 %v3618_v46, %v3616_v35 }
0x34bc   :  { %3468 = vrot.lane.b32.xlu1 %v3466_v49, %s6308_s2  ;;  %v5606_v49 = vpack.c.bf16 %v3721_v50, %v3719_v40 }
0x352e   :  { %v3469_v62 = vpop.permute.xlu1 %3468 }
0x352f   :  { %v7443_v48 = vadd.f32 %v3469_v62, %v3461_v29  ;;  %v3623_v29 = vld [vmem:[#allocation4 + $0x78] sm:$0xff]  ;;  %v3620_v62 = vld [vmem:[#allocation4 + $0x60] sm:$0xff] }
0x3531   :  { %6116 = vtanh.f32 %v7443_v48 }
0x3532   :  { %6118 = vpow2.f32 %v5054_v32  ;;  %v5594_v32 = vpack.c.bf16 %v3623_v29, %v3621_v10 }
0x353b   :  { %v6117_v52 = vpop.eup %6116 }
0x353c   :  { %3474 = vrot.lane.b32.xlu0 %v6117_v52, %s6308_s2  ;;  %v6119_v21 = vpop.eup %6118  ;;  %v5608_v52 = vpack.c.bf16 %v3720_v41, %v3718_v17 }
0x353d   :  { %v3452_v54 = vadd.f32 1.0, %v6119_v21  ;;  %v3622_v21 = vld [vmem:[#allocation4 + $0x70] sm:$0xff] }
0x353f   :  { %6120 = vrcp.f32 %v3452_v54  ;;  %v3723_v54 = vld [vmem:[#allocation4 + $0xe8] sm:$0xff] }
0x3549   :  { %v6121_v56 = vpop.eup %6120 }
0x35ae   :  { %v3475_v38 = vpop.permute.xlu0 %3474 }
0x35af   :  { %v3477_v57 = vmul.f32 %v6121_v56, %v3475_v38  ;;  %v3725_v56 = vld [vmem:[#allocation4 + $0xf8] sm:$0xff] }
0x35b0   :  { %v5610_v38 = vpack.c.bf16 %v3725_v56, %v3723_v54 }
0x35b1   :  { %v3479_v58 = vrot.slane %v3477_v57, 6  ;;  %v7448_v31 = vsel %vm3604_vm14, %v3603_v43, %v3477_v57  ;;  %v5602_v43 = vpack.c.bf16 %v3717_v11, %v3715_v61  ;;  %v5596_v57 = vpack.c.bf16 %v3622_v21, %v3620_v62 }
0x35b3   :  { %5055 = vmatmul.mubr.msk.f32.vlgmr.msra.gmra.mrb[22].mxu1 %vm118_vm0, %v3479_v58  ;;  %v3575_v58 = vrot.slane %v7443_v48, 7 }
0x35b4   :  { %3790 = vmatprep.mubr.f32.mxu1 %v6307_v0  ;;  %5601 = vmatpush1.bf16.msra.mxu1 %v5600_v9  ;;  %v3808_v9 = vld [vmem:[#allocation4 + $0x158] sm:$0xff] }
0x35b5   :  { %5603 = vmatprep.subr.bf16.mxu1 %v5602_v43  ;;  %v7483_v14 = vpack.c.bf16 %v3808_v9, %v3806_v39  ;;  %v3811_v43 = vld [vmem:[#allocation4 + $0x170] sm:$0xff] }
0x35b6   :  { %v7497_v44 = vpack.c.bf16 %v3811_v43, %v3809_v30 }
0x35b8   :  { %5605 = vmatpush1.bf16.msra.mxu1 %v5604_v34  ;;  %v3633_v34 = vrot.slane %v3624_v33, %v6497_v59 }
0x35b9   :  { %5607 = vmatprep.subr.bf16.mxu1 %v5606_v49 }
0x35bc   :  { %5609 = vmatpush1.bf16.msra.mxu1 %v5608_v52 }
0x35bd   :  { %5611 = vmatprep.subr.bf16.mxu1 %v5610_v38 }
0x3686   :  { %v3548_v51 = vpop.f32.mrb[22].mxu1 }
0x3687   :  { %v3550_v63 = vpop.f32.mrb[23].mxu1  ;;  %v3555_v22 = vrot.slane %v3548_v51, 1  ;;  %v3722_v51 = vld [vmem:[#allocation4 + $0xe0] sm:$0xff] }
0x3688   :  { %v3556_v2 = vrot.slane %v3550_v63, 1  ;;  %v3724_v63 = vld [vmem:[#allocation4 + $0xf0] sm:$0xff] }
0x3689   :  { %v3559_v6 = vadd.f32 %v3555_v22, %v7340_v60  ;;  %v5584_v60 = vpack.c.bf16 %v3610_v55, %v3608_v37  ;;  %v3802_v37 = vld [vmem:[#allocation4 + $0x128] sm:$0xff] }
0x368a   :  { %v7453_v53 = vadd.f32 %v3556_v2, %v7348_v42  ;;  %v3609_v42 = vld [vmem:[#allocation4 + $0x8] sm:$0xff] }
0x368b   :  { %v5056_v26 = vmul.f32 -1.442695, %v3559_v6  ;;  %v5582_v25 = vpack.c.bf16 %v3611_v23, %v3609_v42  ;;  %v3798_v6 = vld [vmem:[#allocation4 + $0x108] sm:$0xff]  ;;  %v3797_v42 = vld [vmem:[#allocation4 + $0x100] sm:$0xff]  ;;  %v3799_v23 = vld [vmem:[#allocation4 + $0x110] sm:$0xff] }
0x368c   :  { %6122 = vtanh.f32 %v7453_v53  ;;  %v5057_v48 = vmul.f32 -1.442695, %v7453_v53 }
0x368d   :  { %6124 = vpow2.f32 %v5056_v26  ;;  %5583 = vmatprep.subr.bf16.mxu0 %v5582_v25  ;;  %v3800_v26 = vld [vmem:[#allocation4 + $0x118] sm:$0xff] }
0x368e   :  { %5585 = vmatpush1.bf16.msra.mxu0 %v5584_v60  ;;  %v3804_v25 = vld [vmem:[#allocation4 + $0x138] sm:$0xff]  ;;  %v7470_v60 = vpack.c.bf16 %v3799_v23, %v3797_v42 }
0x368f   :  { %5587 = vmatprep.subr.bf16.mxu0 %v5586_v19  ;;  %v7472_v8 = vpack.c.bf16 %v3804_v25, %v3802_v37  ;;  %v3807_v19 = vld [vmem:[#allocation4 + $0x150] sm:$0xff] }
0x3690   :  { %v7489_v61 = vpack.c.bf16 %v3807_v19, %v3805_v4 }
0x3692   :  { %5589 = vmatpush1.bf16.msra.mxu0 %v5588_v20  ;;  %v3812_v20 = vld [vmem:[#allocation4 + $0x178] sm:$0xff] }
0x3693   :  { %5591 = vmatprep.subr.bf16.mxu0 %v5590_v5 }
0x3696   :  { %v6123_v27 = vpop.eup %6122  ;;  %5593 = vmatpush1.bf16.msra.mxu0 %v5592_v47 }
0x3697   :  { %3579 = vrot.lane.b32.xlu1 %v6123_v27, %s6308_s2  ;;  %v6125_v28 = vpop.eup %6124  ;;  %5595 = vmatprep.subr.bf16.mxu0 %v5594_v32  ;;  %v5612_v27 = vpack.c.bf16 %v3724_v63, %v3722_v51 }
0x3698   :  { %v3567_v36 = vadd.f32 1.0, %v6125_v28 }
0x3699   :  { %5613 = vmatpush1.bf16.msra.mxu1 %v5612_v27 }
0x369a   :  { %6126 = vrcp.f32 %v3567_v36  ;;  %5597 = vmatpush1.bf16.msra.mxu0 %v5596_v57  ;;  %v7464_v36 = vpack.c.bf16 %v3800_v26, %v3798_v6 }
0x369c   :  { %5615 = vmatprep.subr.bf16.mxu0 %v7464_v36  ;;  %5631 = vmatprep.subr.bf16.mxu1 %v7464_v36 }
0x36a4   :  { %v7458_v7 = vpop.eup %6126 }
0x36a5   :  { %v3577_v2 = vmul.f32 %v7458_v7, %v3575_v58 }
0x3709   :  { %v3580_v15 = vpop.permute.xlu1 %3579 }
0x370a   :  { %v3582_v18 = vmul.f32 %v7458_v7, %v3580_v15 }
0x370c   :  { %3584 = vrot.lane.b32.xlu0 %v3582_v18, %s6308_s2 }
0x377e   :  { %v3585_v22 = vpop.permute.xlu0 %3584 }
0x377f   :  { %v3587_v28 = vadd.f32 %v3585_v22, %v3577_v2 }
0x3781   :  { %6128 = vtanh.f32 %v3587_v28 }
0x3782   :  { %6130 = vpow2.f32 %v5057_v48 }
0x378b   :  { %v6129_v15 = vpop.eup %6128 }
0x378c   :  { %3590 = vrot.lane.b32.xlu1 %v6129_v15, %s6308_s2  ;;  %v6131_v7 = vpop.eup %6130 }
0x378d   :  { %v3568_v18 = vadd.f32 1.0, %v6131_v7 }
0x378f   :  { %6132 = vrcp.f32 %v3568_v18 }
0x3799   :  { %v6133_v55 = vpop.eup %6132 }
0x37fe   :  { %v3591_v1 = vpop.permute.xlu1 %3590 }
0x37ff   :  { %v3593_v24 = vmul.f32 %v6133_v55, %v3591_v1 }
0x3801   :  { %v3607_v53 = vsel %vm3606_vm15, %v7448_v31, %v3593_v24  ;;  %v3810_v31 = vld [vmem:[#allocation4 + $0x168] sm:$0xff] }
0x3802   :  { %5058 = vmatmul.mubr.msk.f32.vlgmr.msra.gmra.mrb[28].mxu0 %vm118_vm0, %v3607_v53  ;;  %5059 = vmatmul.mubr.msk.f32.vlgmr.msra.gmra.mrb[24].mxu1 %vm118_vm0, %v3607_v53  ;;  %v7492_v11 = vpack.c.bf16 %v3812_v20, %v3810_v31 }
0x3803   :  { %5617 = vmatpush1.bf16.msra.mxu0 %v7470_v60  ;;  %3885 = vmatprep.mubr.f32.mxu0 %v6307_v0 }
0x3804   :  { %5619 = vmatprep.subr.bf16.mxu0 %v7472_v8  ;;  %5633 = vmatpush1.bf16.msra.mxu1 %v7470_v60 }
0x3805   :  { %5635 = vmatprep.subr.bf16.mxu1 %v7472_v8  ;;  %3997 = vmatprep.mubr.f32.mxu1 %v6307_v0 }
0x3807   :  { %5621 = vmatpush1.bf16.msra.mxu0 %v7479_v16 }
0x3808   :  { %5623 = vmatprep.subr.bf16.mxu0 %v7483_v14  ;;  %5637 = vmatpush1.bf16.msra.mxu1 %v7479_v16 }
0x3809   :  { %5639 = vmatprep.subr.bf16.mxu1 %v7483_v14 }
0x380b   :  { %5625 = vmatpush1.bf16.msra.mxu0 %v7489_v61 }
0x380c   :  { %5627 = vmatprep.subr.bf16.mxu0 %v7492_v11  ;;  %5641 = vmatpush1.bf16.msra.mxu1 %v7489_v61 }
0x380d   :  { %5643 = vmatprep.subr.bf16.mxu1 %v7492_v11 }
0x380f   :  { %5629 = vmatpush1.bf16.msra.mxu0 %v7497_v44 }
0x3810   :  { %5645 = vmatpush1.bf16.msra.mxu1 %v7497_v44  ;;  %5647 = vmatprep.subr.bf16.mxu0 %v7464_v36 }
0x3811   :  { %5663 = vmatprep.subr.bf16.mxu1 %v7464_v36 }
0x3812   :  { %3886 = vmatmul.mubr.f32.vlgmr.msra.gmra.mrb[30].mxu0 %v6307_v0 }
0x3813   :  { %5649 = vmatpush1.bf16.msra.mxu0 %v7470_v60  ;;  %4119 = vmatprep.mubr.f32.mxu0 %v6307_v0 }
0x3814   :  { %5651 = vmatprep.subr.bf16.mxu0 %v7472_v8 }
0x3817   :  { %5653 = vmatpush1.bf16.msra.mxu0 %v7479_v16 }
0x3818   :  { %5655 = vmatprep.subr.bf16.mxu0 %v7483_v14 }
0x381b   :  { %5657 = vmatpush1.bf16.msra.mxu0 %v7489_v61 }
0x381c   :  { %5659 = vmatprep.subr.bf16.mxu0 %v7492_v11 }
0x381f   :  { %5661 = vmatpush1.bf16.msra.mxu0 %v7497_v44 }
0x3820   :  { %5679 = vmatprep.subr.bf16.mxu0 %v7464_v36 }
0x38d5   :  { %v3705_v5 = vpop.f32.mrb[28].mxu0  ;;  %v3792_v35 = vpop.f32.mrb[24].mxu1 }
0x38d6   :  { %v3706_v46 = vadd.f32 %v3705_v5, %v3629_v45  ;;  %v3924_v40 = vrot.slane %v3792_v35, 5  ;;  %v4045_v50 = vrot.slane %v3792_v35, 3  ;;  %v4167_v17 = vrot.slane %v3792_v35, 1  ;;  %v3707_v41 = vpop.f32.mrb[29].mxu0  ;;  %v3794_v47 = vpop.f32.mrb[25].mxu1 }
0x38d7   :  { %v3708_v49 = vadd.f32 %v3707_v41, %v3633_v34  ;;  %v3925_v10 = vrot.slane %v3794_v47, 5  ;;  %v4046_v29 = vrot.slane %v3794_v47, 3  ;;  %v4168_v62 = vrot.slane %v3794_v47, 1 }
0x38d8   :  { %v3815_v52 = vrot.slane %v3792_v35, 7  ;;  %v3816_v32 = vrot.slane %v3794_v47, 7  ;;  %v7521_v21 = vadd.f32 %v3924_v40, %v3706_v46  ;;  %v7523_v54 = vadd.f32 %v4045_v50, %v3706_v46 }
0x38d9   :  { %v7525_v3 = vadd.f32 %v3925_v10, %v3708_v49  ;;  %v7527_v59 = vadd.f32 %v4046_v29, %v3708_v49  ;;  %v7529_v56 = vadd.f32 %v4167_v17, %v3706_v46  ;;  %v7531_v38 = vadd.f32 %v4168_v62, %v3708_v49 }
0x38da   :  { %v7533_v57 = vadd.f32 %v3815_v52, %v3706_v46  ;;  %v7535_v58 = vadd.f32 %v3816_v32, %v3708_v49 }
0x38e5   :  { %v3887_v51 = vpop.f32.mrb[30].mxu0 }
0x38e6   :  { %v3889_v63 = vpop.f32.mrb[31].mxu0  ;;  %v3892_v22 = vadd.f32 %v3887_v51, %v7533_v57 }
0x38e7   :  { %v3893_v2 = vadd.f32 %v3889_v63, %v7535_v58 }
0x38e8   :  { %v5060_v6 = vmul.f32 -1.442695, %v3892_v22 }
0x38e9   :  { %6134 = vtanh.f32 %v3893_v2  ;;  %v5061_v25 = vmul.f32 -1.442695, %v3893_v2 }
0x38ea   :  { %6136 = vpow2.f32 %v5060_v6 }
0x38f3   :  { %v6135_v27 = vpop.eup %6134 }
0x38f4   :  { %3909 = vrot.lane.b32.xlu0 %v6135_v27, %s6308_s2  ;;  %v6137_v26 = vpop.eup %6136 }
0x38f5   :  { %v3900_v28 = vadd.f32 1.0, %v6137_v26 }
0x38f7   :  { %6138 = vrcp.f32 %v3900_v28 }
0x3901   :  { %v6139_v15 = vpop.eup %6138 }
0x3902   :  { %v3907_v18 = vmul.f32 0.0, %v6139_v15 }
0x3966   :  { %v3910_v48 = vpop.permute.xlu0 %3909 }
0x3967   :  { %v3912_v7 = vmul.f32 %v6139_v15, %v3910_v48 }
0x3969   :  { %3914 = vrot.lane.b32.xlu1 %v3912_v7, %s6308_s2 }
0x39db   :  { %v3915_v42 = vpop.permute.xlu1 %3914 }
0x39dc   :  { %v3917_v23 = vadd.f32 %v3915_v42, %v3907_v18 }
0x39de   :  { %6140 = vtanh.f32 %v3917_v23  ;;  %v4026_v35 = vrot.slane %v3917_v23, 7 }
0x39df   :  { %6142 = vpow2.f32 %v5061_v25 }
0x39e8   :  { %v6141_v37 = vpop.eup %6140 }
0x39e9   :  { %3920 = vrot.lane.b32.xlu0 %v6141_v37, %s6308_s2  ;;  %v6143_v55 = vpop.eup %6142 }
0x39ea   :  { %v3901_v1 = vadd.f32 1.0, %v6143_v55 }
0x39ec   :  { %6144 = vrcp.f32 %v3901_v1 }
0x39f6   :  { %v6145_v24 = vpop.eup %6144 }
0x3a5b   :  { %v3921_v12 = vpop.permute.xlu0 %3920 }
0x3a5c   :  { %v7542_v13 = vmul.f32 %v6145_v24, %v3921_v12 }
0x3a5e   :  { %5062 = vmatmul.mubr.msk.f32.vlgmr.msra.gmra.mrb[26].mxu1 %vm118_vm0, %v7542_v13 }
0x3a5f   :  { %5665 = vmatpush1.bf16.msra.mxu1 %v7470_v60  ;;  %4241 = vmatprep.mubr.f32.mxu1 %v6307_v0 }
0x3a60   :  { %5667 = vmatprep.subr.bf16.mxu1 %v7472_v8 }
0x3a63   :  { %5669 = vmatpush1.bf16.msra.mxu1 %v7479_v16 }
0x3a64   :  { %5671 = vmatprep.subr.bf16.mxu1 %v7483_v14 }
0x3a67   :  { %5673 = vmatpush1.bf16.msra.mxu1 %v7489_v61 }
0x3a68   :  { %5675 = vmatprep.subr.bf16.mxu1 %v7492_v11 }
0x3a6b   :  { %5677 = vmatpush1.bf16.msra.mxu1 %v7497_v44 }
0x3a6c   :  { %5695 = vmatprep.subr.bf16.mxu1 %v7464_v36 }
0x3b31   :  { %v3999_v53 = vpop.f32.mrb[26].mxu1 }
0x3b32   :  { %v4001_v39 = vpop.f32.mrb[27].mxu1  ;;  %v4006_v31 = vrot.slane %v3999_v53, 7 }
0x3b33   :  { %v4007_v9 = vrot.slane %v4001_v39, 7 }
0x3b34   :  { %v4010_v20 = vadd.f32 %v4006_v31, %v7521_v21 }
0x3b35   :  { %v4011_v4 = vadd.f32 %v4007_v9, %v7525_v3 }
0x3b36   :  { %v5063_v30 = vmul.f32 -1.442695, %v4010_v20 }
0x3b37   :  { %6146 = vtanh.f32 %v4011_v4  ;;  %v5064_v41 = vmul.f32 -1.442695, %v4011_v4 }
0x3b38   :  { %6148 = vpow2.f32 %v5063_v30 }
0x3b41   :  { %v6147_v19 = vpop.eup %6146 }
0x3b42   :  { %4030 = vrot.lane.b32.xlu1 %v6147_v19, %s6308_s2  ;;  %v6149_v43 = vpop.eup %6148 }
0x3b43   :  { %v4018_v33 = vadd.f32 1.0, %v6149_v43 }
0x3b45   :  { %6150 = vrcp.f32 %v4018_v33 }
0x3b4f   :  { %v6151_v45 = vpop.eup %6150 }
0x3b50   :  { %v4028_v46 = vmul.f32 %v6151_v45, %v4026_v35 }
0x3bb4   :  { %v4031_v34 = vpop.permute.xlu1 %4030 }
0x3bb5   :  { %v4033_v5 = vmul.f32 %v6151_v45, %v4031_v34 }
0x3bb7   :  { %4035 = vrot.lane.b32.xlu0 %v4033_v5, %s6308_s2 }
0x3c29   :  { %v4036_v40 = vpop.permute.xlu0 %4035 }
0x3c2a   :  { %v4038_v50 = vadd.f32 %v4036_v40, %v4028_v46 }
0x3c2c   :  { %6152 = vtanh.f32 %v4038_v50  ;;  %v4148_v42 = vrot.slane %v4038_v50, 7 }
0x3c2d   :  { %6154 = vpow2.f32 %v5064_v41 }
0x3c36   :  { %v6153_v17 = vpop.eup %6152 }
0x3c37   :  { %4041 = vrot.lane.b32.xlu1 %v6153_v17, %s6308_s2  ;;  %v6155_v47 = vpop.eup %6154 }
0x3c38   :  { %v4019_v49 = vadd.f32 1.0, %v6155_v47 }
0x3c3a   :  { %6156 = vrcp.f32 %v4019_v49 }
0x3c44   :  { %v6157_v10 = vpop.eup %6156 }
0x3ca9   :  { %v4042_v29 = vpop.permute.xlu1 %4041 }
0x3caa   :  { %v7560_v62 = vmul.f32 %v6157_v10, %v4042_v29 }
0x3cac   :  { %v4052_v52 = vrot.slane %v7560_v62, 1  ;;  %v4753_v4 = vsel %vm3594_vm9, %v7542_v13, %v7560_v62 }
0x3cae   :  { %5065 = vmatmul.mubr.msk.f32.vlgmr.msra.gmra.mrb[32].mxu0 %vm118_vm0, %v4052_v52 }
0x3caf   :  { %5681 = vmatpush1.bf16.msra.mxu0 %v7470_v60  ;;  %4357 = vmatprep.mubr.f32.mxu0 %v6307_v0 }
0x3cb0   :  { %5683 = vmatprep.subr.bf16.mxu0 %v7472_v8 }
0x3cb3   :  { %5685 = vmatpush1.bf16.msra.mxu0 %v7479_v16 }
0x3cb4   :  { %5687 = vmatprep.subr.bf16.mxu0 %v7483_v14 }
0x3cb7   :  { %5689 = vmatpush1.bf16.msra.mxu0 %v7489_v61 }
0x3cb8   :  { %5691 = vmatprep.subr.bf16.mxu0 %v7492_v11 }
0x3cbb   :  { %5693 = vmatpush1.bf16.msra.mxu0 %v7497_v44 }
0x3cbc   :  { %5711 = vmatprep.subr.bf16.mxu0 %v7464_v36 }
0x3d81   :  { %v4121_v32 = vpop.f32.mrb[32].mxu0 }
0x3d82   :  { %v4123_v51 = vpop.f32.mrb[33].mxu0  ;;  %v4128_v22 = vrot.slane %v4121_v32, 6 }
0x3d83   :  { %v4129_v63 = vrot.slane %v4123_v51, 6 }
0x3d84   :  { %v4132_v6 = vadd.f32 %v4128_v22, %v7523_v54 }
0x3d85   :  { %v4133_v2 = vadd.f32 %v4129_v63, %v7527_v59 }
0x3d86   :  { %v5066_v26 = vmul.f32 -1.442695, %v4132_v6 }
0x3d87   :  { %6158 = vtanh.f32 %v4133_v2  ;;  %v5067_v1 = vmul.f32 -1.442695, %v4133_v2 }
0x3d88   :  { %6160 = vpow2.f32 %v5066_v26 }
0x3d91   :  { %v6159_v27 = vpop.eup %6158 }
0x3d92   :  { %4152 = vrot.lane.b32.xlu0 %v6159_v27, %s6308_s2  ;;  %v6161_v28 = vpop.eup %6160 }
0x3d93   :  { %v4140_v15 = vadd.f32 1.0, %v6161_v28 }
0x3d95   :  { %6162 = vrcp.f32 %v4140_v15 }
0x3d9f   :  { %v6163_v48 = vpop.eup %6162 }
0x3da0   :  { %v4150_v23 = vmul.f32 %v6163_v48, %v4148_v42 }
0x3e04   :  { %v4153_v7 = vpop.permute.xlu0 %4152 }
0x3e05   :  { %v4155_v18 = vmul.f32 %v6163_v48, %v4153_v7 }
0x3e07   :  { %4157 = vrot.lane.b32.xlu1 %v4155_v18, %s6308_s2 }
0x3e79   :  { %v4158_v37 = vpop.permute.xlu1 %4157 }
0x3e7a   :  { %v4160_v25 = vadd.f32 %v4158_v37, %v4150_v23 }
0x3e7c   :  { %6164 = vtanh.f32 %v4160_v25  ;;  %v4270_v41 = vrot.slane %v4160_v25, 7 }
0x3e7d   :  { %6166 = vpow2.f32 %v5067_v1 }
0x3e86   :  { %v6165_v55 = vpop.eup %6164 }
0x3e87   :  { %4163 = vrot.lane.b32.xlu0 %v6165_v55, %s6308_s2  ;;  %v6167_v24 = vpop.eup %6166 }
0x3e88   :  { %v4141_v12 = vadd.f32 1.0, %v6167_v24 }
0x3e8a   :  { %6168 = vrcp.f32 %v4141_v12 }
0x3e94   :  { %v6169_v53 = vpop.eup %6168 }
0x3ef9   :  { %v4164_v39 = vpop.permute.xlu0 %4163 }
0x3efa   :  { %v7578_v9 = vmul.f32 %v6169_v53, %v4164_v39 }
0x3efc   :  { %v4174_v19 = vrot.slane %v7578_v9, 2  ;;  %v4754_v31 = vsel %vm3596_vm10, %v4753_v4, %v7578_v9 }
0x3efe   :  { %5068 = vmatmul.mubr.msk.f32.vlgmr.msra.gmra.mrb[28].mxu1 %vm118_vm0, %v4174_v19 }
0x3eff   :  { %5697 = vmatpush1.bf16.msra.mxu1 %v7470_v60  ;;  %4473 = vmatprep.mubr.f32.mxu1 %v6307_v0 }
0x3f00   :  { %5699 = vmatprep.subr.bf16.mxu1 %v7472_v8 }
0x3f03   :  { %5701 = vmatpush1.bf16.msra.mxu1 %v7479_v16 }
0x3f04   :  { %5703 = vmatprep.subr.bf16.mxu1 %v7483_v14 }
0x3f07   :  { %5705 = vmatpush1.bf16.msra.mxu1 %v7489_v61 }
0x3f08   :  { %5707 = vmatprep.subr.bf16.mxu1 %v7492_v11 }
0x3f0b   :  { %5709 = vmatpush1.bf16.msra.mxu1 %v7497_v44 }
0x3f0c   :  { %5727 = vmatprep.subr.bf16.mxu1 %v7464_v36 }
0x3fd1   :  { %v4243_v20 = vpop.f32.mrb[28].mxu1 }
0x3fd2   :  { %v4245_v30 = vpop.f32.mrb[29].mxu1  ;;  %v4250_v34 = vrot.slane %v4243_v20, 5 }
0x3fd3   :  { %v4251_v43 = vrot.slane %v4245_v30, 5 }
0x3fd4   :  { %v4254_v5 = vadd.f32 %v4250_v34, %v7529_v56 }
0x3fd5   :  { %v4255_v33 = vadd.f32 %v4251_v43, %v7531_v38 }
0x3fd6   :  { %v5069_v35 = vmul.f32 -1.442695, %v4254_v5 }
0x3fd7   :  { %6170 = vtanh.f32 %v4255_v33  ;;  %v5070_v52 = vmul.f32 -1.442695, %v4255_v33 }
0x3fd8   :  { %6172 = vpow2.f32 %v5069_v35 }
0x3fe1   :  { %v6171_v45 = vpop.eup %6170 }
0x3fe2   :  { %4274 = vrot.lane.b32.xlu1 %v6171_v45, %s6308_s2  ;;  %v6173_v46 = vpop.eup %6172 }
0x3fe3   :  { %v4262_v40 = vadd.f32 1.0, %v6173_v46 }
0x3fe5   :  { %6174 = vrcp.f32 %v4262_v40 }
0x3fef   :  { %v6175_v50 = vpop.eup %6174 }
0x3ff0   :  { %v4272_v47 = vmul.f32 %v6175_v50, %v4270_v41 }
0x4054   :  { %v4275_v17 = vpop.permute.xlu1 %4274 }
0x4055   :  { %v4277_v36 = vmul.f32 %v6175_v50, %v4275_v17 }
0x4057   :  { %4279 = vrot.lane.b32.xlu0 %v4277_v36, %s6308_s2 }
0x40c9   :  { %v4280_v49 = vpop.permute.xlu0 %4279 }
0x40ca   :  { %v4282_v10 = vadd.f32 %v4280_v49, %v4272_v47 }
0x40cc   :  { %6176 = vtanh.f32 %v4282_v10  ;;  %v4386_v12 = vrot.slane %v4282_v10, 7 }
0x40cd   :  { %6178 = vpow2.f32 %v5070_v52 }
0x40d6   :  { %v6177_v29 = vpop.eup %6176 }
0x40d7   :  { %4285 = vrot.lane.b32.xlu1 %v6177_v29, %s6308_s2  ;;  %v6179_v32 = vpop.eup %6178 }
0x40d8   :  { %v4263_v51 = vadd.f32 1.0, %v6179_v32 }
0x40da   :  { %6180 = vrcp.f32 %v4263_v51 }
0x40e4   :  { %v6181_v63 = vpop.eup %6180 }
0x4149   :  { %v4286_v2 = vpop.permute.xlu1 %4285 }
0x414a   :  { %v7601_v27 = vmul.f32 %v6181_v63, %v4286_v2 }
0x414c   :  { %v4290_v22 = vrot.slane %v7601_v27, 3  ;;  %v4755_v6 = vsel %vm3598_vm11, %v4754_v31, %v7601_v27 }
0x414e   :  { %5071 = vmatmul.mubr.msk.f32.vlgmr.msra.gmra.mrb[34].mxu0 %vm118_vm0, %v4290_v22 }
0x414f   :  { %5713 = vmatpush1.bf16.msra.mxu0 %v7470_v60  ;;  %4589 = vmatprep.mubr.f32.mxu0 %v6307_v0 }
0x4150   :  { %5715 = vmatprep.subr.bf16.mxu0 %v7472_v8 }
0x4153   :  { %5717 = vmatpush1.bf16.msra.mxu0 %v7479_v16 }
0x4154   :  { %5719 = vmatprep.subr.bf16.mxu0 %v7483_v14 }
0x4157   :  { %5721 = vmatpush1.bf16.msra.mxu0 %v7489_v61 }
0x4158   :  { %5723 = vmatprep.subr.bf16.mxu0 %v7492_v11 }
0x415b   :  { %5725 = vmatpush1.bf16.msra.mxu0 %v7497_v44 }
0x4221   :  { %v4359_v26 = vpop.f32.mrb[34].mxu0 }
0x4222   :  { %v4361_v28 = vpop.f32.mrb[35].mxu0  ;;  %v4366_v18 = vrot.slane %v4359_v26, 4 }
0x4223   :  { %v4367_v15 = vrot.slane %v4361_v28, 4 }
0x4224   :  { %v4370_v42 = vadd.f32 %v4366_v18, %v7533_v57 }
0x4225   :  { %v4371_v48 = vadd.f32 %v4367_v15, %v7535_v58 }
0x4226   :  { %v5072_v23 = vmul.f32 -1.442695, %v4370_v42 }
0x4227   :  { %6182 = vtanh.f32 %v4371_v48  ;;  %v5073_v19 = vmul.f32 -1.442695, %v4371_v48 }
0x4228   :  { %6184 = vpow2.f32 %v5072_v23 }
0x4231   :  { %v6183_v7 = vpop.eup %6182 }
0x4232   :  { %4390 = vrot.lane.b32.xlu0 %v6183_v7, %s6308_s2  ;;  %v6185_v37 = vpop.eup %6184 }
0x4233   :  { %v4378_v25 = vadd.f32 1.0, %v6185_v37 }
0x4235   :  { %6186 = vrcp.f32 %v4378_v25 }
0x423f   :  { %v6187_v55 = vpop.eup %6186 }
0x4240   :  { %v4388_v53 = vmul.f32 %v6187_v55, %v4386_v12 }
0x42a4   :  { %v4391_v1 = vpop.permute.xlu0 %4390 }
0x42a5   :  { %v4393_v24 = vmul.f32 %v6187_v55, %v4391_v1 }
0x42a7   :  { %4395 = vrot.lane.b32.xlu1 %v4393_v24, %s6308_s2 }
0x4319   :  { %v4396_v58 = vpop.permute.xlu1 %4395 }
0x431a   :  { %v4398_v39 = vadd.f32 %v4396_v58, %v4388_v53 }
0x431c   :  { %6188 = vtanh.f32 %v4398_v39  ;;  %v4502_v17 = vrot.slane %v4398_v39, 7 }
0x431d   :  { %6190 = vpow2.f32 %v5073_v19 }
0x4326   :  { %v6189_v4 = vpop.eup %6188 }
0x4327   :  { %4401 = vrot.lane.b32.xlu0 %v6189_v4, %s6308_s2  ;;  %v6191_v57 = vpop.eup %6190 }
0x4328   :  { %v4379_v31 = vadd.f32 1.0, %v6191_v57 }
0x432a   :  { %6192 = vrcp.f32 %v4379_v31 }
0x4334   :  { %v6193_v20 = vpop.eup %6192 }
0x4399   :  { %v4402_v30 = vpop.permute.xlu0 %4401 }
0x439a   :  { %v7620_v43 = vmul.f32 %v6193_v20, %v4402_v30 }
0x439c   :  { %v4406_v33 = vrot.slane %v7620_v43, 4  ;;  %v4756_v45 = vsel %vm3600_vm12, %v4755_v6, %v7620_v43 }
0x439e   :  { %5074 = vmatmul.mubr.msk.f32.vlgmr.msra.gmra.mrb[30].mxu1 %vm118_vm0, %v4406_v33 }
0x439f   :  { %5729 = vmatpush1.bf16.msra.mxu1 %v7470_v60  ;;  %4705 = vmatprep.mubr.f32.mxu1 %v6307_v0 }
0x43a0   :  { %5731 = vmatprep.subr.bf16.mxu1 %v7472_v8 }
0x43a3   :  { %5733 = vmatpush1.bf16.msra.mxu1 %v7479_v16 }
0x43a4   :  { %5735 = vmatprep.subr.bf16.mxu1 %v7483_v14 }
0x43a7   :  { %5737 = vmatpush1.bf16.msra.mxu1 %v7489_v61 }
0x43a8   :  { %5739 = vmatprep.subr.bf16.mxu1 %v7492_v11 }
0x43ab   :  { %5741 = vmatpush1.bf16.msra.mxu1 %v7497_v44 }
0x4471   :  { %v4475_v34 = vpop.f32.mrb[30].mxu1 }
0x4472   :  { %v4477_v5 = vpop.f32.mrb[31].mxu1  ;;  %v4482_v8 = vrot.slane %v4475_v34, 3 }
0x4473   :  { %v4483_v35 = vrot.slane %v4477_v5, 3 }
0x4474   :  { %v4486_v16 = vadd.f32 %v4482_v8, %v7521_v21 }
0x4475   :  { %v4487_v46 = vadd.f32 %v4483_v35, %v7525_v3 }
0x4476   :  { %v5075_v40 = vmul.f32 -1.442695, %v4486_v16 }
0x4477   :  { %6194 = vtanh.f32 %v4487_v46  ;;  %v5076_v49 = vmul.f32 -1.442695, %v4487_v46 }
0x4478   :  { %6196 = vpow2.f32 %v5075_v40 }
0x4481   :  { %v6195_v60 = vpop.eup %6194 }
0x4482   :  { %4506 = vrot.lane.b32.xlu1 %v6195_v60, %s6308_s2  ;;  %v6197_v14 = vpop.eup %6196 }
0x4483   :  { %v4494_v61 = vadd.f32 1.0, %v6197_v14 }
0x4485   :  { %6198 = vrcp.f32 %v4494_v61  ;;  %v4784_v61 = vld [vmem:[#allocation6] sm:$0xff] }
0x448f   :  { %v6199_v11 = vpop.eup %6198 }
0x4490   :  { %v4504_v36 = vmul.f32 %v6199_v11, %v4502_v17  ;;  %v4786_v17 = vld [vmem:[#allocation6 + $0x10] sm:$0xff] }
0x44f4   :  { %v4507_v50 = vpop.permute.xlu1 %4506 }
0x44f5   :  { %v4509_v44 = vmul.f32 %v6199_v11, %v4507_v50  ;;  %v4785_v11 = vld [vmem:[#allocation6 + $0x8] sm:$0xff] }
0x44f6   :  { %v5749_v50 = vpack.c.bf16 %v4785_v11, %v4784_v61 }
0x44f7   :  { %4511 = vrot.lane.b32.xlu0 %v4509_v44, %s6308_s2 }
0x4569   :  { %v4512_v3 = vpop.permute.xlu0 %4511 }
0x456a   :  { %v4514_v41 = vadd.f32 %v4512_v3, %v4504_v36  ;;  %v4787_v36 = vld [vmem:[#allocation6 + $0x18] sm:$0xff] }
0x456c   :  { %6200 = vtanh.f32 %v4514_v41  ;;  %v4618_v55 = vrot.slane %v4514_v41, 7  ;;  %v5752_v41 = vpack.c.bf16 %v4787_v36, %v4786_v17 }
0x456d   :  { %6202 = vpow2.f32 %v5076_v49  ;;  %v4788_v49 = vld [vmem:[#allocation6 + $0x20] sm:$0xff] }
0x4576   :  { %v6201_v47 = vpop.eup %6200 }
0x4577   :  { %4517 = vrot.lane.b32.xlu1 %v6201_v47, %s6308_s2  ;;  %v6203_v21 = vpop.eup %6202 }
0x4578   :  { %v4495_v10 = vadd.f32 1.0, %v6203_v21  ;;  %v4789_v21 = vld [vmem:[#allocation6 + $0x28] sm:$0xff] }
0x457a   :  { %6204 = vrcp.f32 %v4495_v10  ;;  %v4790_v10 = vld [vmem:[#allocation6 + $0x30] sm:$0xff] }
0x4584   :  { %v6205_v29 = vpop.eup %6204 }
0x45e9   :  { %v4518_v52 = vpop.permute.xlu1 %4517 }
0x45ea   :  { %v7639_v32 = vmul.f32 %v6205_v29, %v4518_v52  ;;  %v5743_v52 = vpack.c.bf16 %v4789_v21, %v4788_v49 }
0x45ec   :  { %v4522_v51 = vrot.slane %v7639_v32, 5  ;;  %v4757_v63 = vsel %vm3602_vm13, %v4756_v45, %v7639_v32 }
0x45ee   :  { %5077 = vmatmul.mubr.msk.f32.vlgmr.msra.gmra.mrb[36].mxu0 %vm118_vm0, %v4522_v51  ;;  %v4791_v51 = vld [vmem:[#allocation6 + $0x38] sm:$0xff] }
0x46c1   :  { %v4591_v2 = vpop.f32.mrb[36].mxu0 }
0x46c2   :  { %v4593_v22 = vpop.f32.mrb[37].mxu0  ;;  %v4598_v15 = vrot.slane %v4591_v2, 2 }
0x46c3   :  { %v4599_v6 = vrot.slane %v4593_v22, 2 }
0x46c4   :  { %v4602_v48 = vadd.f32 %v4598_v15, %v7523_v54 }
0x46c5   :  { %v4603_v26 = vadd.f32 %v4599_v6, %v7527_v59 }
0x46c6   :  { %v5078_v7 = vmul.f32 -1.442695, %v4602_v48 }
0x46c7   :  { %6206 = vtanh.f32 %v4603_v26  ;;  %v5079_v53 = vmul.f32 -1.442695, %v4603_v26 }
0x46c8   :  { %6208 = vpow2.f32 %v5078_v7 }
0x46d1   :  { %v6207_v28 = vpop.eup %6206 }
0x46d2   :  { %4622 = vrot.lane.b32.xlu0 %v6207_v28, %s6308_s2  ;;  %v6209_v18 = vpop.eup %6208 }
0x46d3   :  { %v4610_v42 = vadd.f32 1.0, %v6209_v18  ;;  %v4765_v18 = vrot.slane %v7639_v32, 3  ;;  %v4775_v32 = vrot.slane %v7542_v13, 1 }
0x46d5   :  { %6210 = vrcp.f32 %v4610_v42  ;;  %v4767_v42 = vrot.slane %v7620_v43, 1 }
0x46df   :  { %v6211_v23 = vpop.eup %6210 }
0x46e0   :  { %v4620_v1 = vmul.f32 %v6211_v23, %v4618_v55  ;;  %v4771_v55 = vrot.slane %v7578_v9, 5 }
0x4744   :  { %v4623_v37 = vpop.permute.xlu0 %4622 }
0x4745   :  { %v4625_v25 = vmul.f32 %v6211_v23, %v4623_v37  ;;  %v4769_v37 = vrot.slane %v7601_v27, 7 }
0x4747   :  { %4627 = vrot.lane.b32.xlu1 %v4625_v25, %s6308_s2 }
0x47b9   :  { %v4628_v59 = vpop.permute.xlu1 %4627 }
0x47ba   :  { %v4630_v24 = vadd.f32 %v4628_v59, %v4620_v1  ;;  %v4773_v59 = vrot.slane %v7560_v62, 3  ;;  %v5085_v62 = vld [vmem:[%s7697_s11] ss:$0 sm:$0xff] }
0x47bc   :  { %6212 = vtanh.f32 %v4630_v24  ;;  %v4734_v44 = vrot.slane %v4630_v24, 7 }
0x47bd   :  { %6214 = vpow2.f32 %v5079_v53 }
0x47c6   :  { %v6213_v12 = vpop.eup %6212 }
0x47c7   :  { %4633 = vrot.lane.b32.xlu0 %v6213_v12, %s6308_s2  ;;  %v6215_v54 = vpop.eup %6214 }
0x47c8   :  { %v4611_v58 = vadd.f32 1.0, %v6215_v54 }
0x47ca   :  { %6216 = vrcp.f32 %v4611_v58 }
0x47d4   :  { %v6217_v39 = vpop.eup %6216 }
0x4839   :  { %v4634_v4 = vpop.permute.xlu0 %4633 }
0x483a   :  { %v7650_v19 = vmul.f32 %v6217_v39, %v4634_v4 }
0x483c   :  { %v4638_v57 = vrot.slane %v7650_v19, 6  ;;  %v4758_v31 = vsel %vm3604_vm14, %v4757_v63, %v7650_v19  ;;  %v5746_v63 = vpack.c.bf16 %v4791_v51, %v4790_v10  ;;  %v4763_v15 = vrot.slane %v7650_v19, 5 }
0x483e   :  { %5080 = vmatmul.mubr.msk.f32.vlgmr.msra.gmra.mrb[32].mxu1 %vm118_vm0, %v4638_v57  ;;  %vm6310_vm0 = vmmov 0  }
0x483f   :  { %5115 = vmatprep.mubr.msk.f32.mxu1 %vm6310_vm0, %v6307_v0  ;;  %5104 = vmatprep.mubr.msk.f32.mxu0 %vm6310_vm0, %v6307_v0 }
0x4911   :  { %v4707_v20 = vpop.f32.mrb[32].mxu1 }
0x4912   :  { %v4709_v30 = vpop.f32.mrb[33].mxu1  ;;  %v4714_v5 = vrot.slane %v4707_v20, 1 }
0x4913   :  { %v4715_v33 = vrot.slane %v4709_v30, 1 }
0x4914   :  { %v4718_v35 = vadd.f32 %v4714_v5, %v7529_v56 }
0x4915   :  { %v4719_v45 = vadd.f32 %v4715_v33, %v7531_v38  ;;  %v6309_v38 = vmov 0.0|0.0  }
0x4916   :  { %v5081_v46 = vmul.f32 -1.442695, %v4718_v35  ;;  %5748 = vmatprep.subr.bf16.mxu1 %v6309_v38  ;;  %5742 = vmatprep.subr.bf16.mxu0 %v6309_v38 }
0x4917   :  { %6218 = vtanh.f32 %v4719_v45  ;;  %5750 = vmatpush3.bf16.msra.mxu1 %v5749_v50  ;;  %5744 = vmatpush3.bf16.msra.mxu0 %v5743_v52  ;;  %v5082_v2 = vmul.f32 -1.442695, %v4719_v45 }
0x4918   :  { %6220 = vpow2.f32 %v5081_v46  ;;  %5751 = vmatprep.subr.bf16.mxu1 %v6309_v38  ;;  %5745 = vmatprep.subr.bf16.mxu0 %v6309_v38 }
0x491b   :  { %5753 = vmatpush3.bf16.msra.mxu1 %v5752_v41  ;;  %5747 = vmatpush3.bf16.msra.mxu0 %v5746_v63 }
0x4921   :  { %v6219_v34 = vpop.eup %6218 }
0x4922   :  { %4738 = vrot.lane.b32.xlu1 %v6219_v34, %s6308_s2  ;;  %v6221_v60 = vpop.eup %6220 }
0x4923   :  { %v4726_v8 = vadd.f32 1.0, %v6221_v60 }
0x4925   :  { %6222 = vrcp.f32 %v4726_v8 }
0x492f   :  { %v6223_v16 = vpop.eup %6222 }
0x4930   :  { %v4736_v56 = vmul.f32 %v6223_v16, %v4734_v44 }
0x4994   :  { %v4739_v40 = vpop.permute.xlu1 %4738 }
0x4995   :  { %v4741_v14 = vmul.f32 %v6223_v16, %v4739_v40 }
0x4997   :  { %4743 = vrot.lane.b32.xlu0 %v4741_v14, %s6308_s2 }
0x4a09   :  { %v4744_v3 = vpop.permute.xlu0 %4743 }
0x4a0a   :  { %v4746_v47 = vadd.f32 %v4744_v3, %v4736_v56 }
0x4a0c   :  { %6224 = vtanh.f32 %v4746_v47 }
0x4a0d   :  { %6226 = vpow2.f32 %v5082_v2 }
0x4a16   :  { %v6225_v29 = vpop.eup %6224 }
0x4a17   :  { %4749 = vrot.lane.b32.xlu1 %v6225_v29, %s6308_s2  ;;  %v6227_v22 = vpop.eup %6226 }
0x4a18   :  { %v4727_v6 = vadd.f32 1.0, %v6227_v22 }
0x4a1a   :  { %6228 = vrcp.f32 %v4727_v6 }
0x4a24   :  { %v6229_v26 = vpop.eup %6228 }
0x4a89   :  { %v4750_v28 = vpop.permute.xlu1 %4749 }
0x4a8a   :  { %v4752_v0 = vmul.f32 %v6229_v26, %v4750_v28 }
0x4a8c   :  { %v4759_v48 = vsel %vm3606_vm15, %v4758_v31, %v4752_v0  ;;  %v4761_v7 = vrot.slane %v4752_v0, 7 }
0x4a8d   :  { %5116 = vmatmul.mubr.msk.f32.vlgmr.msra.gmra.mrb[34].mxu1 %vm4795_vm1, %v4759_v48 }
0x4a8e   :  { %v4777_v23 = vsel %vm3594_vm9, %v4761_v7, %v4763_v15 }
0x4a8f   :  { %v4778_v25 = vsel %vm3596_vm10, %v4777_v23, %v4765_v18 }
0x4a90   :  { %v4779_v1 = vsel %vm3598_vm11, %v4778_v25, %v4767_v42 }
0x4a91   :  { %v4780_v24 = vsel %vm3600_vm12, %v4779_v1, %v4769_v37 }
0x4a92   :  { %v4781_v12 = vsel %vm3602_vm13, %v4780_v24, %v4771_v55 }
0x4a93   :  { %v4782_v43 = vsel %vm3604_vm14, %v4781_v12, %v4773_v59 }
0x4a94   :  { %v4783_v53 = vsel %vm3606_vm15, %v4782_v43, %v4775_v32 }
0x4a95   :  { %4793 = vrot.lane.b32.xlu0 %v4783_v53, %s6311_s9 }
0x4b07   :  { %v4794_v27 = vpop.permute.xlu0 %4793 }
0x4b08   :  { %5105 = vmatmul.mubr.msk.f32.vlgmr.msra.gmra.mrb[38].mxu0 %vm4795_vm1, %v4794_v27 }
0x4b60   :  { %v4937_v9 = vpop.f32.mrb[34].mxu1 }
0x4b61   :  { %v5117_v54 = vpop.f32.mrb[35].mxu1 }
0x4bdb   :  { %v4864_v58 = vpop.f32.mrb[38].mxu0 }
0x4bdc   :  { %v4938_v39 = vadd.f32 %v4937_v9, %v4864_v58  ;;  %v5106_v13 = vpop.f32.mrb[39].mxu0 }
0x4bde   :  { %v4948_v4 = vadd.f32 %v5085_v62, %v4938_v39 }
0x4be0   :  { %4949 = vst [vmem:[%s7698_s12] sm:$0xff] %v4948_v4 }
0x4be1   :  { %4954 = vsyncpa [#allocation3], 1 }
0x4be2   :  { %4955 = vsyncpa [#allocation5], 1 }

</bundles_post_ra>
